<compile_context>
chip_gen: v5e
topology: v5e:2x2
jax: 0.10.0
libtpu: 0.0.40
codegen_flags: <defaults>
</compile_context>

<pallas_src>
import jax
import jax.numpy as jnp
from jax.experimental import pallas as pl
from jax.experimental.pallas import tpu as pltpu

BN_EPS = 1e-5
LANES = 128       # lane width
ROW_GAP = 8       # zero rows between batches inside a tile (>= max conv pad = 3)
HALO = 16         # leading zero rows in the scratch slab (bf16-tile aligned)
TRAIL = 16        # trailing zero rows in the scratch slab
CMAX = 3 * 128    # widest conv input channels (cross branch = 128*3)


def _round8(n):
    return ((n + 7) // 8) * 8


def _layer_table(c_in):
    # (branch, is_first_im2col_layer, K, Cin, Cout) -- kernel argument order.
    return (
        ("orig",  True,  7, c_in, 128),
        ("orig",  False, 5, 128,  128),
        ("orig",  False, 3, 128,  128),
        ("h1",    True,  7, c_in, 128),
        ("h1",    False, 5, 128,  256),
        ("h1",    False, 3, 256,  128),
        ("h2",    True,  7, c_in, 128),
        ("cross", False, 7, 384,  128),
        ("cross", False, 5, 128,  128),
        ("cross", False, 3, 128,  128),
    )


# ----------------------------------------------------------------------------
# Fused kernel (one grid step = one batch tile of `bt` samples)
# ----------------------------------------------------------------------------
def _make_mhnn_kernel(bt, S, L, rows_out):
    R = bt * S
    SLAB_ROWS = R + HALO + TRAIL
    L_o, L_1, L_2 = L, L // 2, L // 4
    L_min = L // 4

    def kernel(*refs):
        x0_ref, x1_ref, x2_ref = refs[0], refs[1], refs[2]
        conv = refs[3:33]                      # 10 layers x (w, scale, shift)
        cls_w_ref, cls_b_ref = refs[33], refs[34]
        o_ref = refs[35]
        slab = refs[36]                        # persistent zero-halo VMEM slab

        # Zero the slab (halo rows [0,HALO) and [HALO+R, SLAB_ROWS) stay zero forever;
        # valid rows are overwritten by every layer's masked activations).
        slab[...] = jnp.zeros_like(slab)

        row_in_batch = jax.lax.broadcasted_iota(jnp.int32, (R, 1), 0) % S

        def valid_mask(nrows):                 # (R,1) f32: 1 on valid rows, 0 elsewhere
            return (row_in_batch < nrows).astype(jnp.float32)

        def first_layer(im_ref, idx, nrows):
            # im2col slab already carries the 'same' padding; one dense 128-deep dot.
            w_ref, s_ref, t_ref = conv[3 * idx], conv[3 * idx + 1], conv[3 * idx + 2]
            xi = im_ref[...].reshape(R, LANES)                       # bf16
            acc = jnp.dot(xi, w_ref[...], preferred_element_type=jnp.float32)
            return jnp.maximum(acc * s_ref[...] + t_ref[...], 0.0) * valid_mask(nrows)

        def conv_layer(y, idx, K, cin, nrows):
            # Stage masked input into the aligned valid region of the zero-halo slab
            # (cast to bf16 exactly once), then K tap dots with f32 accumulation.
            w_ref, s_ref, t_ref = conv[3 * idx], conv[3 * idx + 1], conv[3 * idx + 2]
            pad = (K - 1) // 2
            slab[HALO:HALO + R, 0:cin] = y.astype(jnp.bfloat16)
            acc = jnp.dot(slab[HALO - pad:HALO - pad + R, 0:cin], w_ref[0],
                          preferred_element_type=jnp.float32)
            for k in range(1, K):
                acc = acc + jnp.dot(
                    slab[HALO - pad + k:HALO - pad + k + R, 0:cin], w_ref[k],
                    preferred_element_type=jnp.float32)
            return jnp.maximum(acc * s_ref[...] + t_ref[...], 0.0) * valid_mask(nrows)

        # --- original branch (length L) ---
        y = first_layer(x0_ref, 0, L_o)
        y = conv_layer(y, 1, 5, 128, L_o)
        y_orig = conv_layer(y, 2, 3, 128, L_o)
        # --- h1 branch (length L/2) ---
        y = first_layer(x1_ref, 3, L_1)
        y = conv_layer(y, 4, 5, 128, L_1)
        y_h1 = conv_layer(y, 5, 3, 256, L_1)
        # --- h2 branch (length L/4) ---
        y_h2 = first_layer(x2_ref, 6, L_2)
        # TODO(synk): h3_mlp branch skipped (its result never reaches the output).

        # --- cross branch: truncate to min_length = L/4, concat channels ---
        comb = jnp.concatenate([y_orig, y_h1, y_h2], axis=-1) * valid_mask(L_min)
        y = conv_layer(comb, 7, 7, 384, L_min)
        y = conv_layer(y, 8, 5, 128, L_min)
        y_cross = conv_layer(y, 9, 3, 128, L_min)

        # adaptive_avg_pool1d(., 1): mean over the L_min valid rows of each batch
        # (invalid rows are already zero thanks to the mask).
        if bt == 1:
            pooled = jnp.sum(y_cross, axis=0, keepdims=True) * (1.0 / L_min)
        else:
            pooled = jnp.sum(y_cross.reshape(bt, S, LANES), axis=1) * (1.0 / L_min)

        logits = (jnp.dot(pooled.astype(jnp.bfloat16), cls_w_ref[...],
                          preferred_element_type=jnp.float32) + cls_b_ref[...])
        if bt == rows_out:
            block = logits
        else:
            block = jnp.concatenate(
                [logits, jnp.zeros((rows_out - bt, LANES), jnp.float32)], axis=0)
        o_ref[0] = block

    return kernel


# ----------------------------------------------------------------------------
# Wrapper
# ----------------------------------------------------------------------------
def _const_spec(shape):
    nd = len(shape)
    return pl.BlockSpec(shape, lambda i, _nd=nd: (0,) * _nd)


def _pack_first(seq, K, S):
    """(B, Lb, C) f32 -> (B, S, 128) bf16 im2col slab ('same' zero pad baked in)."""
    B, Lb, C = seq.shape
    pad = (K - 1) // 2
    xp = jnp.pad(seq, ((0, 0), (pad, pad), (0, 0)))
    cols = jnp.concatenate([xp[:, k:k + Lb, :] for k in range(K)], axis=-1)  # (B,Lb,K*C)
    out = jnp.zeros((B, S, LANES), jnp.bfloat16)
    return out.at[:, :Lb, :K * C].set(cols.astype(jnp.bfloat16))


def _cost_estimate(B, L, S, table):
    lmap = {"orig": L, "h1": L // 2, "h2": L // 4, "cross": L // 4}
    flops, wbytes = 0, 0
    for branch, is_first, K, cin, cout in table:
        flops += 2 * B * lmap[branch] * K * cin * cout
        wbytes += (LANES * cout * 2) if is_first else (K * cin * cout * 2)
        wbytes += 2 * cout * 4
    flops += 2 * B * 128 * LANES
    wbytes += 128 * LANES * 2 + LANES * 4
    io = 3 * B * S * LANES * 2 + B * LANES * 4
    return pl.CostEstimate(flops=int(flops), transcendentals=0,
                           bytes_accessed=int(wbytes + io))


def build_forward(input_channels, num_classes, L=8, bt=1):
    assert L % 4 == 0, "sequence length must be divisible by 4"
    assert 7 * input_channels <= LANES, "first-layer im2col must fit in 128 lanes"
    S = _round8(L) + ROW_GAP                  # per-batch row stride (aligned)
    rows_out = max(8, _round8(bt))
    table = _layer_table(input_channels)

    def fwd(x, kp):
        B = x.shape[0]
        assert B % bt == 0
        gb = B // bt

        # avg_pool1d(k=2) pyramid on the VPU (wrapper side, negligible HBM traffic).
        H1 = 0.5 * (x[:, 0::2, :] + x[:, 1::2, :])
        H2 = 0.5 * (H1[:, 0::2, :] + H1[:, 1::2, :])
        # First-layer im2col slabs, lane-dense and bf16 (cast exactly once).
        x0 = _pack_first(x, 7, S)
        x1 = _pack_first(H1, 7, S)
        x2 = _pack_first(H2, 7, S)

        flat = [x0, x1, x2]
        batched_spec = pl.BlockSpec((bt, S, LANES), lambda i: (i, 0, 0))
        in_specs = [batched_spec, batched_spec, batched_spec]
        for lyr in kp["conv"]:
            for a in (lyr["w"], lyr["scale"], lyr["shift"]):
                flat.append(a)
                in_specs.append(_const_spec(a.shape))
        for a in (kp["cls_w"], kp["cls_b"]):
            flat.append(a)
            in_specs.append(_const_spec(a.shape))

        kernel = _make_mhnn_kernel(bt, S, L, rows_out)
        out = pl.pallas_call(
            kernel,
            out_shape=jax.ShapeDtypeStruct((gb, rows_out, LANES), jnp.float32),
            grid_spec=pltpu.PrefetchScalarGridSpec(
                num_scalar_prefetch=0,
                grid=(gb,),
                in_specs=in_specs,
                out_specs=pl.BlockSpec((1, rows_out, LANES), lambda i: (i, 0, 0)),
                scratch_shapes=[pltpu.VMEM((bt * S + HALO + TRAIL, CMAX),
                                           jnp.bfloat16)],
            ),
            compiler_params=pltpu.CompilerParams(
                dimension_semantics=("parallel",),      # v7x: 2 TCs split the batch
                vmem_limit_bytes=32 * 1024 * 1024),
            cost_estimate=_cost_estimate(B, L, S, table),
        )(*flat)
        return out[:, :bt, :].reshape(B, LANES)[:, :num_classes]

    return jax.jit(fwd)


# ----------------------------------------------------------------------------
# Deterministic synthetic parameters (kernel layout + raw f32 for the reference)
# ----------------------------------------------------------------------------
def init_params(key, input_channels, num_classes, L):
    table = _layer_table(input_channels)
    keys = jax.random.split(key, len(table) + 1)
    conv_k = []
    ref = {"orig": [], "h1": [], "h2": [], "cross": []}
    for (branch, is_first, K, cin, cout), kk in zip(table, keys[:-1]):
        k1, k2, k3, k4, k5, k6 = jax.random.split(kk, 6)
        w = jax.random.normal(k1, (K, cin, cout), jnp.float32) / float(cin * K) ** 0.5
        bias = 0.01 * jax.random.normal(k2, (cout,), jnp.float32)
        gamma = 1.0 + 0.1 * jax.random.normal(k3, (cout,), jnp.float32)
        beta = 0.05 * jax.random.normal(k4, (cout,), jnp.float32)
        rmean = 0.05 * jax.random.normal(k5, (cout,), jnp.float32)
        rvar = 1.0 + 0.1 * jax.random.uniform(k6, (cout,), jnp.float32)
        scale = (gamma / jnp.sqrt(rvar + BN_EPS)).reshape(1, cout)
        shift = ((bias - rmean).reshape(1, cout) * scale + beta.reshape(1, cout))
        ref[branch].append({"w": w, "scale": scale, "shift": shift})
        if is_first:
            w_k = (jnp.zeros((LANES, cout), jnp.float32)
                   .at[:K * cin, :].set(w.reshape(K * cin, cout))
                   .astype(jnp.bfloat16))                      # im2col-merged, padded
        else:
            w_k = w.astype(jnp.bfloat16)                       # (K, Cin, Cout) taps
        conv_k.append({"w": w_k, "scale": scale, "shift": shift})

    kw, kb = jax.random.split(keys[-1])
    cls_w = jax.random.normal(kw, (128, num_classes), jnp.float32) / 128.0 ** 0.5
    cls_b = 0.01 * jax.random.normal(kb, (num_classes,), jnp.float32)
    cls_w_pad = (jnp.zeros((128, LANES), jnp.float32)
                 .at[:, :num_classes].set(cls_w).astype(jnp.bfloat16))
    cls_b_pad = jnp.zeros((1, LANES), jnp.float32).at[:, :num_classes].set(cls_b)

    kparams = {"conv": conv_k, "cls_w": cls_w_pad, "cls_b": cls_b_pad}
    refparams = {**ref, "cls_w": cls_w, "cls_b": cls_b}
    return kparams, refparams


# ----------------------------------------------------------------------------
# Pure-JAX f32 reference (mirrors the PyTorch forward) for a tolerance check
# ----------------------------------------------------------------------------
def _reference_forward(x, rp):
    def conv_bn_relu(a, w, scale, shift):
        K = w.shape[0]
        pad = (K - 1) // 2
        Lb = a.shape[1]
        ap = jnp.pad(a, ((0, 0), (pad, pad), (0, 0)))
        out = jnp.zeros(a.shape[:2] + (w.shape[2],), jnp.float32)
        for k in range(K):
            out = out + jnp.einsum("blc,cd->bld", ap[:, k:k + Lb, :], w[k])
        return jnp.maximum(out * scale + shift, 0.0)

    H1 = 0.5 * (x[:, 0::2, :] + x[:, 1::2, :])
    H2 = 0.5 * (H1[:, 0::2, :] + H1[:, 1::2, :])
    o, h1, h2 = x, H1, H2
    for lyr in rp["orig"]:
        o = conv_bn_relu(o, lyr["w"], lyr["scale"], lyr["shift"])
    for lyr in rp["h1"]:
        h1 = conv_bn_relu(h1, lyr["w"], lyr["scale"], lyr["shift"])
    for lyr in rp["h2"]:
        h2 = conv_bn_relu(h2, lyr["w"], lyr["scale"], lyr["shift"])
    lmin = min(o.shape[1], h1.shape[1], h2.shape[1])
    c = jnp.concatenate([o[:, :lmin], h1[:, :lmin], h2[:, :lmin]], axis=-1)
    for lyr in rp["cross"]:
        c = conv_bn_relu(c, lyr["w"], lyr["scale"], lyr["shift"])
    pooled = jnp.mean(c, axis=1)
    return pooled @ rp["cls_w"] + rp["cls_b"]


# ----------------------------------------------------------------------------
if __name__ == "__main__":
    key = jax.random.PRNGKey(0)
    k_x, k_p = jax.random.split(key)

    input_channels, num_classes = 4, 5
    B, L = 2, 8   # L must be 8 in the PyTorch module (h3_mlp Linear(input_channels,128))

    x = jax.random.normal(k_x, (B, L, input_channels), jnp.float32)
    kparams, refparams = init_params(k_p, input_channels, num_classes, L)

    fwd = build_forward(input_channels, num_classes, L=L, bt=1)
    out = jax.block_until_ready(fwd(x, kparams))
    assert out.shape == (B, num_classes) and out.dtype == jnp.float32

    ref = _reference_forward(x, refparams)
    err = float(jnp.max(jnp.abs(out - ref)))
    assert err < 0.1, f"max |kernel - reference| = {err}"
    print("KERNEL_OK")
</pallas_src>

<mosaic_0001>
module attributes {stable_mosaic.version = 11 : i64} {
  func.func @kernel(%arg0: i32, %arg1: memref<1x16x128xbf16, #tpu.memory_space<vmem>>, %arg2: memref<1x16x128xbf16, #tpu.memory_space<vmem>>, %arg3: memref<1x16x128xbf16, #tpu.memory_space<vmem>>, %arg4: memref<128x128xbf16, #tpu.memory_space<vmem>>, %arg5: memref<1x128xf32, #tpu.memory_space<vmem>>, %arg6: memref<1x128xf32, #tpu.memory_space<vmem>>, %arg7: memref<5x128x128xbf16, #tpu.memory_space<vmem>>, %arg8: memref<1x128xf32, #tpu.memory_space<vmem>>, %arg9: memref<1x128xf32, #tpu.memory_space<vmem>>, %arg10: memref<3x128x128xbf16, #tpu.memory_space<vmem>>, %arg11: memref<1x128xf32, #tpu.memory_space<vmem>>, %arg12: memref<1x128xf32, #tpu.memory_space<vmem>>, %arg13: memref<128x128xbf16, #tpu.memory_space<vmem>>, %arg14: memref<1x128xf32, #tpu.memory_space<vmem>>, %arg15: memref<1x128xf32, #tpu.memory_space<vmem>>, %arg16: memref<5x128x256xbf16, #tpu.memory_space<vmem>>, %arg17: memref<1x256xf32, #tpu.memory_space<vmem>>, %arg18: memref<1x256xf32, #tpu.memory_space<vmem>>, %arg19: memref<3x256x128xbf16, #tpu.memory_space<vmem>>, %arg20: memref<1x128xf32, #tpu.memory_space<vmem>>, %arg21: memref<1x128xf32, #tpu.memory_space<vmem>>, %arg22: memref<128x128xbf16, #tpu.memory_space<vmem>>, %arg23: memref<1x128xf32, #tpu.memory_space<vmem>>, %arg24: memref<1x128xf32, #tpu.memory_space<vmem>>, %arg25: memref<7x384x128xbf16, #tpu.memory_space<vmem>>, %arg26: memref<1x128xf32, #tpu.memory_space<vmem>>, %arg27: memref<1x128xf32, #tpu.memory_space<vmem>>, %arg28: memref<5x128x128xbf16, #tpu.memory_space<vmem>>, %arg29: memref<1x128xf32, #tpu.memory_space<vmem>>, %arg30: memref<1x128xf32, #tpu.memory_space<vmem>>, %arg31: memref<3x128x128xbf16, #tpu.memory_space<vmem>>, %arg32: memref<1x128xf32, #tpu.memory_space<vmem>>, %arg33: memref<1x128xf32, #tpu.memory_space<vmem>>, %arg34: memref<128x128xbf16, #tpu.memory_space<vmem>>, %arg35: memref<1x128xf32, #tpu.memory_space<vmem>>, %arg36: memref<1x8x128xf32, #tpu.memory_space<vmem>>, %arg37: memref<48x384xbf16, #tpu.memory_space<vmem>>) attributes {dimension_semantics = [#tpu.dimension_semantics<parallel>], iteration_bounds = array<i64: 2>, scalar_prefetch = 0 : i64, scratch_operands = 1 : i64, tpu.core_type = #tpu.core_type<tc>, window_params = [{transform_indices = @transform_0, window_bounds = array<i64: 1, 16, 128>}, {transform_indices = @transform_1, window_bounds = array<i64: 1, 16, 128>}, {transform_indices = @transform_2, window_bounds = array<i64: 1, 16, 128>}, {pipeline_mode = #tpu.pipeline_mode<synchronous>, transform_indices = @transform_3, window_bounds = array<i64: 128, 128>}, {pipeline_mode = #tpu.pipeline_mode<synchronous>, transform_indices = @transform_4, window_bounds = array<i64: 1, 128>}, {pipeline_mode = #tpu.pipeline_mode<synchronous>, transform_indices = @transform_5, window_bounds = array<i64: 1, 128>}, {pipeline_mode = #tpu.pipeline_mode<synchronous>, transform_indices = @transform_6, window_bounds = array<i64: 5, 128, 128>}, {pipeline_mode = #tpu.pipeline_mode<synchronous>, transform_indices = @transform_7, window_bounds = array<i64: 1, 128>}, {pipeline_mode = #tpu.pipeline_mode<synchronous>, transform_indices = @transform_8, window_bounds = array<i64: 1, 128>}, {pipeline_mode = #tpu.pipeline_mode<synchronous>, transform_indices = @transform_9, window_bounds = array<i64: 3, 128, 128>}, {pipeline_mode = #tpu.pipeline_mode<synchronous>, transform_indices = @transform_10, window_bounds = array<i64: 1, 128>}, {pipeline_mode = #tpu.pipeline_mode<synchronous>, transform_indices = @transform_11, window_bounds = array<i64: 1, 128>}, {pipeline_mode = #tpu.pipeline_mode<synchronous>, transform_indices = @transform_12, window_bounds = array<i64: 128, 128>}, {pipeline_mode = #tpu.pipeline_mode<synchronous>, transform_indices = @transform_13, window_bounds = array<i64: 1, 128>}, {pipeline_mode = #tpu.pipeline_mode<synchronous>, transform_indices = @transform_14, window_bounds = array<i64: 1, 128>}, {pipeline_mode = #tpu.pipeline_mode<synchronous>, transform_indices = @transform_15, window_bounds = array<i64: 5, 128, 256>}, {pipeline_mode = #tpu.pipeline_mode<synchronous>, transform_indices = @transform_16, window_bounds = array<i64: 1, 256>}, {pipeline_mode = #tpu.pipeline_mode<synchronous>, transform_indices = @transform_17, window_bounds = array<i64: 1, 256>}, {pipeline_mode = #tpu.pipeline_mode<synchronous>, transform_indices = @transform_18, window_bounds = array<i64: 3, 256, 128>}, {pipeline_mode = #tpu.pipeline_mode<synchronous>, transform_indices = @transform_19, window_bounds = array<i64: 1, 128>}, {pipeline_mode = #tpu.pipeline_mode<synchronous>, transform_indices = @transform_20, window_bounds = array<i64: 1, 128>}, {pipeline_mode = #tpu.pipeline_mode<synchronous>, transform_indices = @transform_21, window_bounds = array<i64: 128, 128>}, {pipeline_mode = #tpu.pipeline_mode<synchronous>, transform_indices = @transform_22, window_bounds = array<i64: 1, 128>}, {pipeline_mode = #tpu.pipeline_mode<synchronous>, transform_indices = @transform_23, window_bounds = array<i64: 1, 128>}, {pipeline_mode = #tpu.pipeline_mode<synchronous>, transform_indices = @transform_24, window_bounds = array<i64: 7, 384, 128>}, {pipeline_mode = #tpu.pipeline_mode<synchronous>, transform_indices = @transform_25, window_bounds = array<i64: 1, 128>}, {pipeline_mode = #tpu.pipeline_mode<synchronous>, transform_indices = @transform_26, window_bounds = array<i64: 1, 128>}, {pipeline_mode = #tpu.pipeline_mode<synchronous>, transform_indices = @transform_27, window_bounds = array<i64: 5, 128, 128>}, {pipeline_mode = #tpu.pipeline_mode<synchronous>, transform_indices = @transform_28, window_bounds = array<i64: 1, 128>}, {pipeline_mode = #tpu.pipeline_mode<synchronous>, transform_indices = @transform_29, window_bounds = array<i64: 1, 128>}, {pipeline_mode = #tpu.pipeline_mode<synchronous>, transform_indices = @transform_30, window_bounds = array<i64: 3, 128, 128>}, {pipeline_mode = #tpu.pipeline_mode<synchronous>, transform_indices = @transform_31, window_bounds = array<i64: 1, 128>}, {pipeline_mode = #tpu.pipeline_mode<synchronous>, transform_indices = @transform_32, window_bounds = array<i64: 1, 128>}, {pipeline_mode = #tpu.pipeline_mode<synchronous>, transform_indices = @transform_33, window_bounds = array<i64: 128, 128>}, {pipeline_mode = #tpu.pipeline_mode<synchronous>, transform_indices = @transform_34, window_bounds = array<i64: 1, 128>}, {transform_indices = @transform_35, window_bounds = array<i64: 1, 8, 128>}]} {
    %cst = arith.constant 0.000000e+00 : bf16
    %0 = vector.broadcast %cst : bf16 to vector<48x384xbf16>
    %c0 = arith.constant 0 : index
    %c0_0 = arith.constant 0 : index
    %1 = vector.load %arg37[%c0, %c0_0] : memref<48x384xbf16, #tpu.memory_space<vmem>>, vector<48x384xbf16>
    tpu.vector_store %arg37[%c0, %c0_0], %0 {strides = array<i32>} : memref<48x384xbf16, #tpu.memory_space<vmem>>, vector<48x384xbf16>,
    %2 = tpu.iota {dimensions = array<i32: 0>} : vector<16x1xi32>
    %c16_i32 = arith.constant 16 : i32
    %c0_i32 = arith.constant 0 : i32
    %3 = arith.cmpi eq, %c16_i32, %c0_i32 : i32
    %c1_i32 = arith.constant 1 : i32
    %4 = arith.select %3, %c1_i32, %c16_i32 : i32
    %5 = vector.broadcast %4 : i32 to vector<16x1xi32>
    %6 = arith.remsi %2, %5 : vector<16x1xi32>
    %c0_i32_1 = arith.constant 0 : i32
    %7 = vector.broadcast %c0_i32_1 : i32 to vector<16x1xi32>
    %8 = arith.cmpi ne, %6, %7 : vector<16x1xi32>
    %c0_i32_2 = arith.constant 0 : i32
    %9 = vector.broadcast %c0_i32_2 : i32 to vector<16x1xi32>
    %10 = arith.cmpi slt, %6, %9 : vector<16x1xi32>
    %c0_i32_3 = arith.constant 0 : i32
    %11 = arith.cmpi slt, %4, %c0_i32_3 : i32
    %12 = vector.broadcast %11 : i1 to vector<16x1xi1>
    %13 = vector.broadcast %12 : vector<16x1xi1> to vector<16x1xi1>
    %14 = arith.xori %10, %13 : vector<16x1xi1>
    %15 = arith.andi %14, %8 : vector<16x1xi1>
    %16 = vector.broadcast %4 : i32 to vector<16x1xi32>
    %17 = arith.addi %6, %16 : vector<16x1xi32>
    %18 = arith.select %15, %17, %6 : vector<16x1xi1>, vector<16x1xi32>
    %c0_4 = arith.constant 0 : index
    %c0_5 = arith.constant 0 : index
    %c0_6 = arith.constant 0 : index
    %19 = vector.load %arg1[%c0_4, %c0_5, %c0_6] : memref<1x16x128xbf16, #tpu.memory_space<vmem>>, vector<1x16x128xbf16>
    %20 = vector.shape_cast %19 : vector<1x16x128xbf16> to vector<16x128xbf16>
    %c0_7 = arith.constant 0 : index
    %c0_8 = arith.constant 0 : index
    %21 = vector.load %arg4[%c0_7, %c0_8] : memref<128x128xbf16, #tpu.memory_space<vmem>>, vector<128x128xbf16>
    %cst_9 = arith.constant dense<0.000000e+00> : vector<16x128xf32>
    %22 = tpu.matmul %20, %21, %cst_9 {dimension_numbers = #tpu.dot_dimension_numbers<[1], [0], [0], [1], [0, 0, 1, 1], [], []>} : vector<16x128xbf16>, vector<128x128xbf16>, vector<16x128xf32> -> vector<16x128xf32>
    %c0_10 = arith.constant 0 : index
    %c0_11 = arith.constant 0 : index
    %23 = vector.load %arg5[%c0_10, %c0_11] : memref<1x128xf32, #tpu.memory_space<vmem>>, vector<1x128xf32>
    %24 = vector.broadcast %23 : vector<1x128xf32> to vector<16x128xf32>
    %25 = arith.mulf %22, %24 : vector<16x128xf32>
    %c0_12 = arith.constant 0 : index
    %c0_13 = arith.constant 0 : index
    %26 = vector.load %arg6[%c0_12, %c0_13] : memref<1x128xf32, #tpu.memory_space<vmem>>, vector<1x128xf32>
    %27 = vector.broadcast %26 : vector<1x128xf32> to vector<16x128xf32>
    %28 = arith.addf %25, %27 : vector<16x128xf32>
    %cst_14 = arith.constant 0.000000e+00 : f32
    %29 = vector.broadcast %cst_14 : f32 to vector<16x128xf32>
    %30 = arith.maximumf %28, %29 : vector<16x128xf32>
    %c8_i32 = arith.constant 8 : i32
    %31 = vector.broadcast %c8_i32 : i32 to vector<16x1xi32>
    %32 = arith.cmpi slt, %18, %31 : vector<16x1xi32>
    %33 = arith.extui %32 : vector<16x1xi1> to vector<16x1xi32>
    %34 = arith.sitofp %33 : vector<16x1xi32> to vector<16x1xf32>
    %35 = vector.broadcast %34 : vector<16x1xf32> to vector<16x128xf32>
    %36 = arith.mulf %30, %35 : vector<16x128xf32>
    %37 = arith.truncf %36 : vector<16x128xf32> to vector<16x128xbf16>
    %c16 = arith.constant 16 : index
    %c0_15 = arith.constant 0 : index
    %38 = vector.load %arg37[%c16, %c0_15] : memref<48x384xbf16, #tpu.memory_space<vmem>>, vector<16x128xbf16>
    tpu.vector_store %arg37[%c16, %c0_15], %37 {strides = array<i32>} : memref<48x384xbf16, #tpu.memory_space<vmem>>, vector<16x128xbf16>,
    %c14 = arith.constant 14 : index
    %c0_16 = arith.constant 0 : index
    %39 = vector.load %arg37[%c14, %c0_16] : memref<48x384xbf16, #tpu.memory_space<vmem>>, vector<16x128xbf16>
    %c0_17 = arith.constant 0 : index
    %c0_18 = arith.constant 0 : index
    %c0_19 = arith.constant 0 : index
    %40 = vector.load %arg7[%c0_17, %c0_18, %c0_19] : memref<5x128x128xbf16, #tpu.memory_space<vmem>>, vector<1x128x128xbf16>
    %41 = vector.shape_cast %40 : vector<1x128x128xbf16> to vector<128x128xbf16>
    %cst_20 = arith.constant dense<0.000000e+00> : vector<16x128xf32>
    %42 = tpu.matmul %39, %41, %cst_20 {dimension_numbers = #tpu.dot_dimension_numbers<[1], [0], [0], [1], [0, 0, 1, 1], [], []>} : vector<16x128xbf16>, vector<128x128xbf16>, vector<16x128xf32> -> vector<16x128xf32>
    %c15 = arith.constant 15 : index
    %c0_21 = arith.constant 0 : index
    %43 = vector.load %arg37[%c15, %c0_21] : memref<48x384xbf16, #tpu.memory_space<vmem>>, vector<16x128xbf16>
    %c1 = arith.constant 1 : index
    %c0_22 = arith.constant 0 : index
    %c0_23 = arith.constant 0 : index
    %44 = vector.load %arg7[%c1, %c0_22, %c0_23] : memref<5x128x128xbf16, #tpu.memory_space<vmem>>, vector<1x128x128xbf16>
    %45 = vector.shape_cast %44 : vector<1x128x128xbf16> to vector<128x128xbf16>
    %cst_24 = arith.constant dense<0.000000e+00> : vector<16x128xf32>
    %46 = tpu.matmul %43, %45, %cst_24 {dimension_numbers = #tpu.dot_dimension_numbers<[1], [0], [0], [1], [0, 0, 1, 1], [], []>} : vector<16x128xbf16>, vector<128x128xbf16>, vector<16x128xf32> -> vector<16x128xf32>
    %47 = arith.addf %42, %46 : vector<16x128xf32>
    %c16_25 = arith.constant 16 : index
    %c0_26 = arith.constant 0 : index
    %48 = vector.load %arg37[%c16_25, %c0_26] : memref<48x384xbf16, #tpu.memory_space<vmem>>, vector<16x128xbf16>
    %c2 = arith.constant 2 : index
    %c0_27 = arith.constant 0 : index
    %c0_28 = arith.constant 0 : index
    %49 = vector.load %arg7[%c2, %c0_27, %c0_28] : memref<5x128x128xbf16, #tpu.memory_space<vmem>>, vector<1x128x128xbf16>
    %50 = vector.shape_cast %49 : vector<1x128x128xbf16> to vector<128x128xbf16>
    %cst_29 = arith.constant dense<0.000000e+00> : vector<16x128xf32>
    %51 = tpu.matmul %48, %50, %cst_29 {dimension_numbers = #tpu.dot_dimension_numbers<[1], [0], [0], [1], [0, 0, 1, 1], [], []>} : vector<16x128xbf16>, vector<128x128xbf16>, vector<16x128xf32> -> vector<16x128xf32>
    %52 = arith.addf %47, %51 : vector<16x128xf32>
    %c17 = arith.constant 17 : index
    %c0_30 = arith.constant 0 : index
    %53 = vector.load %arg37[%c17, %c0_30] : memref<48x384xbf16, #tpu.memory_space<vmem>>, vector<16x128xbf16>
    %c3 = arith.constant 3 : index
    %c0_31 = arith.constant 0 : index
    %c0_32 = arith.constant 0 : index
    %54 = vector.load %arg7[%c3, %c0_31, %c0_32] : memref<5x128x128xbf16, #tpu.memory_space<vmem>>, vector<1x128x128xbf16>
    %55 = vector.shape_cast %54 : vector<1x128x128xbf16> to vector<128x128xbf16>
    %cst_33 = arith.constant dense<0.000000e+00> : vector<16x128xf32>
    %56 = tpu.matmul %53, %55, %cst_33 {dimension_numbers = #tpu.dot_dimension_numbers<[1], [0], [0], [1], [0, 0, 1, 1], [], []>} : vector<16x128xbf16>, vector<128x128xbf16>, vector<16x128xf32> -> vector<16x128xf32>
    %57 = arith.addf %52, %56 : vector<16x128xf32>
    %c18 = arith.constant 18 : index
    %c0_34 = arith.constant 0 : index
    %58 = vector.load %arg37[%c18, %c0_34] : memref<48x384xbf16, #tpu.memory_space<vmem>>, vector<16x128xbf16>
    %c4 = arith.constant 4 : index
    %c0_35 = arith.constant 0 : index
    %c0_36 = arith.constant 0 : index
    %59 = vector.load %arg7[%c4, %c0_35, %c0_36] : memref<5x128x128xbf16, #tpu.memory_space<vmem>>, vector<1x128x128xbf16>
    %60 = vector.shape_cast %59 : vector<1x128x128xbf16> to vector<128x128xbf16>
    %cst_37 = arith.constant dense<0.000000e+00> : vector<16x128xf32>
    %61 = tpu.matmul %58, %60, %cst_37 {dimension_numbers = #tpu.dot_dimension_numbers<[1], [0], [0], [1], [0, 0, 1, 1], [], []>} : vector<16x128xbf16>, vector<128x128xbf16>, vector<16x128xf32> -> vector<16x128xf32>
    %62 = arith.addf %57, %61 : vector<16x128xf32>
    %c0_38 = arith.constant 0 : index
    %c0_39 = arith.constant 0 : index
    %63 = vector.load %arg8[%c0_38, %c0_39] : memref<1x128xf32, #tpu.memory_space<vmem>>, vector<1x128xf32>
    %64 = vector.broadcast %63 : vector<1x128xf32> to vector<16x128xf32>
    %65 = arith.mulf %62, %64 : vector<16x128xf32>
    %c0_40 = arith.constant 0 : index
    %c0_41 = arith.constant 0 : index
    %66 = vector.load %arg9[%c0_40, %c0_41] : memref<1x128xf32, #tpu.memory_space<vmem>>, vector<1x128xf32>
    %67 = vector.broadcast %66 : vector<1x128xf32> to vector<16x128xf32>
    %68 = arith.addf %65, %67 : vector<16x128xf32>
    %cst_42 = arith.constant 0.000000e+00 : f32
    %69 = vector.broadcast %cst_42 : f32 to vector<16x128xf32>
    %70 = arith.maximumf %68, %69 : vector<16x128xf32>
    %c8_i32_43 = arith.constant 8 : i32
    %71 = vector.broadcast %c8_i32_43 : i32 to vector<16x1xi32>
    %72 = arith.cmpi slt, %18, %71 : vector<16x1xi32>
    %73 = arith.extui %72 : vector<16x1xi1> to vector<16x1xi32>
    %74 = arith.sitofp %73 : vector<16x1xi32> to vector<16x1xf32>
    %75 = vector.broadcast %74 : vector<16x1xf32> to vector<16x128xf32>
    %76 = arith.mulf %70, %75 : vector<16x128xf32>
    %77 = arith.truncf %76 : vector<16x128xf32> to vector<16x128xbf16>
    %c16_44 = arith.constant 16 : index
    %c0_45 = arith.constant 0 : index
    %78 = vector.load %arg37[%c16_44, %c0_45] : memref<48x384xbf16, #tpu.memory_space<vmem>>, vector<16x128xbf16>
    tpu.vector_store %arg37[%c16_44, %c0_45], %77 {strides = array<i32>} : memref<48x384xbf16, #tpu.memory_space<vmem>>, vector<16x128xbf16>,
    %c15_46 = arith.constant 15 : index
    %c0_47 = arith.constant 0 : index
    %79 = vector.load %arg37[%c15_46, %c0_47] : memref<48x384xbf16, #tpu.memory_space<vmem>>, vector<16x128xbf16>
    %c0_48 = arith.constant 0 : index
    %c0_49 = arith.constant 0 : index
    %c0_50 = arith.constant 0 : index
    %80 = vector.load %arg10[%c0_48, %c0_49, %c0_50] : memref<3x128x128xbf16, #tpu.memory_space<vmem>>, vector<1x128x128xbf16>
    %81 = vector.shape_cast %80 : vector<1x128x128xbf16> to vector<128x128xbf16>
    %cst_51 = arith.constant dense<0.000000e+00> : vector<16x128xf32>
    %82 = tpu.matmul %79, %81, %cst_51 {dimension_numbers = #tpu.dot_dimension_numbers<[1], [0], [0], [1], [0, 0, 1, 1], [], []>} : vector<16x128xbf16>, vector<128x128xbf16>, vector<16x128xf32> -> vector<16x128xf32>
    %c16_52 = arith.constant 16 : index
    %c0_53 = arith.constant 0 : index
    %83 = vector.load %arg37[%c16_52, %c0_53] : memref<48x384xbf16, #tpu.memory_space<vmem>>, vector<16x128xbf16>
    %c1_54 = arith.constant 1 : index
    %c0_55 = arith.constant 0 : index
    %c0_56 = arith.constant 0 : index
    %84 = vector.load %arg10[%c1_54, %c0_55, %c0_56] : memref<3x128x128xbf16, #tpu.memory_space<vmem>>, vector<1x128x128xbf16>
    %85 = vector.shape_cast %84 : vector<1x128x128xbf16> to vector<128x128xbf16>
    %cst_57 = arith.constant dense<0.000000e+00> : vector<16x128xf32>
    %86 = tpu.matmul %83, %85, %cst_57 {dimension_numbers = #tpu.dot_dimension_numbers<[1], [0], [0], [1], [0, 0, 1, 1], [], []>} : vector<16x128xbf16>, vector<128x128xbf16>, vector<16x128xf32> -> vector<16x128xf32>
    %87 = arith.addf %82, %86 : vector<16x128xf32>
    %c17_58 = arith.constant 17 : index
    %c0_59 = arith.constant 0 : index
    %88 = vector.load %arg37[%c17_58, %c0_59] : memref<48x384xbf16, #tpu.memory_space<vmem>>, vector<16x128xbf16>
    %c2_60 = arith.constant 2 : index
    %c0_61 = arith.constant 0 : index
    %c0_62 = arith.constant 0 : index
    %89 = vector.load %arg10[%c2_60, %c0_61, %c0_62] : memref<3x128x128xbf16, #tpu.memory_space<vmem>>, vector<1x128x128xbf16>
    %90 = vector.shape_cast %89 : vector<1x128x128xbf16> to vector<128x128xbf16>
    %cst_63 = arith.constant dense<0.000000e+00> : vector<16x128xf32>
    %91 = tpu.matmul %88, %90, %cst_63 {dimension_numbers = #tpu.dot_dimension_numbers<[1], [0], [0], [1], [0, 0, 1, 1], [], []>} : vector<16x128xbf16>, vector<128x128xbf16>, vector<16x128xf32> -> vector<16x128xf32>
    %92 = arith.addf %87, %91 : vector<16x128xf32>
    %c0_64 = arith.constant 0 : index
    %c0_65 = arith.constant 0 : index
    %93 = vector.load %arg11[%c0_64, %c0_65] : memref<1x128xf32, #tpu.memory_space<vmem>>, vector<1x128xf32>
    %94 = vector.broadcast %93 : vector<1x128xf32> to vector<16x128xf32>
    %95 = arith.mulf %92, %94 : vector<16x128xf32>
    %c0_66 = arith.constant 0 : index
    %c0_67 = arith.constant 0 : index
    %96 = vector.load %arg12[%c0_66, %c0_67] : memref<1x128xf32, #tpu.memory_space<vmem>>, vector<1x128xf32>
    %97 = vector.broadcast %96 : vector<1x128xf32> to vector<16x128xf32>
    %98 = arith.addf %95, %97 : vector<16x128xf32>
    %cst_68 = arith.constant 0.000000e+00 : f32
    %99 = vector.broadcast %cst_68 : f32 to vector<16x128xf32>
    %100 = arith.maximumf %98, %99 : vector<16x128xf32>
    %c8_i32_69 = arith.constant 8 : i32
    %101 = vector.broadcast %c8_i32_69 : i32 to vector<16x1xi32>
    %102 = arith.cmpi slt, %18, %101 : vector<16x1xi32>
    %103 = arith.extui %102 : vector<16x1xi1> to vector<16x1xi32>
    %104 = arith.sitofp %103 : vector<16x1xi32> to vector<16x1xf32>
    %105 = vector.broadcast %104 : vector<16x1xf32> to vector<16x128xf32>
    %106 = arith.mulf %100, %105 : vector<16x128xf32>
    %c0_70 = arith.constant 0 : index
    %c0_71 = arith.constant 0 : index
    %c0_72 = arith.constant 0 : index
    %107 = vector.load %arg2[%c0_70, %c0_71, %c0_72] : memref<1x16x128xbf16, #tpu.memory_space<vmem>>, vector<1x16x128xbf16>
    %108 = vector.shape_cast %107 : vector<1x16x128xbf16> to vector<16x128xbf16>
    %c0_73 = arith.constant 0 : index
    %c0_74 = arith.constant 0 : index
    %109 = vector.load %arg13[%c0_73, %c0_74] : memref<128x128xbf16, #tpu.memory_space<vmem>>, vector<128x128xbf16>
    %cst_75 = arith.constant dense<0.000000e+00> : vector<16x128xf32>
    %110 = tpu.matmul %108, %109, %cst_75 {dimension_numbers = #tpu.dot_dimension_numbers<[1], [0], [0], [1], [0, 0, 1, 1], [], []>} : vector<16x128xbf16>, vector<128x128xbf16>, vector<16x128xf32> -> vector<16x128xf32>
    %c0_76 = arith.constant 0 : index
    %c0_77 = arith.constant 0 : index
    %111 = vector.load %arg14[%c0_76, %c0_77] : memref<1x128xf32, #tpu.memory_space<vmem>>, vector<1x128xf32>
    %112 = vector.broadcast %111 : vector<1x128xf32> to vector<16x128xf32>
    %113 = arith.mulf %110, %112 : vector<16x128xf32>
    %c0_78 = arith.constant 0 : index
    %c0_79 = arith.constant 0 : index
    %114 = vector.load %arg15[%c0_78, %c0_79] : memref<1x128xf32, #tpu.memory_space<vmem>>, vector<1x128xf32>
    %115 = vector.broadcast %114 : vector<1x128xf32> to vector<16x128xf32>
    %116 = arith.addf %113, %115 : vector<16x128xf32>
    %cst_80 = arith.constant 0.000000e+00 : f32
    %117 = vector.broadcast %cst_80 : f32 to vector<16x128xf32>
    %118 = arith.maximumf %116, %117 : vector<16x128xf32>
    %c4_i32 = arith.constant 4 : i32
    %119 = vector.broadcast %c4_i32 : i32 to vector<16x1xi32>
    %120 = arith.cmpi slt, %18, %119 : vector<16x1xi32>
    %121 = arith.extui %120 : vector<16x1xi1> to vector<16x1xi32>
    %122 = arith.sitofp %121 : vector<16x1xi32> to vector<16x1xf32>
    %123 = vector.broadcast %122 : vector<16x1xf32> to vector<16x128xf32>
    %124 = arith.mulf %118, %123 : vector<16x128xf32>
    %125 = arith.truncf %124 : vector<16x128xf32> to vector<16x128xbf16>
    %c16_81 = arith.constant 16 : index
    %c0_82 = arith.constant 0 : index
    %126 = vector.load %arg37[%c16_81, %c0_82] : memref<48x384xbf16, #tpu.memory_space<vmem>>, vector<16x128xbf16>
    tpu.vector_store %arg37[%c16_81, %c0_82], %125 {strides = array<i32>} : memref<48x384xbf16, #tpu.memory_space<vmem>>, vector<16x128xbf16>,
    %c14_83 = arith.constant 14 : index
    %c0_84 = arith.constant 0 : index
    %127 = vector.load %arg37[%c14_83, %c0_84] : memref<48x384xbf16, #tpu.memory_space<vmem>>, vector<16x128xbf16>
    %c0_85 = arith.constant 0 : index
    %c0_86 = arith.constant 0 : index
    %c0_87 = arith.constant 0 : index
    %128 = vector.load %arg16[%c0_85, %c0_86, %c0_87] : memref<5x128x256xbf16, #tpu.memory_space<vmem>>, vector<1x128x256xbf16>
    %129 = vector.shape_cast %128 : vector<1x128x256xbf16> to vector<128x256xbf16>
    %cst_88 = arith.constant dense<0.000000e+00> : vector<16x256xf32>
    %130 = tpu.matmul %127, %129, %cst_88 {dimension_numbers = #tpu.dot_dimension_numbers<[1], [0], [0], [1], [0, 0, 1, 1], [], []>} : vector<16x128xbf16>, vector<128x256xbf16>, vector<16x256xf32> -> vector<16x256xf32>
    %c15_89 = arith.constant 15 : index
    %c0_90 = arith.constant 0 : index
    %131 = vector.load %arg37[%c15_89, %c0_90] : memref<48x384xbf16, #tpu.memory_space<vmem>>, vector<16x128xbf16>
    %c1_91 = arith.constant 1 : index
    %c0_92 = arith.constant 0 : index
    %c0_93 = arith.constant 0 : index
    %132 = vector.load %arg16[%c1_91, %c0_92, %c0_93] : memref<5x128x256xbf16, #tpu.memory_space<vmem>>, vector<1x128x256xbf16>
    %133 = vector.shape_cast %132 : vector<1x128x256xbf16> to vector<128x256xbf16>
    %cst_94 = arith.constant dense<0.000000e+00> : vector<16x256xf32>
    %134 = tpu.matmul %131, %133, %cst_94 {dimension_numbers = #tpu.dot_dimension_numbers<[1], [0], [0], [1], [0, 0, 1, 1], [], []>} : vector<16x128xbf16>, vector<128x256xbf16>, vector<16x256xf32> -> vector<16x256xf32>
    %135 = arith.addf %130, %134 : vector<16x256xf32>
    %c16_95 = arith.constant 16 : index
    %c0_96 = arith.constant 0 : index
    %136 = vector.load %arg37[%c16_95, %c0_96] : memref<48x384xbf16, #tpu.memory_space<vmem>>, vector<16x128xbf16>
    %c2_97 = arith.constant 2 : index
    %c0_98 = arith.constant 0 : index
    %c0_99 = arith.constant 0 : index
    %137 = vector.load %arg16[%c2_97, %c0_98, %c0_99] : memref<5x128x256xbf16, #tpu.memory_space<vmem>>, vector<1x128x256xbf16>
    %138 = vector.shape_cast %137 : vector<1x128x256xbf16> to vector<128x256xbf16>
    %cst_100 = arith.constant dense<0.000000e+00> : vector<16x256xf32>
    %139 = tpu.matmul %136, %138, %cst_100 {dimension_numbers = #tpu.dot_dimension_numbers<[1], [0], [0], [1], [0, 0, 1, 1], [], []>} : vector<16x128xbf16>, vector<128x256xbf16>, vector<16x256xf32> -> vector<16x256xf32>
    %140 = arith.addf %135, %139 : vector<16x256xf32>
    %c17_101 = arith.constant 17 : index
    %c0_102 = arith.constant 0 : index
    %141 = vector.load %arg37[%c17_101, %c0_102] : memref<48x384xbf16, #tpu.memory_space<vmem>>, vector<16x128xbf16>
    %c3_103 = arith.constant 3 : index
    %c0_104 = arith.constant 0 : index
    %c0_105 = arith.constant 0 : index
    %142 = vector.load %arg16[%c3_103, %c0_104, %c0_105] : memref<5x128x256xbf16, #tpu.memory_space<vmem>>, vector<1x128x256xbf16>
    %143 = vector.shape_cast %142 : vector<1x128x256xbf16> to vector<128x256xbf16>
    %cst_106 = arith.constant dense<0.000000e+00> : vector<16x256xf32>
    %144 = tpu.matmul %141, %143, %cst_106 {dimension_numbers = #tpu.dot_dimension_numbers<[1], [0], [0], [1], [0, 0, 1, 1], [], []>} : vector<16x128xbf16>, vector<128x256xbf16>, vector<16x256xf32> -> vector<16x256xf32>
    %145 = arith.addf %140, %144 : vector<16x256xf32>
    %c18_107 = arith.constant 18 : index
    %c0_108 = arith.constant 0 : index
    %146 = vector.load %arg37[%c18_107, %c0_108] : memref<48x384xbf16, #tpu.memory_space<vmem>>, vector<16x128xbf16>
    %c4_109 = arith.constant 4 : index
    %c0_110 = arith.constant 0 : index
    %c0_111 = arith.constant 0 : index
    %147 = vector.load %arg16[%c4_109, %c0_110, %c0_111] : memref<5x128x256xbf16, #tpu.memory_space<vmem>>, vector<1x128x256xbf16>
    %148 = vector.shape_cast %147 : vector<1x128x256xbf16> to vector<128x256xbf16>
    %cst_112 = arith.constant dense<0.000000e+00> : vector<16x256xf32>
    %149 = tpu.matmul %146, %148, %cst_112 {dimension_numbers = #tpu.dot_dimension_numbers<[1], [0], [0], [1], [0, 0, 1, 1], [], []>} : vector<16x128xbf16>, vector<128x256xbf16>, vector<16x256xf32> -> vector<16x256xf32>
    %150 = arith.addf %145, %149 : vector<16x256xf32>
    %c0_113 = arith.constant 0 : index
    %c0_114 = arith.constant 0 : index
    %151 = vector.load %arg17[%c0_113, %c0_114] : memref<1x256xf32, #tpu.memory_space<vmem>>, vector<1x256xf32>
    %152 = vector.broadcast %151 : vector<1x256xf32> to vector<16x256xf32>
    %153 = arith.mulf %150, %152 : vector<16x256xf32>
    %c0_115 = arith.constant 0 : index
    %c0_116 = arith.constant 0 : index
    %154 = vector.load %arg18[%c0_115, %c0_116] : memref<1x256xf32, #tpu.memory_space<vmem>>, vector<1x256xf32>
    %155 = vector.broadcast %154 : vector<1x256xf32> to vector<16x256xf32>
    %156 = arith.addf %153, %155 : vector<16x256xf32>
    %cst_117 = arith.constant 0.000000e+00 : f32
    %157 = vector.broadcast %cst_117 : f32 to vector<16x256xf32>
    %158 = arith.maximumf %156, %157 : vector<16x256xf32>
    %c4_i32_118 = arith.constant 4 : i32
    %159 = vector.broadcast %c4_i32_118 : i32 to vector<16x1xi32>
    %160 = arith.cmpi slt, %18, %159 : vector<16x1xi32>
    %161 = arith.extui %160 : vector<16x1xi1> to vector<16x1xi32>
    %162 = arith.sitofp %161 : vector<16x1xi32> to vector<16x1xf32>
    %163 = vector.broadcast %162 : vector<16x1xf32> to vector<16x256xf32>
    %164 = arith.mulf %158, %163 : vector<16x256xf32>
    %165 = arith.truncf %164 : vector<16x256xf32> to vector<16x256xbf16>
    %c16_119 = arith.constant 16 : index
    %c0_120 = arith.constant 0 : index
    %166 = vector.load %arg37[%c16_119, %c0_120] : memref<48x384xbf16, #tpu.memory_space<vmem>>, vector<16x256xbf16>
    tpu.vector_store %arg37[%c16_119, %c0_120], %165 {strides = array<i32>} : memref<48x384xbf16, #tpu.memory_space<vmem>>, vector<16x256xbf16>,
    %c15_121 = arith.constant 15 : index
    %c0_122 = arith.constant 0 : index
    %167 = vector.load %arg37[%c15_121, %c0_122] : memref<48x384xbf16, #tpu.memory_space<vmem>>, vector<16x256xbf16>
    %c0_123 = arith.constant 0 : index
    %c0_124 = arith.constant 0 : index
    %c0_125 = arith.constant 0 : index
    %168 = vector.load %arg19[%c0_123, %c0_124, %c0_125] : memref<3x256x128xbf16, #tpu.memory_space<vmem>>, vector<1x256x128xbf16>
    %169 = vector.shape_cast %168 : vector<1x256x128xbf16> to vector<256x128xbf16>
    %cst_126 = arith.constant dense<0.000000e+00> : vector<16x128xf32>
    %170 = tpu.matmul %167, %169, %cst_126 {dimension_numbers = #tpu.dot_dimension_numbers<[1], [0], [0], [1], [0, 0, 1, 1], [], []>} : vector<16x256xbf16>, vector<256x128xbf16>, vector<16x128xf32> -> vector<16x128xf32>
    %c16_127 = arith.constant 16 : index
    %c0_128 = arith.constant 0 : index
    %171 = vector.load %arg37[%c16_127, %c0_128] : memref<48x384xbf16, #tpu.memory_space<vmem>>, vector<16x256xbf16>
    %c1_129 = arith.constant 1 : index
    %c0_130 = arith.constant 0 : index
    %c0_131 = arith.constant 0 : index
    %172 = vector.load %arg19[%c1_129, %c0_130, %c0_131] : memref<3x256x128xbf16, #tpu.memory_space<vmem>>, vector<1x256x128xbf16>
    %173 = vector.shape_cast %172 : vector<1x256x128xbf16> to vector<256x128xbf16>
    %cst_132 = arith.constant dense<0.000000e+00> : vector<16x128xf32>
    %174 = tpu.matmul %171, %173, %cst_132 {dimension_numbers = #tpu.dot_dimension_numbers<[1], [0], [0], [1], [0, 0, 1, 1], [], []>} : vector<16x256xbf16>, vector<256x128xbf16>, vector<16x128xf32> -> vector<16x128xf32>
    %175 = arith.addf %170, %174 : vector<16x128xf32>
    %c17_133 = arith.constant 17 : index
    %c0_134 = arith.constant 0 : index
    %176 = vector.load %arg37[%c17_133, %c0_134] : memref<48x384xbf16, #tpu.memory_space<vmem>>, vector<16x256xbf16>
    %c2_135 = arith.constant 2 : index
    %c0_136 = arith.constant 0 : index
    %c0_137 = arith.constant 0 : index
    %177 = vector.load %arg19[%c2_135, %c0_136, %c0_137] : memref<3x256x128xbf16, #tpu.memory_space<vmem>>, vector<1x256x128xbf16>
    %178 = vector.shape_cast %177 : vector<1x256x128xbf16> to vector<256x128xbf16>
    %cst_138 = arith.constant dense<0.000000e+00> : vector<16x128xf32>
    %179 = tpu.matmul %176, %178, %cst_138 {dimension_numbers = #tpu.dot_dimension_numbers<[1], [0], [0], [1], [0, 0, 1, 1], [], []>} : vector<16x256xbf16>, vector<256x128xbf16>, vector<16x128xf32> -> vector<16x128xf32>
    %180 = arith.addf %175, %179 : vector<16x128xf32>
    %c0_139 = arith.constant 0 : index
    %c0_140 = arith.constant 0 : index
    %181 = vector.load %arg20[%c0_139, %c0_140] : memref<1x128xf32, #tpu.memory_space<vmem>>, vector<1x128xf32>
    %182 = vector.broadcast %181 : vector<1x128xf32> to vector<16x128xf32>
    %183 = arith.mulf %180, %182 : vector<16x128xf32>
    %c0_141 = arith.constant 0 : index
    %c0_142 = arith.constant 0 : index
    %184 = vector.load %arg21[%c0_141, %c0_142] : memref<1x128xf32, #tpu.memory_space<vmem>>, vector<1x128xf32>
    %185 = vector.broadcast %184 : vector<1x128xf32> to vector<16x128xf32>
    %186 = arith.addf %183, %185 : vector<16x128xf32>
    %cst_143 = arith.constant 0.000000e+00 : f32
    %187 = vector.broadcast %cst_143 : f32 to vector<16x128xf32>
    %188 = arith.maximumf %186, %187 : vector<16x128xf32>
    %c4_i32_144 = arith.constant 4 : i32
    %189 = vector.broadcast %c4_i32_144 : i32 to vector<16x1xi32>
    %190 = arith.cmpi slt, %18, %189 : vector<16x1xi32>
    %191 = arith.extui %190 : vector<16x1xi1> to vector<16x1xi32>
    %192 = arith.sitofp %191 : vector<16x1xi32> to vector<16x1xf32>
    %193 = vector.broadcast %192 : vector<16x1xf32> to vector<16x128xf32>
    %194 = arith.mulf %188, %193 : vector<16x128xf32>
    %c0_145 = arith.constant 0 : index
    %c0_146 = arith.constant 0 : index
    %c0_147 = arith.constant 0 : index
    %195 = vector.load %arg3[%c0_145, %c0_146, %c0_147] : memref<1x16x128xbf16, #tpu.memory_space<vmem>>, vector<1x16x128xbf16>
    %196 = vector.shape_cast %195 : vector<1x16x128xbf16> to vector<16x128xbf16>
    %c0_148 = arith.constant 0 : index
    %c0_149 = arith.constant 0 : index
    %197 = vector.load %arg22[%c0_148, %c0_149] : memref<128x128xbf16, #tpu.memory_space<vmem>>, vector<128x128xbf16>
    %cst_150 = arith.constant dense<0.000000e+00> : vector<16x128xf32>
    %198 = tpu.matmul %196, %197, %cst_150 {dimension_numbers = #tpu.dot_dimension_numbers<[1], [0], [0], [1], [0, 0, 1, 1], [], []>} : vector<16x128xbf16>, vector<128x128xbf16>, vector<16x128xf32> -> vector<16x128xf32>
    %c0_151 = arith.constant 0 : index
    %c0_152 = arith.constant 0 : index
    %199 = vector.load %arg23[%c0_151, %c0_152] : memref<1x128xf32, #tpu.memory_space<vmem>>, vector<1x128xf32>
    %200 = vector.broadcast %199 : vector<1x128xf32> to vector<16x128xf32>
    %201 = arith.mulf %198, %200 : vector<16x128xf32>
    %c0_153 = arith.constant 0 : index
    %c0_154 = arith.constant 0 : index
    %202 = vector.load %arg24[%c0_153, %c0_154] : memref<1x128xf32, #tpu.memory_space<vmem>>, vector<1x128xf32>
    %203 = vector.broadcast %202 : vector<1x128xf32> to vector<16x128xf32>
    %204 = arith.addf %201, %203 : vector<16x128xf32>
    %cst_155 = arith.constant 0.000000e+00 : f32
    %205 = vector.broadcast %cst_155 : f32 to vector<16x128xf32>
    %206 = arith.maximumf %204, %205 : vector<16x128xf32>
    %c2_i32 = arith.constant 2 : i32
    %207 = vector.broadcast %c2_i32 : i32 to vector<16x1xi32>
    %208 = arith.cmpi slt, %18, %207 : vector<16x1xi32>
    %209 = arith.extui %208 : vector<16x1xi1> to vector<16x1xi32>
    %210 = arith.sitofp %209 : vector<16x1xi32> to vector<16x1xf32>
    %211 = vector.broadcast %210 : vector<16x1xf32> to vector<16x128xf32>
    %212 = arith.mulf %206, %211 : vector<16x128xf32>
    %213 = tpu.concatenate %106, %194, %212 in 1 : vector<16x128xf32>, vector<16x128xf32>, vector<16x128xf32> -> vector<16x384xf32>
    %c2_i32_156 = arith.constant 2 : i32
    %214 = vector.broadcast %c2_i32_156 : i32 to vector<16x1xi32>
    %215 = arith.cmpi slt, %18, %214 : vector<16x1xi32>
    %216 = arith.extui %215 : vector<16x1xi1> to vector<16x1xi32>
    %217 = arith.sitofp %216 : vector<16x1xi32> to vector<16x1xf32>
    %218 = vector.broadcast %217 : vector<16x1xf32> to vector<16x384xf32>
    %219 = arith.mulf %213, %218 : vector<16x384xf32>
    %220 = arith.truncf %219 : vector<16x384xf32> to vector<16x384xbf16>
    %c16_157 = arith.constant 16 : index
    %c0_158 = arith.constant 0 : index
    %221 = vector.load %arg37[%c16_157, %c0_158] : memref<48x384xbf16, #tpu.memory_space<vmem>>, vector<16x384xbf16>
    tpu.vector_store %arg37[%c16_157, %c0_158], %220 {strides = array<i32>} : memref<48x384xbf16, #tpu.memory_space<vmem>>, vector<16x384xbf16>,
    %c13 = arith.constant 13 : index
    %c0_159 = arith.constant 0 : index
    %222 = vector.load %arg37[%c13, %c0_159] : memref<48x384xbf16, #tpu.memory_space<vmem>>, vector<16x384xbf16>
    %c0_160 = arith.constant 0 : index
    %c0_161 = arith.constant 0 : index
    %c0_162 = arith.constant 0 : index
    %223 = vector.load %arg25[%c0_160, %c0_161, %c0_162] : memref<7x384x128xbf16, #tpu.memory_space<vmem>>, vector<1x384x128xbf16>
    %224 = vector.shape_cast %223 : vector<1x384x128xbf16> to vector<384x128xbf16>
    %cst_163 = arith.constant dense<0.000000e+00> : vector<16x128xf32>
    %225 = tpu.matmul %222, %224, %cst_163 {dimension_numbers = #tpu.dot_dimension_numbers<[1], [0], [0], [1], [0, 0, 1, 1], [], []>} : vector<16x384xbf16>, vector<384x128xbf16>, vector<16x128xf32> -> vector<16x128xf32>
    %c14_164 = arith.constant 14 : index
    %c0_165 = arith.constant 0 : index
    %226 = vector.load %arg37[%c14_164, %c0_165] : memref<48x384xbf16, #tpu.memory_space<vmem>>, vector<16x384xbf16>
    %c1_166 = arith.constant 1 : index
    %c0_167 = arith.constant 0 : index
    %c0_168 = arith.constant 0 : index
    %227 = vector.load %arg25[%c1_166, %c0_167, %c0_168] : memref<7x384x128xbf16, #tpu.memory_space<vmem>>, vector<1x384x128xbf16>
    %228 = vector.shape_cast %227 : vector<1x384x128xbf16> to vector<384x128xbf16>
    %cst_169 = arith.constant dense<0.000000e+00> : vector<16x128xf32>
    %229 = tpu.matmul %226, %228, %cst_169 {dimension_numbers = #tpu.dot_dimension_numbers<[1], [0], [0], [1], [0, 0, 1, 1], [], []>} : vector<16x384xbf16>, vector<384x128xbf16>, vector<16x128xf32> -> vector<16x128xf32>
    %230 = arith.addf %225, %229 : vector<16x128xf32>
    %c15_170 = arith.constant 15 : index
    %c0_171 = arith.constant 0 : index
    %231 = vector.load %arg37[%c15_170, %c0_171] : memref<48x384xbf16, #tpu.memory_space<vmem>>, vector<16x384xbf16>
    %c2_172 = arith.constant 2 : index
    %c0_173 = arith.constant 0 : index
    %c0_174 = arith.constant 0 : index
    %232 = vector.load %arg25[%c2_172, %c0_173, %c0_174] : memref<7x384x128xbf16, #tpu.memory_space<vmem>>, vector<1x384x128xbf16>
    %233 = vector.shape_cast %232 : vector<1x384x128xbf16> to vector<384x128xbf16>
    %cst_175 = arith.constant dense<0.000000e+00> : vector<16x128xf32>
    %234 = tpu.matmul %231, %233, %cst_175 {dimension_numbers = #tpu.dot_dimension_numbers<[1], [0], [0], [1], [0, 0, 1, 1], [], []>} : vector<16x384xbf16>, vector<384x128xbf16>, vector<16x128xf32> -> vector<16x128xf32>
    %235 = arith.addf %230, %234 : vector<16x128xf32>
    %c16_176 = arith.constant 16 : index
    %c0_177 = arith.constant 0 : index
    %236 = vector.load %arg37[%c16_176, %c0_177] : memref<48x384xbf16, #tpu.memory_space<vmem>>, vector<16x384xbf16>
    %c3_178 = arith.constant 3 : index
    %c0_179 = arith.constant 0 : index
    %c0_180 = arith.constant 0 : index
    %237 = vector.load %arg25[%c3_178, %c0_179, %c0_180] : memref<7x384x128xbf16, #tpu.memory_space<vmem>>, vector<1x384x128xbf16>
    %238 = vector.shape_cast %237 : vector<1x384x128xbf16> to vector<384x128xbf16>
    %cst_181 = arith.constant dense<0.000000e+00> : vector<16x128xf32>
    %239 = tpu.matmul %236, %238, %cst_181 {dimension_numbers = #tpu.dot_dimension_numbers<[1], [0], [0], [1], [0, 0, 1, 1], [], []>} : vector<16x384xbf16>, vector<384x128xbf16>, vector<16x128xf32> -> vector<16x128xf32>
    %240 = arith.addf %235, %239 : vector<16x128xf32>
    %c17_182 = arith.constant 17 : index
    %c0_183 = arith.constant 0 : index
    %241 = vector.load %arg37[%c17_182, %c0_183] : memref<48x384xbf16, #tpu.memory_space<vmem>>, vector<16x384xbf16>
    %c4_184 = arith.constant 4 : index
    %c0_185 = arith.constant 0 : index
    %c0_186 = arith.constant 0 : index
    %242 = vector.load %arg25[%c4_184, %c0_185, %c0_186] : memref<7x384x128xbf16, #tpu.memory_space<vmem>>, vector<1x384x128xbf16>
    %243 = vector.shape_cast %242 : vector<1x384x128xbf16> to vector<384x128xbf16>
    %cst_187 = arith.constant dense<0.000000e+00> : vector<16x128xf32>
    %244 = tpu.matmul %241, %243, %cst_187 {dimension_numbers = #tpu.dot_dimension_numbers<[1], [0], [0], [1], [0, 0, 1, 1], [], []>} : vector<16x384xbf16>, vector<384x128xbf16>, vector<16x128xf32> -> vector<16x128xf32>
    %245 = arith.addf %240, %244 : vector<16x128xf32>
    %c18_188 = arith.constant 18 : index
    %c0_189 = arith.constant 0 : index
    %246 = vector.load %arg37[%c18_188, %c0_189] : memref<48x384xbf16, #tpu.memory_space<vmem>>, vector<16x384xbf16>
    %c5 = arith.constant 5 : index
    %c0_190 = arith.constant 0 : index
    %c0_191 = arith.constant 0 : index
    %247 = vector.load %arg25[%c5, %c0_190, %c0_191] : memref<7x384x128xbf16, #tpu.memory_space<vmem>>, vector<1x384x128xbf16>
    %248 = vector.shape_cast %247 : vector<1x384x128xbf16> to vector<384x128xbf16>
    %cst_192 = arith.constant dense<0.000000e+00> : vector<16x128xf32>
    %249 = tpu.matmul %246, %248, %cst_192 {dimension_numbers = #tpu.dot_dimension_numbers<[1], [0], [0], [1], [0, 0, 1, 1], [], []>} : vector<16x384xbf16>, vector<384x128xbf16>, vector<16x128xf32> -> vector<16x128xf32>
    %250 = arith.addf %245, %249 : vector<16x128xf32>
    %c19 = arith.constant 19 : index
    %c0_193 = arith.constant 0 : index
    %251 = vector.load %arg37[%c19, %c0_193] : memref<48x384xbf16, #tpu.memory_space<vmem>>, vector<16x384xbf16>
    %c6 = arith.constant 6 : index
    %c0_194 = arith.constant 0 : index
    %c0_195 = arith.constant 0 : index
    %252 = vector.load %arg25[%c6, %c0_194, %c0_195] : memref<7x384x128xbf16, #tpu.memory_space<vmem>>, vector<1x384x128xbf16>
    %253 = vector.shape_cast %252 : vector<1x384x128xbf16> to vector<384x128xbf16>
    %cst_196 = arith.constant dense<0.000000e+00> : vector<16x128xf32>
    %254 = tpu.matmul %251, %253, %cst_196 {dimension_numbers = #tpu.dot_dimension_numbers<[1], [0], [0], [1], [0, 0, 1, 1], [], []>} : vector<16x384xbf16>, vector<384x128xbf16>, vector<16x128xf32> -> vector<16x128xf32>
    %255 = arith.addf %250, %254 : vector<16x128xf32>
    %c0_197 = arith.constant 0 : index
    %c0_198 = arith.constant 0 : index
    %256 = vector.load %arg26[%c0_197, %c0_198] : memref<1x128xf32, #tpu.memory_space<vmem>>, vector<1x128xf32>
    %257 = vector.broadcast %256 : vector<1x128xf32> to vector<16x128xf32>
    %258 = arith.mulf %255, %257 : vector<16x128xf32>
    %c0_199 = arith.constant 0 : index
    %c0_200 = arith.constant 0 : index
    %259 = vector.load %arg27[%c0_199, %c0_200] : memref<1x128xf32, #tpu.memory_space<vmem>>, vector<1x128xf32>
    %260 = vector.broadcast %259 : vector<1x128xf32> to vector<16x128xf32>
    %261 = arith.addf %258, %260 : vector<16x128xf32>
    %cst_201 = arith.constant 0.000000e+00 : f32
    %262 = vector.broadcast %cst_201 : f32 to vector<16x128xf32>
    %263 = arith.maximumf %261, %262 : vector<16x128xf32>
    %c2_i32_202 = arith.constant 2 : i32
    %264 = vector.broadcast %c2_i32_202 : i32 to vector<16x1xi32>
    %265 = arith.cmpi slt, %18, %264 : vector<16x1xi32>
    %266 = arith.extui %265 : vector<16x1xi1> to vector<16x1xi32>
    %267 = arith.sitofp %266 : vector<16x1xi32> to vector<16x1xf32>
    %268 = vector.broadcast %267 : vector<16x1xf32> to vector<16x128xf32>
    %269 = arith.mulf %263, %268 : vector<16x128xf32>
    %270 = arith.truncf %269 : vector<16x128xf32> to vector<16x128xbf16>
    %c16_203 = arith.constant 16 : index
    %c0_204 = arith.constant 0 : index
    %271 = vector.load %arg37[%c16_203, %c0_204] : memref<48x384xbf16, #tpu.memory_space<vmem>>, vector<16x128xbf16>
    tpu.vector_store %arg37[%c16_203, %c0_204], %270 {strides = array<i32>} : memref<48x384xbf16, #tpu.memory_space<vmem>>, vector<16x128xbf16>,
    %c14_205 = arith.constant 14 : index
    %c0_206 = arith.constant 0 : index
    %272 = vector.load %arg37[%c14_205, %c0_206] : memref<48x384xbf16, #tpu.memory_space<vmem>>, vector<16x128xbf16>
    %c0_207 = arith.constant 0 : index
    %c0_208 = arith.constant 0 : index
    %c0_209 = arith.constant 0 : index
    %273 = vector.load %arg28[%c0_207, %c0_208, %c0_209] : memref<5x128x128xbf16, #tpu.memory_space<vmem>>, vector<1x128x128xbf16>
    %274 = vector.shape_cast %273 : vector<1x128x128xbf16> to vector<128x128xbf16>
    %cst_210 = arith.constant dense<0.000000e+00> : vector<16x128xf32>
    %275 = tpu.matmul %272, %274, %cst_210 {dimension_numbers = #tpu.dot_dimension_numbers<[1], [0], [0], [1], [0, 0, 1, 1], [], []>} : vector<16x128xbf16>, vector<128x128xbf16>, vector<16x128xf32> -> vector<16x128xf32>
    %c15_211 = arith.constant 15 : index
    %c0_212 = arith.constant 0 : index
    %276 = vector.load %arg37[%c15_211, %c0_212] : memref<48x384xbf16, #tpu.memory_space<vmem>>, vector<16x128xbf16>
    %c1_213 = arith.constant 1 : index
    %c0_214 = arith.constant 0 : index
    %c0_215 = arith.constant 0 : index
    %277 = vector.load %arg28[%c1_213, %c0_214, %c0_215] : memref<5x128x128xbf16, #tpu.memory_space<vmem>>, vector<1x128x128xbf16>
    %278 = vector.shape_cast %277 : vector<1x128x128xbf16> to vector<128x128xbf16>
    %cst_216 = arith.constant dense<0.000000e+00> : vector<16x128xf32>
    %279 = tpu.matmul %276, %278, %cst_216 {dimension_numbers = #tpu.dot_dimension_numbers<[1], [0], [0], [1], [0, 0, 1, 1], [], []>} : vector<16x128xbf16>, vector<128x128xbf16>, vector<16x128xf32> -> vector<16x128xf32>
    %280 = arith.addf %275, %279 : vector<16x128xf32>
    %c16_217 = arith.constant 16 : index
    %c0_218 = arith.constant 0 : index
    %281 = vector.load %arg37[%c16_217, %c0_218] : memref<48x384xbf16, #tpu.memory_space<vmem>>, vector<16x128xbf16>
    %c2_219 = arith.constant 2 : index
    %c0_220 = arith.constant 0 : index
    %c0_221 = arith.constant 0 : index
    %282 = vector.load %arg28[%c2_219, %c0_220, %c0_221] : memref<5x128x128xbf16, #tpu.memory_space<vmem>>, vector<1x128x128xbf16>
    %283 = vector.shape_cast %282 : vector<1x128x128xbf16> to vector<128x128xbf16>
    %cst_222 = arith.constant dense<0.000000e+00> : vector<16x128xf32>
    %284 = tpu.matmul %281, %283, %cst_222 {dimension_numbers = #tpu.dot_dimension_numbers<[1], [0], [0], [1], [0, 0, 1, 1], [], []>} : vector<16x128xbf16>, vector<128x128xbf16>, vector<16x128xf32> -> vector<16x128xf32>
    %285 = arith.addf %280, %284 : vector<16x128xf32>
    %c17_223 = arith.constant 17 : index
    %c0_224 = arith.constant 0 : index
    %286 = vector.load %arg37[%c17_223, %c0_224] : memref<48x384xbf16, #tpu.memory_space<vmem>>, vector<16x128xbf16>
    %c3_225 = arith.constant 3 : index
    %c0_226 = arith.constant 0 : index
    %c0_227 = arith.constant 0 : index
    %287 = vector.load %arg28[%c3_225, %c0_226, %c0_227] : memref<5x128x128xbf16, #tpu.memory_space<vmem>>, vector<1x128x128xbf16>
    %288 = vector.shape_cast %287 : vector<1x128x128xbf16> to vector<128x128xbf16>
    %cst_228 = arith.constant dense<0.000000e+00> : vector<16x128xf32>
    %289 = tpu.matmul %286, %288, %cst_228 {dimension_numbers = #tpu.dot_dimension_numbers<[1], [0], [0], [1], [0, 0, 1, 1], [], []>} : vector<16x128xbf16>, vector<128x128xbf16>, vector<16x128xf32> -> vector<16x128xf32>
    %290 = arith.addf %285, %289 : vector<16x128xf32>
    %c18_229 = arith.constant 18 : index
    %c0_230 = arith.constant 0 : index
    %291 = vector.load %arg37[%c18_229, %c0_230] : memref<48x384xbf16, #tpu.memory_space<vmem>>, vector<16x128xbf16>
    %c4_231 = arith.constant 4 : index
    %c0_232 = arith.constant 0 : index
    %c0_233 = arith.constant 0 : index
    %292 = vector.load %arg28[%c4_231, %c0_232, %c0_233] : memref<5x128x128xbf16, #tpu.memory_space<vmem>>, vector<1x128x128xbf16>
    %293 = vector.shape_cast %292 : vector<1x128x128xbf16> to vector<128x128xbf16>
    %cst_234 = arith.constant dense<0.000000e+00> : vector<16x128xf32>
    %294 = tpu.matmul %291, %293, %cst_234 {dimension_numbers = #tpu.dot_dimension_numbers<[1], [0], [0], [1], [0, 0, 1, 1], [], []>} : vector<16x128xbf16>, vector<128x128xbf16>, vector<16x128xf32> -> vector<16x128xf32>
    %295 = arith.addf %290, %294 : vector<16x128xf32>
    %c0_235 = arith.constant 0 : index
    %c0_236 = arith.constant 0 : index
    %296 = vector.load %arg29[%c0_235, %c0_236] : memref<1x128xf32, #tpu.memory_space<vmem>>, vector<1x128xf32>
    %297 = vector.broadcast %296 : vector<1x128xf32> to vector<16x128xf32>
    %298 = arith.mulf %295, %297 : vector<16x128xf32>
    %c0_237 = arith.constant 0 : index
    %c0_238 = arith.constant 0 : index
    %299 = vector.load %arg30[%c0_237, %c0_238] : memref<1x128xf32, #tpu.memory_space<vmem>>, vector<1x128xf32>
    %300 = vector.broadcast %299 : vector<1x128xf32> to vector<16x128xf32>
    %301 = arith.addf %298, %300 : vector<16x128xf32>
    %cst_239 = arith.constant 0.000000e+00 : f32
    %302 = vector.broadcast %cst_239 : f32 to vector<16x128xf32>
    %303 = arith.maximumf %301, %302 : vector<16x128xf32>
    %c2_i32_240 = arith.constant 2 : i32
    %304 = vector.broadcast %c2_i32_240 : i32 to vector<16x1xi32>
    %305 = arith.cmpi slt, %18, %304 : vector<16x1xi32>
    %306 = arith.extui %305 : vector<16x1xi1> to vector<16x1xi32>
    %307 = arith.sitofp %306 : vector<16x1xi32> to vector<16x1xf32>
    %308 = vector.broadcast %307 : vector<16x1xf32> to vector<16x128xf32>
    %309 = arith.mulf %303, %308 : vector<16x128xf32>
    %310 = arith.truncf %309 : vector<16x128xf32> to vector<16x128xbf16>
    %c16_241 = arith.constant 16 : index
    %c0_242 = arith.constant 0 : index
    %311 = vector.load %arg37[%c16_241, %c0_242] : memref<48x384xbf16, #tpu.memory_space<vmem>>, vector<16x128xbf16>
    tpu.vector_store %arg37[%c16_241, %c0_242], %310 {strides = array<i32>} : memref<48x384xbf16, #tpu.memory_space<vmem>>, vector<16x128xbf16>,
    %c15_243 = arith.constant 15 : index
    %c0_244 = arith.constant 0 : index
    %312 = vector.load %arg37[%c15_243, %c0_244] : memref<48x384xbf16, #tpu.memory_space<vmem>>, vector<16x128xbf16>
    %c0_245 = arith.constant 0 : index
    %c0_246 = arith.constant 0 : index
    %c0_247 = arith.constant 0 : index
    %313 = vector.load %arg31[%c0_245, %c0_246, %c0_247] : memref<3x128x128xbf16, #tpu.memory_space<vmem>>, vector<1x128x128xbf16>
    %314 = vector.shape_cast %313 : vector<1x128x128xbf16> to vector<128x128xbf16>
    %cst_248 = arith.constant dense<0.000000e+00> : vector<16x128xf32>
    %315 = tpu.matmul %312, %314, %cst_248 {dimension_numbers = #tpu.dot_dimension_numbers<[1], [0], [0], [1], [0, 0, 1, 1], [], []>} : vector<16x128xbf16>, vector<128x128xbf16>, vector<16x128xf32> -> vector<16x128xf32>
    %c16_249 = arith.constant 16 : index
    %c0_250 = arith.constant 0 : index
    %316 = vector.load %arg37[%c16_249, %c0_250] : memref<48x384xbf16, #tpu.memory_space<vmem>>, vector<16x128xbf16>
    %c1_251 = arith.constant 1 : index
    %c0_252 = arith.constant 0 : index
    %c0_253 = arith.constant 0 : index
    %317 = vector.load %arg31[%c1_251, %c0_252, %c0_253] : memref<3x128x128xbf16, #tpu.memory_space<vmem>>, vector<1x128x128xbf16>
    %318 = vector.shape_cast %317 : vector<1x128x128xbf16> to vector<128x128xbf16>
    %cst_254 = arith.constant dense<0.000000e+00> : vector<16x128xf32>
    %319 = tpu.matmul %316, %318, %cst_254 {dimension_numbers = #tpu.dot_dimension_numbers<[1], [0], [0], [1], [0, 0, 1, 1], [], []>} : vector<16x128xbf16>, vector<128x128xbf16>, vector<16x128xf32> -> vector<16x128xf32>
    %320 = arith.addf %315, %319 : vector<16x128xf32>
    %c17_255 = arith.constant 17 : index
    %c0_256 = arith.constant 0 : index
    %321 = vector.load %arg37[%c17_255, %c0_256] : memref<48x384xbf16, #tpu.memory_space<vmem>>, vector<16x128xbf16>
    %c2_257 = arith.constant 2 : index
    %c0_258 = arith.constant 0 : index
    %c0_259 = arith.constant 0 : index
    %322 = vector.load %arg31[%c2_257, %c0_258, %c0_259] : memref<3x128x128xbf16, #tpu.memory_space<vmem>>, vector<1x128x128xbf16>
    %323 = vector.shape_cast %322 : vector<1x128x128xbf16> to vector<128x128xbf16>
    %cst_260 = arith.constant dense<0.000000e+00> : vector<16x128xf32>
    %324 = tpu.matmul %321, %323, %cst_260 {dimension_numbers = #tpu.dot_dimension_numbers<[1], [0], [0], [1], [0, 0, 1, 1], [], []>} : vector<16x128xbf16>, vector<128x128xbf16>, vector<16x128xf32> -> vector<16x128xf32>
    %325 = arith.addf %320, %324 : vector<16x128xf32>
    %c0_261 = arith.constant 0 : index
    %c0_262 = arith.constant 0 : index
    %326 = vector.load %arg32[%c0_261, %c0_262] : memref<1x128xf32, #tpu.memory_space<vmem>>, vector<1x128xf32>
    %327 = vector.broadcast %326 : vector<1x128xf32> to vector<16x128xf32>
    %328 = arith.mulf %325, %327 : vector<16x128xf32>
    %c0_263 = arith.constant 0 : index
    %c0_264 = arith.constant 0 : index
    %329 = vector.load %arg33[%c0_263, %c0_264] : memref<1x128xf32, #tpu.memory_space<vmem>>, vector<1x128xf32>
    %330 = vector.broadcast %329 : vector<1x128xf32> to vector<16x128xf32>
    %331 = arith.addf %328, %330 : vector<16x128xf32>
    %cst_265 = arith.constant 0.000000e+00 : f32
    %332 = vector.broadcast %cst_265 : f32 to vector<16x128xf32>
    %333 = arith.maximumf %331, %332 : vector<16x128xf32>
    %c2_i32_266 = arith.constant 2 : i32
    %334 = vector.broadcast %c2_i32_266 : i32 to vector<16x1xi32>
    %335 = arith.cmpi slt, %18, %334 : vector<16x1xi32>
    %336 = arith.extui %335 : vector<16x1xi1> to vector<16x1xi32>
    %337 = arith.sitofp %336 : vector<16x1xi32> to vector<16x1xf32>
    %338 = vector.broadcast %337 : vector<16x1xf32> to vector<16x128xf32>
    %339 = arith.mulf %333, %338 : vector<16x128xf32>
    %cst_267 = arith.constant dense<0.000000e+00> : vector<128xf32>
    %340 = vector.multi_reduction <add>, %339, %cst_267 [0] : vector<16x128xf32> to vector<128xf32>
    %341 = vector.shape_cast %340 : vector<128xf32> to vector<1x128xf32>
    %cst_268 = arith.constant 5.000000e-01 : f32
    %342 = vector.broadcast %cst_268 : f32 to vector<1x128xf32>
    %343 = arith.mulf %341, %342 : vector<1x128xf32>
    %344 = arith.truncf %343 : vector<1x128xf32> to vector<1x128xbf16>
    %c0_269 = arith.constant 0 : index
    %c0_270 = arith.constant 0 : index
    %345 = vector.load %arg34[%c0_269, %c0_270] : memref<128x128xbf16, #tpu.memory_space<vmem>>, vector<128x128xbf16>
    %cst_271 = arith.constant dense<0.000000e+00> : vector<1x128xf32>
    %346 = tpu.matmul %344, %345, %cst_271 {dimension_numbers = #tpu.dot_dimension_numbers<[1], [0], [0], [1], [0, 0, 1, 1], [], []>} : vector<1x128xbf16>, vector<128x128xbf16>, vector<1x128xf32> -> vector<1x128xf32>
    %c0_272 = arith.constant 0 : index
    %c0_273 = arith.constant 0 : index
    %347 = vector.load %arg35[%c0_272, %c0_273] : memref<1x128xf32, #tpu.memory_space<vmem>>, vector<1x128xf32>
    %348 = arith.addf %346, %347 : vector<1x128xf32>
    %cst_274 = arith.constant 0.000000e+00 : f32
    %349 = vector.broadcast %cst_274 : f32 to vector<7x128xf32>
    %350 = tpu.concatenate %348, %349 in 0 : vector<1x128xf32>, vector<7x128xf32> -> vector<8x128xf32>
    %c0_275 = arith.constant 0 : index
    %c0_276 = arith.constant 0 : index
    %c0_277 = arith.constant 0 : index
    %351 = vector.load %arg36[%c0_275, %c0_276, %c0_277] : memref<1x8x128xf32, #tpu.memory_space<vmem>>, vector<1x8x128xf32>
    %352 = vector.shape_cast %351 : vector<1x8x128xf32> to vector<8x128xf32>
    %353 = vector.shape_cast %350 : vector<8x128xf32> to vector<1x8x128xf32>
    tpu.vector_store %arg36[%c0_275, %c0_276, %c0_277], %353 {strides = array<i32>} : memref<1x8x128xf32, #tpu.memory_space<vmem>>, vector<1x8x128xf32>,
    return
  }
  func.func @transform_0(%arg0: i32) -> (i32, i32, i32) {
    %c0_i32 = arith.constant 0 : i32
    %c0_i32_0 = arith.constant 0 : i32
    %c0_i32_1 = arith.constant 0 : i32
    return %arg0, %c0_i32, %c0_i32_0 : i32, i32, i32
  }
  func.func @transform_1(%arg0: i32) -> (i32, i32, i32) {
    %c0_i32 = arith.constant 0 : i32
    %c0_i32_0 = arith.constant 0 : i32
    %c0_i32_1 = arith.constant 0 : i32
    return %arg0, %c0_i32, %c0_i32_0 : i32, i32, i32
  }
  func.func @transform_2(%arg0: i32) -> (i32, i32, i32) {
    %c0_i32 = arith.constant 0 : i32
    %c0_i32_0 = arith.constant 0 : i32
    %c0_i32_1 = arith.constant 0 : i32
    return %arg0, %c0_i32, %c0_i32_0 : i32, i32, i32
  }
  func.func @transform_3(%arg0: i32) -> (i32, i32) {
    %c0_i32 = arith.constant 0 : i32
    %c0_i32_0 = arith.constant 0 : i32
    %c0_i32_1 = arith.constant 0 : i32
    return %c0_i32, %c0_i32_0 : i32, i32
  }
  func.func @transform_4(%arg0: i32) -> (i32, i32) {
    %c0_i32 = arith.constant 0 : i32
    %c0_i32_0 = arith.constant 0 : i32
    %c0_i32_1 = arith.constant 0 : i32
    return %c0_i32, %c0_i32_0 : i32, i32
  }
  func.func @transform_5(%arg0: i32) -> (i32, i32) {
    %c0_i32 = arith.constant 0 : i32
    %c0_i32_0 = arith.constant 0 : i32
    %c0_i32_1 = arith.constant 0 : i32
    return %c0_i32, %c0_i32_0 : i32, i32
  }
  func.func @transform_6(%arg0: i32) -> (i32, i32, i32) {
    %c0_i32 = arith.constant 0 : i32
    %c0_i32_0 = arith.constant 0 : i32
    %c0_i32_1 = arith.constant 0 : i32
    %c0_i32_2 = arith.constant 0 : i32
    return %c0_i32, %c0_i32_0, %c0_i32_1 : i32, i32, i32
  }
  func.func @transform_7(%arg0: i32) -> (i32, i32) {
    %c0_i32 = arith.constant 0 : i32
    %c0_i32_0 = arith.constant 0 : i32
    %c0_i32_1 = arith.constant 0 : i32
    return %c0_i32, %c0_i32_0 : i32, i32
  }
  func.func @transform_8(%arg0: i32) -> (i32, i32) {
    %c0_i32 = arith.constant 0 : i32
    %c0_i32_0 = arith.constant 0 : i32
    %c0_i32_1 = arith.constant 0 : i32
    return %c0_i32, %c0_i32_0 : i32, i32
  }
  func.func @transform_9(%arg0: i32) -> (i32, i32, i32) {
    %c0_i32 = arith.constant 0 : i32
    %c0_i32_0 = arith.constant 0 : i32
    %c0_i32_1 = arith.constant 0 : i32
    %c0_i32_2 = arith.constant 0 : i32
    return %c0_i32, %c0_i32_0, %c0_i32_1 : i32, i32, i32
  }
  func.func @transform_10(%arg0: i32) -> (i32, i32) {
    %c0_i32 = arith.constant 0 : i32
    %c0_i32_0 = arith.constant 0 : i32
    %c0_i32_1 = arith.constant 0 : i32
    return %c0_i32, %c0_i32_0 : i32, i32
  }
  func.func @transform_11(%arg0: i32) -> (i32, i32) {
    %c0_i32 = arith.constant 0 : i32
    %c0_i32_0 = arith.constant 0 : i32
    %c0_i32_1 = arith.constant 0 : i32
    return %c0_i32, %c0_i32_0 : i32, i32
  }
  func.func @transform_12(%arg0: i32) -> (i32, i32) {
    %c0_i32 = arith.constant 0 : i32
    %c0_i32_0 = arith.constant 0 : i32
    %c0_i32_1 = arith.constant 0 : i32
    return %c0_i32, %c0_i32_0 : i32, i32
  }
  func.func @transform_13(%arg0: i32) -> (i32, i32) {
    %c0_i32 = arith.constant 0 : i32
    %c0_i32_0 = arith.constant 0 : i32
    %c0_i32_1 = arith.constant 0 : i32
    return %c0_i32, %c0_i32_0 : i32, i32
  }
  func.func @transform_14(%arg0: i32) -> (i32, i32) {
    %c0_i32 = arith.constant 0 : i32
    %c0_i32_0 = arith.constant 0 : i32
    %c0_i32_1 = arith.constant 0 : i32
    return %c0_i32, %c0_i32_0 : i32, i32
  }
  func.func @transform_15(%arg0: i32) -> (i32, i32, i32) {
    %c0_i32 = arith.constant 0 : i32
    %c0_i32_0 = arith.constant 0 : i32
    %c0_i32_1 = arith.constant 0 : i32
    %c0_i32_2 = arith.constant 0 : i32
    return %c0_i32, %c0_i32_0, %c0_i32_1 : i32, i32, i32
  }
  func.func @transform_16(%arg0: i32) -> (i32, i32) {
    %c0_i32 = arith.constant 0 : i32
    %c0_i32_0 = arith.constant 0 : i32
    %c0_i32_1 = arith.constant 0 : i32
    return %c0_i32, %c0_i32_0 : i32, i32
  }
  func.func @transform_17(%arg0: i32) -> (i32, i32) {
    %c0_i32 = arith.constant 0 : i32
    %c0_i32_0 = arith.constant 0 : i32
    %c0_i32_1 = arith.constant 0 : i32
    return %c0_i32, %c0_i32_0 : i32, i32
  }
  func.func @transform_18(%arg0: i32) -> (i32, i32, i32) {
    %c0_i32 = arith.constant 0 : i32
    %c0_i32_0 = arith.constant 0 : i32
    %c0_i32_1 = arith.constant 0 : i32
    %c0_i32_2 = arith.constant 0 : i32
    return %c0_i32, %c0_i32_0, %c0_i32_1 : i32, i32, i32
  }
  func.func @transform_19(%arg0: i32) -> (i32, i32) {
    %c0_i32 = arith.constant 0 : i32
    %c0_i32_0 = arith.constant 0 : i32
    %c0_i32_1 = arith.constant 0 : i32
    return %c0_i32, %c0_i32_0 : i32, i32
  }
  func.func @transform_20(%arg0: i32) -> (i32, i32) {
    %c0_i32 = arith.constant 0 : i32
    %c0_i32_0 = arith.constant 0 : i32
    %c0_i32_1 = arith.constant 0 : i32
    return %c0_i32, %c0_i32_0 : i32, i32
  }
  func.func @transform_21(%arg0: i32) -> (i32, i32) {
    %c0_i32 = arith.constant 0 : i32
    %c0_i32_0 = arith.constant 0 : i32
    %c0_i32_1 = arith.constant 0 : i32
    return %c0_i32, %c0_i32_0 : i32, i32
  }
  func.func @transform_22(%arg0: i32) -> (i32, i32) {
    %c0_i32 = arith.constant 0 : i32
    %c0_i32_0 = arith.constant 0 : i32
    %c0_i32_1 = arith.constant 0 : i32
    return %c0_i32, %c0_i32_0 : i32, i32
  }
  func.func @transform_23(%arg0: i32) -> (i32, i32) {
    %c0_i32 = arith.constant 0 : i32
    %c0_i32_0 = arith.constant 0 : i32
    %c0_i32_1 = arith.constant 0 : i32
    return %c0_i32, %c0_i32_0 : i32, i32
  }
  func.func @transform_24(%arg0: i32) -> (i32, i32, i32) {
    %c0_i32 = arith.constant 0 : i32
    %c0_i32_0 = arith.constant 0 : i32
    %c0_i32_1 = arith.constant 0 : i32
    %c0_i32_2 = arith.constant 0 : i32
    return %c0_i32, %c0_i32_0, %c0_i32_1 : i32, i32, i32
  }
  func.func @transform_25(%arg0: i32) -> (i32, i32) {
    %c0_i32 = arith.constant 0 : i32
    %c0_i32_0 = arith.constant 0 : i32
    %c0_i32_1 = arith.constant 0 : i32
    return %c0_i32, %c0_i32_0 : i32, i32
  }
  func.func @transform_26(%arg0: i32) -> (i32, i32) {
    %c0_i32 = arith.constant 0 : i32
    %c0_i32_0 = arith.constant 0 : i32
    %c0_i32_1 = arith.constant 0 : i32
    return %c0_i32, %c0_i32_0 : i32, i32
  }
  func.func @transform_27(%arg0: i32) -> (i32, i32, i32) {
    %c0_i32 = arith.constant 0 : i32
    %c0_i32_0 = arith.constant 0 : i32
    %c0_i32_1 = arith.constant 0 : i32
    %c0_i32_2 = arith.constant 0 : i32
    return %c0_i32, %c0_i32_0, %c0_i32_1 : i32, i32, i32
  }
  func.func @transform_28(%arg0: i32) -> (i32, i32) {
    %c0_i32 = arith.constant 0 : i32
    %c0_i32_0 = arith.constant 0 : i32
    %c0_i32_1 = arith.constant 0 : i32
    return %c0_i32, %c0_i32_0 : i32, i32
  }
  func.func @transform_29(%arg0: i32) -> (i32, i32) {
    %c0_i32 = arith.constant 0 : i32
    %c0_i32_0 = arith.constant 0 : i32
    %c0_i32_1 = arith.constant 0 : i32
    return %c0_i32, %c0_i32_0 : i32, i32
  }
  func.func @transform_30(%arg0: i32) -> (i32, i32, i32) {
    %c0_i32 = arith.constant 0 : i32
    %c0_i32_0 = arith.constant 0 : i32
    %c0_i32_1 = arith.constant 0 : i32
    %c0_i32_2 = arith.constant 0 : i32
    return %c0_i32, %c0_i32_0, %c0_i32_1 : i32, i32, i32
  }
  func.func @transform_31(%arg0: i32) -> (i32, i32) {
    %c0_i32 = arith.constant 0 : i32
    %c0_i32_0 = arith.constant 0 : i32
    %c0_i32_1 = arith.constant 0 : i32
    return %c0_i32, %c0_i32_0 : i32, i32
  }
  func.func @transform_32(%arg0: i32) -> (i32, i32) {
    %c0_i32 = arith.constant 0 : i32
    %c0_i32_0 = arith.constant 0 : i32
    %c0_i32_1 = arith.constant 0 : i32
    return %c0_i32, %c0_i32_0 : i32, i32
  }
  func.func @transform_33(%arg0: i32) -> (i32, i32) {
    %c0_i32 = arith.constant 0 : i32
    %c0_i32_0 = arith.constant 0 : i32
    %c0_i32_1 = arith.constant 0 : i32
    return %c0_i32, %c0_i32_0 : i32, i32
  }
  func.func @transform_34(%arg0: i32) -> (i32, i32) {
    %c0_i32 = arith.constant 0 : i32
    %c0_i32_0 = arith.constant 0 : i32
    %c0_i32_1 = arith.constant 0 : i32
    return %c0_i32, %c0_i32_0 : i32, i32
  }
  func.func @transform_35(%arg0: i32) -> (i32, i32, i32) {
    %c0_i32 = arith.constant 0 : i32
    %c0_i32_0 = arith.constant 0 : i32
    %c0_i32_1 = arith.constant 0 : i32
    return %arg0, %c0_i32, %c0_i32_0 : i32, i32, i32
  }
}

</mosaic_0001>

<bundles_post_ra>
// kernel: fwd.1
= control target key start
LH: loop header
LB: loop body
LE: loop exit
PB: predicated region body
PF: predicated region fallthrough
CT: control target
= control target key end

     0   :  { %s9669_s6 = smov 1   ;;  %s9670_s10 = smov 2   ;;  %s10384_s0 = inlined_call_operand.smem [shape: u32[36], index: -1, kind: input, shape index: {}] }
   0x1   :  { %s9726_s5 = sld [smem:[%s10384_s0]]   ;;  %s9671_s14 = smov 3  }
   0x2   :  { %s9731_s9 = sld [smem:[%s10384_s0 + %s9669_s6]]   ;;  %s9672_s18 = smov 4  }
   0x3   :  { %s9736_s13 = sld [smem:[%s10384_s0 + %s9670_s10]]   ;;  %s9673_s22 = smov 5  }
   0x4   :  { %s9741_s17 = sld [smem:[%s10384_s0 + %s9671_s14]]   ;;  %s9674_s26 = smov 6  }
   0x5   :  { %s9746_s21 = sld [smem:[%s10384_s0 + %s9672_s18]]   ;;  %s9675_s30 = smov 7  }
   0x6   :  { %s9751_s25 = sld [smem:[%s10384_s0 + %s9673_s22]]   ;;  %s9676_s4 = smov 8  }
   0x7   :  { %s9756_s29 = sld [smem:[%s10384_s0 + %s9674_s26]]   ;;  %s9677_s10 = smov 9  }
   0x8   :  { %s9761_s3 = sld [smem:[%s10384_s0 + %s9675_s30]]   ;;  %s9678_s15 = smov 10  }
   0x9   :  { %10394 = sst [smem:[#allocation21_spill]] %s9736_s13  ;;  %s9679_s20 = smov 11  }
   0xa   :  { %s9766_s8 = sld [smem:[%s10384_s0 + %s9676_s4]]   ;;  %s9680_s26 = smov 12  }
   0xb   :  { %s9771_s14 = sld [smem:[%s10384_s0 + %s9677_s10]]   ;;  %s9681_s1 = smov 13  }
   0xc   :  { %s9776_s19 = sld [smem:[%s10384_s0 + %s9678_s15]]   ;;  %s9682_s7 = smov 14  }
   0xd   :  { %s9781_s24 = sld [smem:[%s10384_s0 + %s9679_s20]]   ;;  %s9683_s15 = smov 15  }
   0xe   :  { %s9786_s30 = sld [smem:[%s10384_s0 + %s9680_s26]]   ;;  %s9684_s22 = smov 16  }
   0xf   :  { %s9791_s6 = sld [smem:[%s10384_s0 + %s9681_s1]]   ;;  %s9685_s28 = smov 17  }
  0x10   :  { %10395 = sst [smem:[#allocation22_spill]] %s9766_s8 }
  0x11   :  { %10396 = sst [smem:[#allocation23_spill]] %s9771_s14 }
  0x12   :  { %10397 = sst [smem:[#allocation24_spill]] %s9776_s19 }
  0x13   :  { %10398 = sst [smem:[#allocation25_spill]] %s9781_s24 }
  0x14   :  { %s9796_s12 = sld [smem:[%s10384_s0 + %s9682_s7]]   ;;  %s9686_s7 = smov 18  }
  0x15   :  { %10399 = sst [smem:[#allocation26_spill]] %s9791_s6 }
  0x16   :  { %s9801_s20 = sld [smem:[%s10384_s0 + %s9683_s15]]   ;;  %s9687_s15 = smov 19  }
  0x17   :  { %s9806_s27 = sld [smem:[%s10384_s0 + %s9684_s22]]   ;;  %s9688_s22 = smov 20  }
  0x18   :  { %s9811_s4 = sld [smem:[%s10384_s0 + %s9685_s28]]   ;;  %s9689_s28 = smov 21  }
  0x19   :  { %s9816_s24 = sld [smem:[%s10384_s0 + %s9686_s7]]   ;;  %s9690_s7 = smov 22  }
  0x1a   :  { %10400 = sst [smem:[#allocation27_spill]] %s9796_s12 }
  0x1b   :  { %s9821_s19 = sld [smem:[%s10384_s0 + %s9687_s15]]   ;;  %s9691_s15 = smov 23  }
  0x1c   :  { %s9826_s13 = sld [smem:[%s10384_s0 + %s9688_s22]]   ;;  %s9692_s22 = smov 24  }
  0x1d   :  { %10401 = sst [smem:[#allocation28_spill]] %s9806_s27 }
  0x1e   :  { %10402 = sst [smem:[#allocation29_spill]] %s9811_s4 }
  0x1f   :  { %10403 = sst [smem:[#allocation30_spill]] %s9816_s24 }
  0x20   :  { %s9831_s4 = sld [smem:[%s10384_s0 + %s9689_s28]]   ;;  %s9693_s28 = smov 25  }
  0x21   :  { %10404 = sst [smem:[#allocation31_spill]] %s9821_s19 }
  0x22   :  { %10405 = sst [smem:[#allocation32_spill]] %s9826_s13 }
  0x23   :  { %s9836_s27 = sld [smem:[%s10384_s0 + %s9690_s7]]   ;;  %s9694_s7 = smov 26  }
  0x24   :  { %s9841_s19 = sld [smem:[%s10384_s0 + %s9691_s15]]   ;;  %s9695_s15 = smov 27  }
  0x25   :  { %s9846_s13 = sld [smem:[%s10384_s0 + %s9692_s22]]   ;;  %s9696_s22 = smov 28  }
  0x26   :  { %10406 = sst [smem:[#allocation33_spill]] %s9831_s4 }
  0x27   :  { %s9851_s24 = sld [smem:[%s10384_s0 + %s9693_s28]]   ;;  %s9697_s28 = smov 29  }
  0x28   :  { %s9866_s12 = sld [smem:[%s10384_s0 + %s9696_s22]]   ;;  %s9700_s22 = smov 32  }
  0x29   :  { %10407 = sst [smem:[#allocation34_spill]] %s9836_s27 }
  0x2a   :  { %10408 = sst [smem:[#allocation35_spill]] %s9841_s19 }
  0x2b   :  { %s9856_s27 = sld [smem:[%s10384_s0 + %s9694_s7]]   ;;  %s9698_s7 = smov 30  }
  0x2c   :  { %s9861_s19 = sld [smem:[%s10384_s0 + %s9695_s15]]   ;;  %s9699_s15 = smov 31  }
  0x2d   :  { %10409 = sst [smem:[#allocation36_spill]] %s9851_s24 }
  0x2e   :  { %10411 = sst [smem:[#allocation38_spill]] %s9866_s12 }
  0x2f   :  { %s9871_s24 = sld [smem:[%s10384_s0 + %s9697_s28]]   ;;  %s9701_s28 = smov 33  }
  0x30   :  { %s9881_s6 = sld [smem:[%s10384_s0 + %s9699_s15]]   ;;  %s9703_s15 = smov 35  }
  0x31   :  { %10410 = sst [smem:[#allocation37_spill]] %s9856_s27 }
  0x32   :  { %s9876_s27 = sld [smem:[%s10384_s0 + %s9698_s7]]   ;;  %s9702_s7 = smov 34  }
  0x33   :  { %s9886_s12 = sld [smem:[%s10384_s0 + %s9700_s22]]  }
  0x34   :  { %s9896_s8 = sld [smem:[%s10384_s0 + %s9702_s7]]  }
  0x35   :  { %10412 = sst [smem:[#allocation39_spill]] %s9871_s24 }
  0x36   :  { %10413 = sst [smem:[#allocation40_spill]] %s9881_s6 }
  0x37   :  { %s9891_s24 = sld [smem:[%s10384_s0 + %s9701_s28]]  }
  0x38   :  { %s9901_s6 = sld [smem:[%s10384_s0 + %s9703_s15]]  }
  0x39   :  { %76 = vsyncpa [#allocation4], 0 }
  0x3a   :  { %77 = vsyncpa [#allocation6], 0 }
  0x3b   :  { %78 = vsyncpa [#allocation9], 0 }
  0x3c   :  { %79 = vsyncpa [#allocation12], 0 }
  0x3d   :  { %80 = vsyncpa [#allocation15], 0  ;;  %s9903_s22 = smov 0  }
  0x3e LB: > { %s10414_s14 = sld [smem:[#allocation23_spill]]  ;;  %s9909_s23 = sadd.s32 4294967295, %s9667_s22   ;;  %s9667_s22 = sphi %s9903_s22, %s86_s22  }
  0x3f   : > { %s10415_s4 = sld [smem:[#allocation33_spill]]  ;;  %p6841_p0 = scmp.ge.s32.totalorder %s9667_s22, 1 }
  0x40   : > { %10416 = sst [smem:[#allocation41_spill]] %s9667_s22  ;;  %p867_p1 = scmp.lt.s32.totalorder %s9667_s22, 3 }
  0x41   : > { %p9310_p2 = scmp.eq.s32.totalorder %s9909_s23, 0  ;;  %s9704_s1 = smov [#allocation5]  }
  0x42   : > { %p9915_p3 = pnand %p6841_p0, %p867_p1  ;;  %s909_s2 = sshll.u32 %s9704_s1, 4  ;;  %s910_s2 = int_to_ptr.vmem [resolvable:$true] %s909_s2 }
  0x43   : > { %s9705_s10 = smov [#allocation8]  }
  0x44   : > { %s907_s0 = sshll.u32 %s10414_s14, 4  ;;  %p9285_p4 = pneg %p9915_p3  ;;  %s9919_s0 = int_to_ptr.hbm [resolvable:$true] %s907_s0 }
  0x45   : > { %s965_s28 = sshll.u32 %s10415_s4, 4  ;;  %s9932_s11 = sshll.u32 %s9705_s10, 4  ;;  %s9924_s28 = int_to_ptr.hbm [resolvable:$true] %s965_s28 }
  0x46   : > { %p9928_p5 = pnand %p9310_p2, %p9285_p4  ;;  %10419 = sst [smem:[#allocation42_spill]] %s9932_s11 }
  0x47   : > { %s9401_s16 = sshra.s32 %s9919_s0, 4  ;;  %s9408_s22 = scalar_lea.hbm %s10414_s14, 192  ;;  %s9402_s16 = int_to_ptr.hbm [resolvable:$true] %s9401_s16 }
  0x48   : > { %s9403_s18 = scalar_lea.hbm %s9402_s16, 192  ;;  %p9939_p7 = pneg %p9928_p5 }
  0x49   : > { %p9404_p6 = scmp.ne.s32.totalorder %s9402_s16, %s9403_s18  ;;  %p9409_p10 = scmp.lt.s32.totalorder %s9402_s16, %s10414_s14 }
  0x4a   : > { %p9410_p11 = scmp.lt.s32.totalorder %s9408_s22, %s9403_s18 }
  0x4b   : > { %p9406_p8 = pnand %p9939_p7, %p9404_p6 }
  0x4c   : > { %p9411_p12 = por %p9410_p11, %p9409_p10 }
  0x4d   : > { %p9407_p9 = pneg %p9406_p8 }
  0x4f   : > { %p9412_p13 = pnand %p9411_p12, %p9407_p9 }
  0x51   : > { %9415 = shalt.err (!%p9412_p13)
}
  0x52   : > { %s10390_s10 = smov 64   ;;  %s10392_s15 = smov 4  }
  0x53   : > { %9291 = dma.hbm_to_vmem [thread:$0]  (!%p9928_p5), %s9919_s0, 3072, %s910_s2, [#allocation6], %s10390_s10, %s10390_s10, %s10392_s15  }
  0x54   : > { %s9431_s11 = sshra.s32 %s9924_s28, 4  ;;  %s9438_s22 = scalar_lea.hbm %s10415_s4, 64  ;;  %s9432_s11 = int_to_ptr.hbm [resolvable:$true] %s9431_s11 }
  0x55   : > { %s9433_s16 = scalar_lea.hbm %s9432_s11, 64  ;;  %p9439_p6 = scmp.lt.s32.totalorder %s9432_s11, %s10415_s4 }
  0x56   : > { %p9434_p0 = scmp.ne.s32.totalorder %s9432_s11, %s9433_s16  ;;  %p9440_p8 = scmp.lt.s32.totalorder %s9438_s22, %s9433_s16 }
  0x58   : > { %p9436_p1 = pnand %p9434_p0, %p9939_p7  ;;  %p9441_p9 = por %p9440_p8, %p9439_p6 }
  0x5a   : > { %p9437_p4 = pneg %p9436_p1 }
  0x5c   : > { %p9442_p10 = pnand %p9441_p9, %p9437_p4 }
  0x5e   : > { %9445 = shalt.err (!%p9442_p10)
}
  0x5f   : > { %s10421_s18 = sld [smem:[#allocation42_spill]]  ;;  %s10423_s2 = sshll.u32 %s9861_s19, 4  ;;  %s1006_s2 = int_to_ptr.hbm [resolvable:$true] %s10423_s2 }
  0x60   : > { %s9708_s11 = smov [#allocation11]   ;;  %s887_s22 = sshll.u32 %s9756_s29, 4  ;;  %s9969_s22 = int_to_ptr.hbm [resolvable:$true] %s887_s22 }
  0x61   : > { %s1007_s16 = sshll.u32 %s9708_s11, 4  ;;  %s9461_s4 = sshra.s32 %s1006_s2, 4  ;;  %s1008_s16 = int_to_ptr.vmem [resolvable:$true] %s1007_s16  ;;  %s9462_s4 = int_to_ptr.hbm [resolvable:$true] %s9461_s4 }
  0x62   : > { %s9463_s14 = scalar_lea.hbm %s9462_s4, 320  ;;  %p9469_p0 = scmp.lt.s32.totalorder %s9462_s4, %s9861_s19 }
  0x63   : > { %p9464_p11 = scmp.ne.s32.totalorder %s9462_s4, %s9463_s14 }
  0x65   : > { %s10422_s0 = int_to_ptr.vmem [resolvable:$true] %s10421_s18  ;;  %p9466_p12 = pnand %p9464_p11, %p9939_p7 }
  0x66   : > { %9297 = dma.hbm_to_vmem [thread:$0]  (!%p9928_p5), %s9924_s28, 1024, %s10422_s0, [#allocation9], %s10390_s10, %s10390_s10, %s10392_s15  }
  0x67   : > { %p9467_p13 = pneg %p9466_p12  ;;  %s9468_s18 = scalar_lea.hbm %s9861_s19, 320 }
  0x68   : > { %p9470_p1 = scmp.lt.s32.totalorder %s9468_s18, %s9463_s14 }
  0x6a   : > { %p9471_p4 = por %p9470_p1, %p9469_p0 }
  0x6c   : > { %p9472_p6 = pnand %p9471_p4, %p9467_p13 }
  0x6e   : > { %9475 = shalt.err (!%p9472_p6)
}
  0x6f   : > { %9303 = dma.hbm_to_vmem [thread:$0]  (!%p9928_p5), %s1006_s2, 5120, %s1008_s16, [#allocation12], %s10390_s10, %s10390_s10, %s10392_s15  }
  0x70   : > { %s936_s28 = sshll.u32 %s9801_s20, 4  ;;  %s9709_s0 = smov [#allocation3]   ;;  %s9981_s28 = int_to_ptr.hbm [resolvable:$true] %s936_s28 }
  0x71   : > { %s889_s11 = sshll.u32 %s9709_s0, 4  ;;  %s9491_s14 = sshra.s32 %s9969_s22, 4  ;;  %s890_s11 = int_to_ptr.vmem [resolvable:$true] %s889_s11  ;;  %s9492_s14 = int_to_ptr.hbm [resolvable:$true] %s9491_s14 }
  0x72   : > { %s9493_s4 = scalar_lea.hbm %s9492_s14, 320  ;;  %s9498_s18 = scalar_lea.hbm %s9756_s29, 320 }
  0x73   : > { %p9494_p8 = scmp.ne.s32.totalorder %s9492_s14, %s9493_s4  ;;  %p9499_p11 = scmp.lt.s32.totalorder %s9492_s14, %s9756_s29 }
  0x74   : > { %p9500_p12 = scmp.lt.s32.totalorder %s9498_s18, %s9493_s4 }
  0x75   : > { %p9496_p9 = pnand %p9494_p8, %p9939_p7 }
  0x76   : > { %p9501_p13 = por %p9500_p12, %p9499_p11 }
  0x77   : > { %p9497_p10 = pneg %p9496_p9 }
  0x79   : > { %p9502_p0 = pnand %p9501_p13, %p9497_p10 }
  0x7b   : > { %9505 = shalt.err (!%p9502_p0)
}
  0x7c   : > { %9288 = dma.hbm_to_vmem [thread:$0]  (!%p9928_p5), %s9969_s22, 5120, %s890_s11, [#allocation4], %s10390_s10, %s10390_s10, %s10392_s15  }
  0x7d   : > { %s9710_s2 = smov [#allocation7]   ;;  %s9521_s0 = sshra.s32 %s9981_s28, 4  ;;  %s9522_s0 = int_to_ptr.hbm [resolvable:$true] %s9521_s0 }
  0x7e   : > { %s938_s16 = sshll.u32 %s9710_s2, 4  ;;  %s9523_s14 = scalar_lea.hbm %s9522_s0, 640  ;;  %s939_s16 = int_to_ptr.vmem [resolvable:$true] %s938_s16 }
  0x7f   : > { %p9524_p1 = scmp.ne.s32.totalorder %s9522_s0, %s9523_s14  ;;  %s9528_s4 = scalar_lea.hbm %s9801_s20, 640 }
  0x80   : > { %p9529_p8 = scmp.lt.s32.totalorder %s9522_s0, %s9801_s20  ;;  %p9530_p9 = scmp.lt.s32.totalorder %s9528_s4, %s9523_s14 }
  0x81   : > { %p9526_p4 = pnand %p9524_p1, %p9939_p7 }
  0x82   : > { %p9531_p10 = por %p9530_p9, %p9529_p8 }
  0x83   : > { %p9527_p6 = pneg %p9526_p4 }
  0x85   : > { %p9532_p11 = pnand %p9531_p10, %p9527_p6 }
  0x87   : > { %9535 = shalt.err (!%p9532_p11)
}
  0x88   : > { %s9711_s18 = smov 128   ;;  %s9712_s22 = smov 8  }
  0x89   : > { %9294 = dma.hbm_to_vmem [thread:$0]  (!%p9928_p5), %s9981_s28, 10240, %s939_s16, [#allocation6], %s9711_s18, %s9711_s18, %s9712_s22  }
  0x8a   : > { %s985_s11 = sshll.u32 %s9846_s13, 4  ;;  %s9713_s2 = smov [#allocation10]   ;;  %s986_s11 = int_to_ptr.hbm [resolvable:$true] %s985_s11 }
  0x8b   : > { %s987_s10 = sshll.u32 %s9713_s2, 4  ;;  %s1025_s0 = sshll.u32 %s9876_s27, 4  ;;  %s988_s10 = int_to_ptr.vmem [resolvable:$true] %s987_s10  ;;  %s1026_s0 = int_to_ptr.hbm [resolvable:$true] %s1025_s0 }
  0x8c   : > { %s9551_s14 = sshra.s32 %s986_s11, 4  ;;  %s9558_s15 = scalar_lea.hbm %s9846_s13, 1344  ;;  %s9552_s14 = int_to_ptr.hbm [resolvable:$true] %s9551_s14 }
  0x8d   : > { %s9553_s4 = scalar_lea.hbm %s9552_s14, 1344  ;;  %p9559_p1 = scmp.lt.s32.totalorder %s9552_s14, %s9846_s13 }
  0x8e   : > { %p9554_p12 = scmp.ne.s32.totalorder %s9552_s14, %s9553_s4  ;;  %p9560_p4 = scmp.lt.s32.totalorder %s9558_s15, %s9553_s4 }
  0x90   : > { %p9556_p13 = pnand %p9554_p12, %p9939_p7  ;;  %p9561_p6 = por %p9560_p4, %p9559_p1 }
  0x92   : > { %p9557_p0 = pneg %p9556_p13 }
  0x94   : > { %p9562_p8 = pnand %p9561_p6, %p9557_p0 }
  0x96   : > { %9565 = shalt.err (!%p9562_p8)
}
  0x97   : > { %s10424_s28 = smov 4   ;;  %s10425_s16 = smov 64  }
  0x98   : > { %9300 = dma.hbm_to_vmem [thread:$0]  (!%p9928_p5), %s986_s11, 21504, %s988_s10, [#allocation9], %s10425_s16, %s10425_s16, %s10424_s28  }
  0x99   : > { %s9714_s18 = smov [#allocation13]   ;;  %s1045_s2 = sshll.u32 %s9891_s24, 4  ;;  %s1046_s2 = int_to_ptr.hbm [resolvable:$true] %s1045_s2 }
  0x9a   : > { %s1027_s22 = sshll.u32 %s9714_s18, 4  ;;  %s9581_s14 = sshra.s32 %s1026_s0, 4  ;;  %s1028_s22 = int_to_ptr.vmem [resolvable:$true] %s1027_s22  ;;  %s9582_s14 = int_to_ptr.hbm [resolvable:$true] %s9581_s14 }
  0x9b   : > { %s9583_s15 = scalar_lea.hbm %s9582_s14, 192  ;;  %s9588_s4 = scalar_lea.hbm %s9876_s27, 192 }
  0x9c   : > { %p9584_p9 = scmp.ne.s32.totalorder %s9582_s14, %s9583_s15  ;;  %p9589_p12 = scmp.lt.s32.totalorder %s9582_s14, %s9876_s27 }
  0x9d   : > { %p9590_p13 = scmp.lt.s32.totalorder %s9588_s4, %s9583_s15 }
  0x9e   : > { %p9586_p10 = pnand %p9584_p9, %p9939_p7 }
  0x9f   : > { %p9591_p0 = por %p9590_p13, %p9589_p12 }
  0xa0   : > { %p9587_p11 = pneg %p9586_p10 }
  0xa2   : > { %p9592_p1 = pnand %p9591_p0, %p9587_p11 }
  0xa4   : > { %9595 = shalt.err (!%p9592_p1)
}
  0xa5   : > { %9306 = dma.hbm_to_vmem [thread:$0]  (!%p9928_p5), %s1026_s0, 3072, %s1028_s22, [#allocation12], %s10425_s16, %s10425_s16, %s10424_s28  }
  0xa6   : > { %s9715_s10 = smov [#allocation14]   ;;  %s9611_s18 = sshra.s32 %s1046_s2, 4  ;;  %s9612_s18 = int_to_ptr.hbm [resolvable:$true] %s9611_s18 }
  0xa7   : > { %s1047_s11 = sshll.u32 %s9715_s10, 4  ;;  %s9613_s14 = scalar_lea.hbm %s9612_s18, 64  ;;  %s1048_s11 = int_to_ptr.vmem [resolvable:$true] %s1047_s11 }
  0xa8   : > { %p9614_p4 = scmp.ne.s32.totalorder %s9612_s18, %s9613_s14  ;;  %s9618_s15 = scalar_lea.hbm %s9891_s24, 64 }
  0xa9   : > { %p9619_p9 = scmp.lt.s32.totalorder %s9612_s18, %s9891_s24  ;;  %p9620_p10 = scmp.lt.s32.totalorder %s9618_s15, %s9613_s14 }
  0xaa   : > { %p9616_p6 = pnand %p9614_p4, %p9939_p7 }
  0xab   : > { %p9621_p11 = por %p9620_p10, %p9619_p9 }
  0xac   : > { %p9617_p8 = pneg %p9616_p6 }
  0xae   : > { %p9622_p12 = pnand %p9621_p11, %p9617_p8 }
  0xb0   : > { %9625 = shalt.err (!%p9622_p12)
}
  0xb1   : > { %9309 = dma.hbm_to_vmem [thread:$0]  (!%p9928_p5), %s1046_s2, 1024, %s1048_s11, [#allocation15], %s10425_s16, %s10425_s16, %s10424_s28  }
  0xb2   : > { %1090 = sbr.rel (%p9915_p3) target bundleno = 1755 (0x6db), region = 160 }
  0xb7   : > { %9646 = dma.done.wait (%p9310_p2), [#allocation4], 5120  }
  0xb8   : > { %9648 = vsyncadd (%p9310_p2), [#allocation4], 4294962176 }
  0xb9   : > { %9650 = dma.done.wait (%p9310_p2), [#allocation6], 13312  }
  0xba   : > { %9652 = vsyncadd (%p9310_p2), [#allocation6], 4294953984 }
  0xbb   : > { %9654 = dma.done.wait (%p9310_p2), [#allocation9], 22528  }
  0xbc   : > { %9656 = vsyncadd (%p9310_p2), [#allocation9], 4294944768 }
  0xbd   : > { %9658 = dma.done.wait (%p9310_p2), [#allocation12], 8192  }
  0xbe   : > { %9660 = vsyncadd (%p9310_p2), [#allocation12], 4294959104 }
  0xbf   : > { %9662 = dma.done.wait (%p9310_p2), [#allocation15], 1024  }
  0xc0   : > { %9664 = vsyncadd (%p9310_p2), [#allocation15], 4294966272  ;;  %v8798_v0 = vld [vmem:[%s9741_s17 + $0x38] sm:$0xff]  ;;  %v8797_v1 = vld [vmem:[%s9741_s17 + $0x30] sm:$0xff]  ;;  %v9716_v4 = vmov 0   ;;  %p1223_p2 = scmp.lt.s32.totalorder %s9909_s23, 1 }
  0xc1   : > { %1354 = vmatpush.bf16.msra.mxu0 %v8798_v0  ;;  %v8814_v2 = vld [vmem:[#allocation3 + $0x78] sm:$0xff]  ;;  %v8796_v3 = vld [vmem:[%s9741_s17 + $0x28] sm:$0xff]  ;;  %1247 = vst [vmem:[#allocation2 + $0x18] sm:$0xff] %v9716_v4  ;;  %v8813_v5 = vld [vmem:[#allocation3 + $0x70] sm:$0xff]  ;;  %vm1523_vm0 = vcmask 1044480   ;;  %vm1800_vm3 = vcmask 1046528  }
  0xc2   : > { %1506 = vmatpush.bf16.msra.mxu1 %v8814_v2  ;;  %v8812_v6 = vld [vmem:[#allocation3 + $0x68] sm:$0xff]  ;;  %1245 = vst [vmem:[#allocation2 + $0xc] sm:$0xff] %v9716_v4  ;;  %v8795_v7 = vld [vmem:[%s9741_s17 + $0x20] sm:$0xff]  ;;  %v8811_v8 = vld [vmem:[#allocation3 + $0x60] sm:$0xff]  ;;  %s10446_s23 = smov (!%p1223_p2, %s9909_s23), 1  ;;  %s10426_s1 = sld [smem:[#allocation22_spill]] }
  0xc3   : > { %1246 = vst [vmem:[#allocation2 + $0x14] sm:$0xf] %v9716_v4  ;;  %v8794_v9 = vld [vmem:[%s9741_s17 + $0x18] sm:$0xff]  ;;  %v8810_v10 = vld [vmem:[#allocation3 + $0x58] sm:$0xff]  ;;  %v8793_v11 = vld [vmem:[%s9741_s17 + $0x10] sm:$0xff]  ;;  %s10063_s26 = sshll.u32 %s10446_s23, 3 }
  0xc4   : > { %1248 = vst [vmem:[#allocation2 + $0x20] sm:$0xf] %v9716_v4  ;;  %v8792_v12 = vld [vmem:[%s9741_s17 + $0x8] sm:$0xff]  ;;  %v8791_v13 = vld [vmem:[%s9741_s17] sm:$0xff]  ;;  %s1227_s7 = scalar_lea.vmem %s9726_s5, %s10063_s26  ;;  %v8809_v16 = vld [vmem:[#allocation3 + $0x50] sm:$0xff]  ;;  %s1232_s23 = scalar_lea.vmem %s9731_s9, %s10063_s26  ;;  %vm6645_vm8 = vcmask 1040384  }
  0xc5   : > { %1355 = vmatpush.bf16.msra.mxu0 %v8797_v1  ;;  %1249 = vst [vmem:[#allocation2 + $0x24] sm:$0xff] %v9716_v4  ;;  %v8790_v14 = vld [vmem:[%s1227_s7] sm:$0xff]  ;;  %v8821_v18 = vld [vmem:[#allocation3 + $0xb0] sm:$0xff]  ;;  %v8808_v19 = vld [vmem:[#allocation3 + $0x48] sm:$0xff]  ;;  %vm1439_vm1 = vsmask.f32 4352 }
  0xc6   : > { %1507 = vmatpush.bf16.msra.mxu1 %v8813_v5  ;;  %1250 = vst [vmem:[#allocation2 + $0x2c] sm:$0xf] %v9716_v4  ;;  %v8822_v15 = vld [vmem:[#allocation3 + $0xb8] sm:$0xff]  ;;  %v8805_v20 = vld [vmem:[#allocation3 + $0x30] sm:$0xff]  ;;  %v8820_v22 = vld [vmem:[#allocation3 + $0xa8] sm:$0xff]  ;;  %s10427_s0 = sld [smem:[#allocation26_spill]] }
  0xc7   : > { %1251 = vst [vmem:[#allocation2 + $0x30] sm:$0xff] %v9716_v4  ;;  %1657 = vmatpush.bf16.msra.mxu3 %v8822_v15  ;;  %v8806_v17 = vld [vmem:[#allocation3 + $0x38] sm:$0xff]  ;;  %v8807_v23 = vld [vmem:[#allocation3 + $0x40] sm:$0xff]  ;;  %v8804_v25 = vld [vmem:[#allocation3 + $0x28] sm:$0xff]  ;;  %vm1701_vm2 = vsmask.f32 7424 }
  0xc8   : > { %1252 = vst [vmem:[#allocation2 + $0x38] sm:$0xf] %v9716_v4  ;;  %1576 = vmatpush.bf16.msra.mxu2 %v8806_v17  ;;  %v8830_v21 = vld [vmem:[#allocation3 + $0xf8] sm:$0xff]  ;;  %v8829_v26 = vld [vmem:[#allocation3 + $0xf0] sm:$0xff]  ;;  %v8819_v27 = vld [vmem:[#allocation3 + $0xa0] sm:$0xff]  ;;  %s10428_s28 = sld [smem:[#allocation27_spill]] }
  0xc9   : > { %1356 = vmatpush.bf16.msra.mxu0 %v8796_v3  ;;  %v8838_v24 = vld [vmem:[#allocation3 + $0x138] sm:$0xff]  ;;  %v8837_v28 = vld [vmem:[#allocation3 + $0x130] sm:$0xff]  ;;  %v8803_v29 = vld [vmem:[#allocation3 + $0x20] sm:$0xff]  ;;  %s10429_s16 = sld [smem:[#allocation30_spill]]  ;;  %vm4089_vm6 = vsmask.f32 5376 }
  0xca   : > { %1508 = vmatpush.bf16.msra.mxu1 %v8812_v6  ;;  %v8828_v30 = vld [vmem:[#allocation3 + $0xe8] sm:$0xff]  ;;  %v8818_v31 = vld [vmem:[#allocation3 + $0x98] sm:$0xff]  ;;  %v8827_v34 = vld [vmem:[#allocation3 + $0xe0] sm:$0xff]  ;;  %s10430_s22 = sld [smem:[#allocation28_spill]]  ;;  %vm5495_vm7 = vsmask.f32 6400 }
  0xcb   : > { %1658 = vmatpush.bf16.msra.mxu3 %v8821_v18  ;;  %v8836_v32 = vld [vmem:[#allocation3 + $0x128] sm:$0xff]  ;;  %v8802_v33 = vld [vmem:[#allocation3 + $0x18] sm:$0xff]  ;;  %v8817_v35 = vld [vmem:[#allocation3 + $0x90] sm:$0xff]  ;;  %s10431_s2 = sld [smem:[#allocation29_spill]] }
  0xcc   : > { %1577 = vmatpush.bf16.msra.mxu2 %v8805_v20  ;;  %v8835_v36 = vld [vmem:[#allocation3 + $0x120] sm:$0xff]  ;;  %v8801_v37 = vld [vmem:[#allocation3 + $0x10] sm:$0xff]  ;;  %v8826_v38 = vld [vmem:[#allocation3 + $0xd8] sm:$0xff]  ;;  %s10432_s4 = sld [smem:[#allocation21_spill]] }
  0xcd   : > { %1357 = vmatpush.bf16.msra.mxu0 %v8795_v7  ;;  %v8816_v39 = vld [vmem:[#allocation3 + $0x88] sm:$0xff]  ;;  %v8834_v40 = vld [vmem:[#allocation3 + $0x118] sm:$0xff]  ;;  %v8825_v42 = vld [vmem:[#allocation3 + $0xd0] sm:$0xff]  ;;  %s10433_s11 = sld [smem:[#allocation24_spill]] }
  0xce   : > { %1509 = vmatpush.bf16.msra.mxu1 %v8811_v8  ;;  %v8800_v41 = vld [vmem:[#allocation3 + $0x8] sm:$0xff]  ;;  %v8815_v43 = vld [vmem:[#allocation3 + $0x80] sm:$0xff]  ;;  %v8833_v44 = vld [vmem:[#allocation3 + $0x110] sm:$0xff]  ;;  %s10434_s18 = sld [smem:[#allocation25_spill]] }
  0xcf   : > { %1659 = vmatpush.bf16.msra.mxu3 %v8820_v22  ;;  %v8799_v45 = vld [vmem:[#allocation3] sm:$0xff]  ;;  %v9383_v46 = vld [vmem:[%s9746_s21] ss:$0 sm:$0xff]  ;;  %v8824_v47 = vld [vmem:[#allocation3 + $0xc8] sm:$0xff]  ;;  %s10435_s14 = sld [smem:[#allocation31_spill]] }
  0xd0   : > { %1578 = vmatpush.bf16.msra.mxu2 %v8804_v25  ;;  %v9384_v48 = vld [vmem:[%s9751_s25] ss:$0 sm:$0xff]  ;;  %v8832_v50 = vld [vmem:[#allocation3 + $0x108] sm:$0xff]  ;;  %v8823_v52 = vld [vmem:[#allocation3 + $0xc0] sm:$0xff]  ;;  %s10436_s15 = sld [smem:[#allocation32_spill]] }
  0xd1   : > { %1358 = vmatpush.bf16.msra.mxu0 %v8794_v9  ;;  %v8831_v55 = vld [vmem:[#allocation3 + $0x100] sm:$0xff]  ;;  %v1675_v4 = vld [vmem:[#allocation2 + $0x30] sm:$0x1]  ;;  %s10437_s7 = sld [smem:[#allocation34_spill]] }
  0xd2   : > { %1510 = vmatpush.bf16.msra.mxu1 %v8810_v10  ;;  %v1394_v61 = vld [vmem:[#allocation2 + $0xc] sm:$0x8]  ;;  %v1698_v6 = vunpack.c.l.b16 %v1675_v4  ;;  %v8849_v4 = vld [vmem:[#allocation5 + $0x50] sm:$0xff]  ;;  %s1237_s10 = scalar_lea.vmem %s10432_s4, %s10063_s26  ;;  %s1241_s4 = scalar_lea.vmem %s9901_s6, %s10063_s26 }
  0xd3   : > { %1660 = vmatpush.bf16.msra.mxu3 %v8819_v27  ;;  %v1434_v1 = vunpack.c.l.b16 %v1394_v61  ;;  %v8845_v61 = vld [vmem:[#allocation5 + $0x30] sm:$0xff] }
  0xd4   : > { %1579 = vmatpush.bf16.msra.mxu2 %v8803_v29 }
  0xd5   : > { %1359 = vmatpush.bf16.msra.mxu0 %v8793_v11 }
  0xd6   : > { %1511 = vmatpush.bf16.msra.mxu1 %v8809_v16  ;;  %v1700_v16 = vpack.c.b16 %v1698_v6, %v1698_v6  ;;  %v8842_v6 = vld [vmem:[#allocation5 + $0x18] sm:$0xff] }
  0xd7   : > { %1661 = vmatpush.bf16.msra.mxu3 %v8818_v31 }
  0xd8   : > { %1580 = vmatpush.bf16.msra.mxu2 %v8802_v33 }
  0xd9   : > { %1360 = vmatpush.bf16.msra.mxu0 %v8792_v12 }
  0xda   : > { %1512 = vmatpush.bf16.msra.mxu1 %v8808_v19 }
  0xdb   : > { %1662 = vmatpush.bf16.msra.mxu3 %v8817_v35 }
  0xdc   : > { %1581 = vmatpush.bf16.msra.mxu2 %v8801_v37  ;;  %v8872_v37 = vld [vmem:[%s9786_s30 + $0x38] sm:$0xff] }
  0xdd   : > { %1361 = vmatpush.bf16.msra.mxu0 %v8791_v13 }
  0xde   : > { %1513 = vmatpush.bf16.msra.mxu1 %v8807_v23  ;;  %v1710_v23 = vshll.u32 %v1700_v16, 16 }
  0xdf   : > { %1663 = vmatpush.bf16.msra.mxu3 %v8816_v39 }
  0xe0   : > { %1362 = vmatmul.bf16.vlgmr.msra.gmra.mxu0 %v8790_v14  ;;  %1582 = vmatpush.bf16.msra.mxu2 %v8800_v41  ;;  %v8854_v41 = vld [vmem:[#allocation5 + $0x78] sm:$0xff] }
  0xe1   : > { %1763 = vmatpush.bf16.msrb.mxu0 %v8830_v21 }
  0xe2   : > { %1853 = vmatpush.bf16.msrb.mxu1 %v8838_v24 }
  0xe3   : > { %1664 = vmatpush.bf16.msra.mxu3 %v8815_v43  ;;  %v8871_v43 = vld [vmem:[%s9786_s30 + $0x30] sm:$0xff] }
  0xe4   : > { %1583 = vmatpush.bf16.msra.mxu2 %v8799_v45 }
  0xe5   : > { %1764 = vmatpush.bf16.msrb.mxu0 %v8829_v26 }
  0xe6   : > { %1854 = vmatpush.bf16.msrb.mxu1 %v8837_v28 }
  0xe8   : > { %1979 = vmatpush.bf16.msrb.mxu2 %v8854_v41  ;;  %v8901_v41 = vld [vmem:[#allocation7 + $0xe4] sm:$0xf] }
  0xe9   : > { %1765 = vmatpush.bf16.msrb.mxu0 %v8828_v30 }
  0xea   : > { %1855 = vmatpush.bf16.msrb.mxu1 %v8836_v32 }
  0xed   : > { %1766 = vmatpush.bf16.msrb.mxu0 %v8827_v34  ;;  %v1712_v34 = vrot.slane %v1710_v23, 1  ;;  %v7322_v23 = vld [vmem:[#allocation7 + $0x70] sm:$0xf] }
  0xee   : > { %1856 = vmatpush.bf16.msrb.mxu1 %v8835_v36 }
  0xf1   : > { %1767 = vmatpush.bf16.msrb.mxu0 %v8826_v38 }
  0xf2   : > { %1857 = vmatpush.bf16.msrb.mxu1 %v8834_v40 }
  0xf5   : > { %1768 = vmatpush.bf16.msrb.mxu0 %v8825_v42  ;;  %v8863_v42 = vld [vmem:[#allocation5 + $0xb8] sm:$0xff] }
  0xf6   : > { %1858 = vmatpush.bf16.msrb.mxu1 %v8833_v44  ;;  %v8846_v44 = vld [vmem:[#allocation5 + $0x38] sm:$0xff] }
  0xf7   : > { %2063 = vmatpush.bf16.msrb.mxu3 %v8846_v44 }
  0xf9   : > { %1769 = vmatpush.bf16.msrb.mxu0 %v8824_v47  ;;  %v8870_v47 = vld [vmem:[%s9786_s30 + $0x28] sm:$0xff] }
  0xfa   : > { %1859 = vmatpush.bf16.msrb.mxu1 %v8832_v50  ;;  %v8869_v50 = vld [vmem:[%s9786_s30 + $0x20] sm:$0xff] }
  0xfb   : > { %2064 = vmatpush.bf16.msrb.mxu3 %v8845_v61 }
  0xfd   : > { %1770 = vmatpush.bf16.msrb.mxu0 %v8823_v52  ;;  %v1802_v52 = vrot.slane %v1700_v16, 1  ;;  %v7324_v16 = vld [vmem:[#allocation7 + $0x78] sm:$0xf0] }
  0xfe   : > { %1860 = vmatpush.bf16.msrb.mxu1 %v8831_v55  ;;  %v8867_v55 = vld [vmem:[%s9786_s30 + $0x10] sm:$0xff] }
 0x101   : > { %2166 = vmatpush.bf16.msra.mxu0 %v8863_v42  ;;  %v7252_v42 = vld [vmem:[#allocation7 + $0xe8] sm:$0xf0] }
 0x102   : > { %v7255_v44 = vor.u32 %v8901_v41, %v7252_v42  ;;  %v7202_v41 = vld [vmem:[#allocation7 + $0x80] sm:$0xf]  ;;  %v8890_v42 = vld [vmem:[#allocation7 + $0x84] sm:$0xf0] }
 0x15d   : > { %v1363_v49 = vpop.f32.mrf.mxu0 }
 0x15e   : > { %v1372_v51 = vmul.f32 %v9383_v46, %v1363_v49 }
 0x160   : > { %v1378_v53 = vadd.f32 %v9384_v48, %v1372_v51 }
 0x162   : > { %v1380_v54 = vmax.f32 %v1378_v53, 0.0  ;;  %v8868_v53 = vld [vmem:[%s9786_s30 + $0x18] sm:$0xff] }
 0x164   : > { %v1390_v56 = vpack.c.bf16 %v1380_v54, %v1380_v54 }
 0x165   : > { %v1365_v57 = vpop.f32.mrf.mxu0 }
 0x166   : > { %1392 = vst [vmem:[#allocation2 + $0x18] sm:$0xf] %v1390_v56  ;;  %v1373_v58 = vmul.f32 %v9383_v46, %v1365_v57  ;;  %v8853_v46 = vld [vmem:[#allocation5 + $0x70] sm:$0xff]  ;;  %v8866_v56 = vld [vmem:[%s9786_s30 + $0x8] sm:$0xff]  ;;  %v8865_v57 = vld [vmem:[%s9786_s30] sm:$0xff] }
 0x167   : > { %1980 = vmatpush.bf16.msrb.mxu2 %v8853_v46  ;;  %v8898_v46 = vld [vmem:[#allocation7 + $0xc4] sm:$0xf0] }
 0x168   : > { %v1379_v59 = vadd.f32 %v9384_v48, %v1373_v58  ;;  %v8864_v58 = vld [vmem:[%s1232_s23] sm:$0xff]  ;;  %s10438_s23 = sld [smem:[#allocation35_spill]] }
 0x16a   : > { %v1381_v60 = vmax.f32 %v1379_v59, 0.0  ;;  %v8852_v59 = vld [vmem:[#allocation5 + $0x68] sm:$0xff] }
 0x16b   : > { %1981 = vmatpush.bf16.msrb.mxu2 %v8852_v59  ;;  %v7226_v59 = vld [vmem:[#allocation7 + $0xb0] sm:$0xf] }
 0x16c   : > { %v1389_v62 = vmul.f32 0.0, %v1381_v60  ;;  %v8862_v60 = vld [vmem:[#allocation5 + $0xb0] sm:$0xff] }
 0x16d   : > { %v1395_v63 = vld [vmem:[#allocation2 + $0x18] sm:$0xf]  ;;  %2167 = vmatpush.bf16.msra.mxu0 %v8862_v60  ;;  %v8896_v60 = vld [vmem:[#allocation7 + $0xb4] sm:$0xf0] }
 0x16e   : > { %v1391_v0 = vpack.c.bf16 %v1389_v62, %v1389_v62  ;;  %v1435_v2 = vunpack.c.l.b16 %v1395_v63  ;;  %v1673_v5 = vld [vmem:[#allocation2 + $0x18] sm:$0xf]  ;;  %v8851_v62 = vld [vmem:[#allocation5 + $0x60] sm:$0xff]  ;;  %v8861_v63 = vld [vmem:[#allocation5 + $0xa8] sm:$0xff]  ;;  %v7227_v61 = vor.u32 %v8896_v60, %v7226_v59 }
 0x16f   : > { %v1696_v11 = vunpack.c.l.b16 %v1673_v5  ;;  %v1779_v45 = vld [vmem:[#allocation2 + $0x18] sm:$0xe]  ;;  %1982 = vmatpush.bf16.msrb.mxu2 %v8851_v62  ;;  %v8859_v5 = vld [vmem:[#allocation5 + $0x98] sm:$0xff]  ;;  %v7298_v62 = vld [vmem:[#allocation7 + $0x40] sm:$0xf] }
 0x170   : > { %1393 = vst [vmem:[#allocation2 + $0x24] sm:$0xf] %v1391_v0  ;;  %v1437_v3 = vpack.c.b16 %v1435_v2, %v1434_v1  ;;  %v1798_v48 = vunpack.c.l.b16 %v1779_v45  ;;  %v8844_v0 = vld [vmem:[#allocation5 + $0x28] sm:$0xff]  ;;  %v8850_v1 = vld [vmem:[#allocation5 + $0x58] sm:$0xff]  ;;  %v7234_v45 = vld [vmem:[#allocation7 + $0xc0] sm:$0xf] }
 0x171   : > { %2168 = vmatpush.bf16.msra.mxu0 %v8861_v63  ;;  %2065 = vmatpush.bf16.msrb.mxu3 %v8844_v0  ;;  %v8882_v63 = vld [vmem:[#allocation7 + $0x44] sm:$0xf0]  ;;  %v8879_v0 = vld [vmem:[#allocation7 + $0x34] sm:$0xf] }
 0x172   : > { %v1441_v7 = vshrl.u32 %v1437_v3, 16  ;;  %v1444_v14 = vshll.u32 %v1437_v3, 16  ;;  %v1524_v21 = vrot.slane %v1437_v3, 3  ;;  %v8843_v3 = vld [vmem:[#allocation5 + $0x20] sm:$0xff] }
 0x173   : > { %1983 = vmatpush.bf16.msrb.mxu2 %v8850_v1  ;;  %v1255_v1 = vlaneseq }
 0x174   : > { %v1443_v22 = vrot.slane %v1441_v7, 3  ;;  %v1446_v25 = vrot.slane %v1444_v14, 4  ;;  %v8848_v7 = vld [vmem:[#allocation5 + $0x48] sm:$0xff] }
 0x175   : > { %2066 = vmatpush.bf16.msrb.mxu3 %v8843_v3  ;;  %v8857_v14 = vld [vmem:[#allocation5 + $0x88] sm:$0xff]  ;;  %v7292_v3 = vld [vmem:[#allocation7 + $0x38] sm:$0xf0] }
 0x176   : > { %v1447_v35 = vor.u32 %v1446_v25, %v1443_v22  ;;  %v8856_v22 = vld [vmem:[#allocation5 + $0x80] sm:$0xff] }
 0x177   : > { %v1413_v8 = vld [vmem:[#allocation2 + $0x24] sm:$0xf]  ;;  %1984 = vmatpush.bf16.msrb.mxu2 %v8849_v4  ;;  %v8839_v25 = vld [vmem:[#allocation5] sm:$0xff] }
 0x178   : > { %v1396_v9 = vld [vmem:[#allocation2 + $0x24] sm:$0x7]  ;;  %v1436_v12 = vunpack.c.l.b16 %v1413_v8  ;;  %v8858_v8 = vld [vmem:[#allocation5 + $0x90] sm:$0xff]  ;;  %v8897_v4 = vld [vmem:[#allocation7 + $0xc4] sm:$0xf] }
 0x179   : > { %v1674_v10 = vld [vmem:[#allocation2 + $0x24] sm:$0xf]  ;;  %v1521_v13 = vunpack.c.l.b16 %v1396_v9  ;;  %2067 = vmatpush.bf16.msrb.mxu3 %v8842_v6  ;;  %v8841_v9 = vld [vmem:[#allocation5 + $0x10] sm:$0xff] }
 0x17a   : > { %v1697_v15 = vunpack.c.l.b16 %v1674_v10  ;;  %v1438_v17 = vpack.c.b16 %v1436_v12, %v1436_v12  ;;  %v1607_v18 = vpack.c.b16 %v1436_v12, %v1435_v2  ;;  %v8860_v2 = vld [vmem:[#allocation5 + $0xa0] sm:$0xff]  ;;  %v8904_v12 = vld [vmem:[#allocation7 + $0xf4] sm:$0xf0] }
 0x17b   : > { %v1522_v19 = vpack.c.b16 %v1521_v13, %v1521_v13  ;;  %2169 = vmatpush.bf16.msra.mxu0 %v8860_v2  ;;  %1985 = vmatpush.bf16.msrb.mxu2 %v8848_v7  ;;  %v8847_v10 = vld [vmem:[#allocation5 + $0x40] sm:$0xff]  ;;  %v7299_v2 = vor.u32 %v8882_v63, %v7298_v62  ;;  %v10084_v7 = vshrl.u32 %v1255_v1, 7  ;;  %v7452_v62 = vld [vmem:[#allocation7 + $0x1f8] sm:$0xf0] }
 0x17c   : > { %v1699_v20 = vpack.c.b16 %v1697_v15, %v1696_v11  ;;  %1665 = vmatmul.bf16.vlgmr.msra.gmra.mxu3 %v1607_v18  ;;  %v1449_v26 = vshrl.u32 %v1438_v17, 16  ;;  %v1452_v27 = vshll.u32 %v1438_v17, 16  ;;  %v1799_v49 = vpack.c.b16 %v1697_v15, %v1798_v48  ;;  %v7258_v11 = vld [vmem:[#allocation7 + $0xf0] sm:$0xf]  ;;  %v8887_v15 = vld [vmem:[#allocation7 + $0x74] sm:$0xf] }
 0x17d   : > { %v1525_v24 = vrot.slane %v1522_v19, 3  ;;  %2068 = vmatpush.bf16.msrb.mxu3 %v8841_v9  ;;  %v7259_v13 = vor.u32 %v8904_v12, %v7258_v11  ;;  %v8840_v17 = vld [vmem:[#allocation5 + $0x8] sm:$0xff]  ;;  %v7327_v18 = vor.u32 %v8887_v15, %v7324_v16  ;;  %v7250_v19 = vld [vmem:[#allocation7 + $0xe0] sm:$0xf]  ;;  %v7290_v15 = vld [vmem:[#allocation7 + $0x30] sm:$0xf] }
 0x17e   : > { %v1705_v28 = vshll.u32 %v1699_v20, 16  ;;  %v1451_v30 = vrot.slane %v1449_v26, 3  ;;  %v1454_v31 = vrot.slane %v1452_v27, 4  ;;  %v1703_v32 = vshrl.u32 %v1699_v20, 16  ;;  %v8902_v20 = vld [vmem:[#allocation7 + $0xe4] sm:$0xf0] }
 0x17f   : > { %v1526_v29 = vsel %vm1523_vm0, %v1524_v21, %v1525_v24  ;;  %v1801_v51 = vrot.slane %v1799_v49, 1  ;;  %2170 = vmatpush.bf16.msra.mxu0 %v8859_v5  ;;  %1986 = vmatpush.bf16.msrb.mxu2 %v8847_v10  ;;  %v7251_v21 = vor.u32 %v8902_v20, %v7250_v19  ;;  %v8888_v24 = vld [vmem:[#allocation7 + $0x74] sm:$0xf0]  ;;  %v8885_v27 = vld [vmem:[#allocation7 + $0x64] sm:$0xf] }
 0x180   : > { %1584 = vmatmul.bf16.vlgmr.msra.gmra.mxu2 %v1526_v29  ;;  %v1707_v33 = vrot.slane %v1705_v28, 1  ;;  %v1455_v36 = vor.u32 %v1454_v31, %v1451_v30  ;;  %v7323_v26 = vor.u32 %v8888_v24, %v7322_v23  ;;  %v7316_v28 = vld [vmem:[#allocation7 + $0x68] sm:$0xf0]  ;;  %v8903_v30 = vld [vmem:[#allocation7 + $0xf4] sm:$0xf] }
 0x181   : > { %v1803_v54 = vsel %vm1800_vm3, %v1801_v51, %v1802_v52  ;;  %2069 = vmatpush.bf16.msrb.mxu3 %v8840_v17  ;;  %v7319_v29 = vor.u32 %v8885_v27, %v7316_v28  ;;  %v7260_v31 = vld [vmem:[#allocation7 + $0xf8] sm:$0xf0]  ;;  %v7306_v49 = vld [vmem:[#allocation7 + $0x50] sm:$0xf]  ;;  %v8881_v51 = vld [vmem:[#allocation7 + $0x44] sm:$0xf] }
 0x182   : > { %v1708_v38 = vor.u32 %v1707_v33, %v1703_v32  ;;  %v1456_v39 = vsel %vm1439_vm1, %v1447_v35, %v1455_v36  ;;  %v7242_v32 = vld [vmem:[#allocation7 + $0xd0] sm:$0xf]  ;;  %v7263_v33 = vor.u32 %v8903_v30, %v7260_v31  ;;  %v7314_v36 = vld [vmem:[#allocation7 + $0x60] sm:$0xf]  ;;  %v7236_v5 = vld [vmem:[#allocation7 + $0xc8] sm:$0xf0] }
 0x183   : > { %1514 = vmatmul.bf16.vlgmr.msra.gmra.mxu1 %v1456_v39  ;;  %2171 = vmatpush.bf16.msra.mxu0 %v8858_v8  ;;  %v7295_v8 = vor.u32 %v8879_v0, %v7292_v3  ;;  %v7239_v9 = vor.u32 %v8897_v4, %v7236_v5  ;;  %v7218_v10 = vld [vmem:[#allocation7 + $0xa0] sm:$0xf]  ;;  %v8894_v11 = vld [vmem:[#allocation7 + $0xa4] sm:$0xf0]  ;;  %v8880_v16 = vld [vmem:[#allocation7 + $0x34] sm:$0xf0] }
 0x184   : > { %v1713_v40 = vsel %vm1701_vm2, %v1708_v38, %v1712_v34  ;;  %2270 = vmatpush.bf16.msra.mxu1 %v8872_v37  ;;  %2453 = vmatpush.bf16.msra.mxu2 %v7259_v13  ;;  %v8900_v34 = vld [vmem:[#allocation7 + $0xd4] sm:$0xf0]  ;;  %v8886_v37 = vld [vmem:[#allocation7 + $0x64] sm:$0xf0]  ;;  %v8883_v38 = vld [vmem:[#allocation7 + $0x54] sm:$0xf]  ;;  %v7291_v19 = vor.u32 %v8880_v16, %v7290_v15 }
 0x185   : > { %1771 = vmatmul.bf16.vlgmr.msrb.gmra.mxu0 %v1713_v40  ;;  %2070 = vmatpush.bf16.msrb.mxu3 %v8839_v25  ;;  %v7243_v35 = vor.u32 %v8900_v34, %v7242_v32  ;;  %v7315_v39 = vor.u32 %v8886_v37, %v7314_v36  ;;  %v7308_v40 = vld [vmem:[#allocation7 + $0x58] sm:$0xf0]  ;;  %v8877_v17 = vld [vmem:[#allocation7 + $0x24] sm:$0xf]  ;;  %v7284_v20 = vld [vmem:[#allocation7 + $0x28] sm:$0xf0] }
 0x186   : > { %v7228_v23 = vld [vmem:[#allocation7 + $0xb8] sm:$0xf0]  ;;  %v7210_v24 = vld [vmem:[#allocation7 + $0x90] sm:$0xf]  ;;  %v8892_v25 = vld [vmem:[#allocation7 + $0x94] sm:$0xf0] }
 0x187   : > { %2172 = vmatpush.bf16.msra.mxu0 %v8857_v14  ;;  %v7219_v14 = vor.u32 %v8894_v11, %v7218_v10  ;;  %v9717_v30 = vmov 0.0   ;;  %v7211_v32 = vor.u32 %v8892_v25, %v7210_v24  ;;  %v8878_v34 = vld [vmem:[#allocation7 + $0x24] sm:$0xf0]  ;;  %v8875_v36 = vld [vmem:[#allocation7 + $0x14] sm:$0xf] }
 0x188   : > { %2271 = vmatpush.bf16.msra.mxu1 %v8871_v43  ;;  %2454 = vmatpush.bf16.msra.mxu2 %v7251_v21  ;;  %v7311_v43 = vor.u32 %v8883_v38, %v7308_v40  ;;  %v8895_v21 = vld [vmem:[#allocation7 + $0xb4] sm:$0xf]  ;;  %v7276_v37 = vld [vmem:[#allocation7 + $0x18] sm:$0xf0]  ;;  %v8893_v38 = vld [vmem:[#allocation7 + $0xa4] sm:$0xf] }
 0x189   : > { %2467 = vmatpush.bf16.msra.mxu3 %v7263_v33  ;;  %v7231_v27 = vor.u32 %v8895_v21, %v7228_v23  ;;  %v7282_v33 = vld [vmem:[#allocation7 + $0x20] sm:$0xf]  ;;  %v7220_v40 = vld [vmem:[#allocation7 + $0xa8] sm:$0xf0]  ;;  %v8874_v3 = vld [vmem:[#allocation7 + $0x4] sm:$0xf0] }
 0x18a   : > { %v8933_v11 = vld [vmem:[#allocation7 + $0x1e4] sm:$0xf]  ;;  %v7436_v21 = vld [vmem:[#allocation7 + $0x1d8] sm:$0xf0]  ;;  %v9387_v25 = vld [vmem:[%s10427_s0] ss:$0 sm:$0xff] }
 0x18b   : > { %2173 = vmatpush.bf16.msra.mxu0 %v8856_v22  ;;  %v7287_v22 = vor.u32 %v8877_v17, %v7284_v20  ;;  %v8931_v20 = vld [vmem:[#allocation7 + $0x1d4] sm:$0xf]  ;;  %s10440_s0 = sld [smem:[#allocation37_spill]] }
 0x18c   : > { %2272 = vmatpush.bf16.msra.mxu1 %v8870_v47  ;;  %2455 = vmatpush.bf16.msra.mxu2 %v7243_v35  ;;  %v7235_v47 = vor.u32 %v8898_v46, %v7234_v45  ;;  %v7283_v35 = vor.u32 %v8878_v34, %v7282_v33  ;;  %v9385_v45 = vld [vmem:[%s9761_s3] ss:$0 sm:$0xff]  ;;  %v7439_v23 = vor.u32 %v8931_v20, %v7436_v21  ;;  %v2079_v34 = vld [vmem:[#allocation2 + $0x30] sm:$0x1] }
 0x18d   : > { %2468 = vmatpush.bf16.msra.mxu3 %v7255_v44  ;;  %v9386_v46 = vld [vmem:[%s10426_s1] ss:$0 sm:$0xff]  ;;  %s10439_s1 = sld [smem:[#allocation36_spill]] }
 0x18e   : > { %v8936_v20 = vld [vmem:[#allocation7 + $0x1f4] sm:$0xf0] }
 0x18f   : > { %2568 = vmatpush.bf16.msrb.mxu0 %v7323_v26 }
 0x190   : > { %2273 = vmatpush.bf16.msra.mxu1 %v8869_v50  ;;  %v8884_v50 = vld [vmem:[#allocation7 + $0x54] sm:$0xf0]  ;;  %2456 = vmatpush.bf16.msra.mxu2 %v7235_v47  ;;  %v7223_v47 = vor.u32 %v8893_v38, %v7220_v40 }
 0x191   : > { %v7307_v52 = vor.u32 %v8884_v50, %v7306_v49  ;;  %v7274_v50 = vld [vmem:[#allocation7 + $0x10] sm:$0xf] }
 0x193   : > { %1861 = vmatmul.bf16.vlgmr.msrb.gmra.mxu1 %v1803_v54  ;;  %2569 = vmatpush.bf16.msrb.mxu0 %v7315_v39  ;;  %v8899_v54 = vld [vmem:[#allocation7 + $0xd4] sm:$0xf]  ;;  %v7279_v39 = vor.u32 %v8875_v36, %v7276_v37  ;;  %v1889_v37 = vld [vmem:[#allocation2 + $0xc] sm:$0x8] }
 0x194   : > { %2274 = vmatpush.bf16.msra.mxu1 %v8868_v53  ;;  %v7300_v53 = vld [vmem:[#allocation7 + $0x48] sm:$0xf0]  ;;  %2457 = vmatpush.bf16.msra.mxu2 %v7227_v61  ;;  %v8935_v61 = vld [vmem:[#allocation7 + $0x1f4] sm:$0xf] }
 0x195   : > { %v7455_v1 = vor.u32 %v8935_v61, %v7452_v62 }
 0x197   : > { %2570 = vmatpush.bf16.msrb.mxu0 %v7307_v52  ;;  %v8873_v52 = vld [vmem:[#allocation7 + $0x4] sm:$0xf] }
 0x198   : > { %2275 = vmatpush.bf16.msra.mxu1 %v8867_v55  ;;  %v7244_v55 = vld [vmem:[#allocation7 + $0xd8] sm:$0xf0]  ;;  %2458 = vmatpush.bf16.msra.mxu2 %v7219_v14  ;;  %v7444_v14 = vld [vmem:[#allocation7 + $0x1e8] sm:$0xf0] }
 0x199   : > { %v7447_v16 = vor.u32 %v8933_v11, %v7444_v14  ;;  %v8921_v11 = vld [vmem:[#allocation7 + $0x184] sm:$0xf] }
 0x19b   : > { %2571 = vmatpush.bf16.msrb.mxu0 %v7299_v2  ;;  %v7266_v2 = vld [vmem:[#allocation7] sm:$0xf] }
 0x19c   : > { %2276 = vmatpush.bf16.msra.mxu1 %v8866_v56  ;;  %2459 = vmatpush.bf16.msra.mxu2 %v7211_v32  ;;  %v7267_v5 = vor.u32 %v8874_v3, %v7266_v2 }
 0x19f   : > { %2572 = vmatpush.bf16.msrb.mxu0 %v7291_v19 }
 0x1a0   : > { %2277 = vmatpush.bf16.msra.mxu1 %v8865_v57  ;;  %v7303_v57 = vor.u32 %v8881_v51, %v7300_v53  ;;  %v8876_v51 = vld [vmem:[#allocation7 + $0x14] sm:$0xf0] }
 0x1a3   : > { %2278 = vmatmul.bf16.vlgmr.msra.gmra.mxu1 %v8864_v58  ;;  %v7247_v58 = vor.u32 %v8899_v54, %v7244_v55  ;;  %2573 = vmatpush.bf16.msrb.mxu0 %v7283_v35  ;;  %v7275_v54 = vor.u32 %v8876_v51, %v7274_v50  ;;  %v7268_v55 = vld [vmem:[#allocation7 + $0x8] sm:$0xf0] }
 0x1a4   : > { %2582 = vmatpush.bf16.msrb.mxu1 %v7327_v18  ;;  %v1262_v18 = vand.u32 15, %v10084_v7  ;;  %v7271_v59 = vor.u32 %v8873_v52, %v7268_v55  ;;  %v7412_v7 = vld [vmem:[#allocation7 + $0x1a8] sm:$0xf0] }
 0x1a5   : > { %2469 = vmatpush.bf16.msra.mxu3 %v7247_v58 }
 0x1a6   : > { %vm3735_vm4 = vcmp.lt.s32.totalorder %v1262_v18, 2  ;;  %vm2298_vm5 = vcmp.lt.s32.totalorder %v1262_v18, 4 }
 0x1a7   : > { %v10090_v31 = vsel %vm3735_vm4, 1.0, %v9717_v30  ;;  %2574 = vmatpush.bf16.msrb.mxu0 %v7275_v54 }
 0x1a8   : > { %2583 = vmatpush.bf16.msrb.mxu1 %v7319_v29 }
 0x1a9   : > { %2470 = vmatpush.bf16.msra.mxu3 %v7239_v9 }
 0x1ab   : > { %2575 = vmatpush.bf16.msrb.mxu0 %v7267_v5 }
 0x1ac   : > { %2584 = vmatpush.bf16.msrb.mxu1 %v7311_v43 }
 0x1ad   : > { %2471 = vmatpush.bf16.msra.mxu3 %v7231_v27  ;;  %v7428_v27 = vld [vmem:[#allocation7 + $0x1c8] sm:$0xf0] }
 0x1b0   : > { %2585 = vmatpush.bf16.msrb.mxu1 %v7303_v57  ;;  %v7212_v57 = vld [vmem:[#allocation7 + $0x98] sm:$0xf0] }
 0x1b1   : > { %2472 = vmatpush.bf16.msra.mxu3 %v7223_v47 }
 0x1b4   : > { %2586 = vmatpush.bf16.msrb.mxu1 %v7295_v8  ;;  %v7204_v8 = vld [vmem:[#allocation7 + $0x88] sm:$0xf0] }
 0x1b8   : > { %2587 = vmatpush.bf16.msrb.mxu1 %v7287_v22 }
 0x1bc   : > { %2588 = vmatpush.bf16.msrb.mxu1 %v7279_v39  ;;  %v8927_v39 = vld [vmem:[#allocation7 + $0x1b4] sm:$0xf] }
 0x1c0   : > { %2589 = vmatpush.bf16.msrb.mxu1 %v7271_v59 }
 0x1c4   : > { %2862 = vmatpush.bf16.msra.mxu1 %v7455_v1 }
 0x1c8   : > { %2863 = vmatpush.bf16.msra.mxu1 %v7447_v16  ;;  %v7450_v16 = vld [vmem:[#allocation7 + $0x1f0] sm:$0xf] }
 0x1cc   : > { %2864 = vmatpush.bf16.msra.mxu1 %v7439_v23 }
 0x1ff   : > { %v1666_v12 = vpop.f32.mrf.mxu3 }
 0x200   : > { %v1515_v48 = vpop.f32.mrf.mxu1 }
 0x202   : > { %v1772_v28 = vpop.f32.mrf.mxu0 }
 0x203   : > { %v1585_v56 = vpop.f32.mrf.mxu2 }
 0x204   : > { %v1586_v6 = vadd.f32 %v1585_v56, %v1515_v48  ;;  %v7203_v48 = vor.u32 %v8890_v42, %v7202_v41  ;;  %v8891_v56 = vld [vmem:[#allocation7 + $0x94] sm:$0xf]  ;;  %v2102_v42 = vunpack.c.l.b16 %v2079_v34 }
 0x205   : > { %v7215_v60 = vor.u32 %v8891_v56, %v7212_v57  ;;  %v7386_v56 = vld [vmem:[#allocation7 + $0x170] sm:$0xf] }
 0x206   : > { %v1671_v26 = vadd.f32 %v1666_v12, %v1586_v6  ;;  %2460 = vmatpush.bf16.msra.mxu2 %v7203_v48  ;;  %v8889_v6 = vld [vmem:[#allocation7 + $0x84] sm:$0xf]  ;;  %v2104_v50 = vpack.c.b16 %v2102_v42, %v2102_v42  ;;  %v7451_v42 = vor.u32 %v8936_v20, %v7450_v16 }
 0x207   : > { %v1668_v58 = vpop.f32.mrf.mxu3  ;;  %2473 = vmatpush.bf16.msra.mxu3 %v7215_v60  ;;  %v7207_v10 = vor.u32 %v8889_v6, %v7204_v8  ;;  %v8920_v60 = vld [vmem:[#allocation7 + $0x174] sm:$0xf0]  ;;  %v2310_v6 = vld [vmem:[#allocation2 + $0xc] sm:$0x8] }
 0x208   : > { %v1517_v13 = vpop.f32.mrf.mxu1  ;;  %v1777_v44 = vadd.f32 %v1772_v28, %v1671_v26  ;;  %v8929_v26 = vld [vmem:[#allocation7 + $0x1c4] sm:$0xf]  ;;  %v2113_v61 = vshll.u32 %v2104_v50, 16  ;;  %v7387_v8 = vor.u32 %v8920_v60, %v7386_v56  ;;  %v2350_v23 = vunpack.c.l.b16 %v2310_v6  ;;  %v7434_v56 = vld [vmem:[#allocation7 + $0x1d0] sm:$0xf] }
 0x209   : > { %v7431_v32 = vor.u32 %v8929_v26, %v7428_v27  ;;  %v8917_v50 = vld [vmem:[#allocation7 + $0x164] sm:$0xf]  ;;  %v8915_v60 = vld [vmem:[#allocation7 + $0x154] sm:$0xf] }
 0x20a   : > { %v1774_v9 = vpop.f32.mrf.mxu0 }
 0x20b   : > { %v1587_v29 = vpop.f32.mrf.mxu2  ;;  %2474 = vmatpush.bf16.msra.mxu3 %v7207_v10  ;;  %2865 = vmatpush.bf16.msra.mxu1 %v7431_v32  ;;  %v8918_v10 = vld [vmem:[#allocation7 + $0x164] sm:$0xf0] }
 0x20c   : > { %v1588_v43 = vadd.f32 %v1587_v29, %v1517_v13  ;;  %v9388_v29 = vld [vmem:[%s10428_s28] ss:$0 sm:$0xff]  ;;  %s10441_s28 = sld [smem:[#allocation38_spill]] }
 0x20e   : > { %v1672_v63 = vadd.f32 %v1668_v58, %v1588_v43  ;;  %v7420_v43 = vld [vmem:[#allocation7 + $0x1b8] sm:$0xf0] }
 0x20f   : > { %v7423_v47 = vor.u32 %v8927_v39, %v7420_v43  ;;  %v7404_v58 = vld [vmem:[#allocation7 + $0x198] sm:$0xf0]  ;;  %v8916_v39 = vld [vmem:[#allocation7 + $0x154] sm:$0xf0] }
 0x210   : > { %v1862_v49 = vpop.f32.mrf.mxu1  ;;  %v1778_v13 = vadd.f32 %v1774_v9, %v1672_v63  ;;  %v7378_v9 = vld [vmem:[#allocation7 + $0x160] sm:$0xf] }
 0x211   : > { %v1867_v53 = vadd.f32 %v1862_v49, %v1777_v44  ;;  %v10099_v44 = vsel %vm2298_vm5, 1.0, %v9717_v30  ;;  %2866 = vmatpush.bf16.msra.mxu1 %v7423_v47  ;;  %v8925_v49 = vld [vmem:[#allocation7 + $0x1a4] sm:$0xf]  ;;  %v8923_v30 = vld [vmem:[#allocation7 + $0x194] sm:$0xf]  ;;  %v7379_v32 = vor.u32 %v8918_v10, %v7378_v9 }
 0x212   : > { %v7407_v62 = vor.u32 %v8923_v30, %v7404_v58  ;;  %v7442_v47 = vld [vmem:[#allocation7 + $0x1e0] sm:$0xf] }
 0x213   : > { %v1873_v0 = vmul.f32 %v9385_v45, %v1867_v53  ;;  %v7415_v53 = vor.u32 %v8925_v49, %v7412_v7 }
 0x215   : > { %v1879_v4 = vadd.f32 %v9386_v46, %v1873_v0  ;;  %2867 = vmatpush.bf16.msra.mxu1 %v7415_v53  ;;  %v7362_v53 = vld [vmem:[#allocation7 + $0x140] sm:$0xf] }
 0x217   : > { %v1881_v12 = vmax.f32 %v1879_v4, 0.0 }
 0x218   : > { %v1864_v15 = vpop.f32.mrf.mxu1 }
 0x219   : > { %v1885_v17 = vpack.c.bf16 %v1881_v12, %v1881_v12  ;;  %v1868_v19 = vadd.f32 %v1864_v15, %v1778_v13  ;;  %2868 = vmatpush.bf16.msra.mxu1 %v7407_v62  ;;  %v2115_v15 = vrot.slane %v2113_v61, 1  ;;  %v7372_v61 = vld [vmem:[#allocation7 + $0x158] sm:$0xf0] }
 0x21a   : > { %v7375_v10 = vor.u32 %v8915_v60, %v7372_v61  ;;  %v7514_v60 = vld [vmem:[#allocation7 + $0x270] sm:$0xf]  ;;  %v8952_v61 = vld [vmem:[#allocation7 + $0x274] sm:$0xf0] }
 0x21b   : > { %1887 = vst [vmem:[#allocation2 + $0x18] sm:$0xf] %v1885_v17  ;;  %v1874_v22 = vmul.f32 %v9385_v45, %v1868_v19  ;;  %v7396_v17 = vld [vmem:[#allocation7 + $0x188] sm:$0xf0] }
 0x21d   : > { %v1880_v24 = vadd.f32 %v9386_v46, %v1874_v22  ;;  %v1994_v46 = vunpack.c.l.b16 %v1889_v37  ;;  %v8919_v22 = vld [vmem:[#allocation7 + $0x174] sm:$0xf] }
 0x21f   : > { %v1882_v28 = vmax.f32 %v1880_v24, 0.0  ;;  %v7399_v24 = vor.u32 %v8921_v11, %v7396_v17  ;;  %v8930_v11 = vld [vmem:[#allocation7 + $0x1c4] sm:$0xf0] }
 0x220   : > { %v2279_v33 = vpop.f32.mrf.mxu1 }
 0x221   : > { %v1884_v35 = vmul.f32 0.0, %v1882_v28  ;;  %v2288_v36 = vmul.f32 %v9387_v25, %v2279_v33  ;;  %2869 = vmatpush.bf16.msra.mxu1 %v7399_v24  ;;  %v7346_v24 = vld [vmem:[#allocation7 + $0x120] sm:$0xf] }
 0x222   : > { %v1890_v38 = vld [vmem:[#allocation2 + $0x18] sm:$0xf] }
 0x223   : > { %v1886_v40 = vpack.c.bf16 %v1884_v35, %v1884_v35  ;;  %v2294_v41 = vadd.f32 %v9388_v29, %v2288_v36  ;;  %v1927_v45 = vunpack.c.l.b16 %v1890_v38  ;;  %v7129_v57 = vld [vmem:[#allocation2 + $0x18] sm:$0xf] }
 0x224   : > { %v7370_v35 = vld [vmem:[#allocation7 + $0x150] sm:$0xf] }
 0x225   : > { %1888 = vst [vmem:[#allocation2 + $0x24] sm:$0xf] %v1886_v40  ;;  %v2296_v48 = vmax.f32 %v2294_v41, 0.0  ;;  %v1995_v52 = vpack.c.b16 %v1927_v45, %v1994_v46 }
 0x227   : > { %v2304_v18 = vmul.f32 %v10099_v44, %v2296_v48  ;;  %v1998_v1 = vshrl.u32 %v1995_v52, 16  ;;  %v2001_v5 = vshll.u32 %v1995_v52, 16  ;;  %v8934_v48 = vld [vmem:[#allocation7 + $0x1e4] sm:$0xf0] }
 0x228   : > { %v2281_v51 = vpop.f32.mrf.mxu1 }
 0x229   : > { %v2306_v54 = vpack.c.bf16 %v2304_v18, %v2304_v18  ;;  %v2289_v55 = vmul.f32 %v9387_v25, %v2281_v51  ;;  %v2000_v21 = vrot.slane %v1998_v1, 3  ;;  %v2003_v26 = vrot.slane %v2001_v5, 4  ;;  %v7380_v51 = vld [vmem:[#allocation7 + $0x168] sm:$0xf0]  ;;  %v8912_v5 = vld [vmem:[#allocation7 + $0x134] sm:$0xf0] }
 0x22a   : > { %v7371_v18 = vor.u32 %v8916_v39, %v7370_v35  ;;  %v7418_v39 = vld [vmem:[#allocation7 + $0x1b0] sm:$0xf] }
 0x22b   : > { %v2295_v59 = vadd.f32 %v9388_v29, %v2289_v55  ;;  %2308 = vst [vmem:[#allocation2 + $0x18] sm:$0xf] %v2306_v54  ;;  %v7388_v29 = vld [vmem:[#allocation7 + $0x178] sm:$0xf0]  ;;  %v2004_v43 = vor.u32 %v2003_v26, %v2000_v21  ;;  %v8914_v54 = vld [vmem:[#allocation7 + $0x144] sm:$0xf0]  ;;  %v7443_v55 = vor.u32 %v8934_v48, %v7442_v47 }
 0x22c   : > { %v1891_v63 = vld [vmem:[#allocation2 + $0x24] sm:$0xf]  ;;  %v7391_v46 = vor.u32 %v8919_v22, %v7388_v29  ;;  %v2729_v21 = vld [vmem:[#allocation2 + $0x30] sm:$0x1]  ;;  %v7338_v48 = vld [vmem:[#allocation7 + $0x110] sm:$0xf] }
 0x22d   : > { %v8855_v0 = vld [vmem:[#allocation2 + $0x20] sm:$0xf0]  ;;  %v2297_v2 = vmax.f32 %v2295_v59, 0.0  ;;  %v1928_v3 = vunpack.c.l.b16 %v1891_v63  ;;  %v7383_v59 = vor.u32 %v8917_v50, %v7380_v51  ;;  %v7363_v63 = vor.u32 %v8914_v54, %v7362_v53  ;;  %v8910_v26 = vld [vmem:[#allocation7 + $0x124] sm:$0xf0] }
 0x22e   : > { %v7130_v4 = vor.u32 %v8855_v0, %v7129_v57  ;;  %v8932_v57 = vld [vmem:[#allocation7 + $0x1d4] sm:$0xf0]  ;;  %v7410_v51 = vld [vmem:[#allocation7 + $0x1a0] sm:$0xf] }
 0x22f   : > { %v2305_v12 = vmul.f32 0.0, %v2297_v2  ;;  %v1929_v13 = vpack.c.b16 %v1928_v3, %v1927_v45  ;;  %v1996_v14 = vpack.c.b16 %v1928_v3, %v1928_v3  ;;  %v7435_v3 = vor.u32 %v8932_v57, %v7434_v56  ;;  %v8909_v56 = vld [vmem:[#allocation7 + $0x124] sm:$0xf]  ;;  %v7348_v57 = vld [vmem:[#allocation7 + $0x128] sm:$0xf0] }
 0x230   : > { %v2108_v19 = vshll.u32 %v7130_v4, 16  ;;  %v2106_v33 = vshrl.u32 %v7130_v4, 16  ;;  %v7354_v4 = vld [vmem:[#allocation7 + $0x130] sm:$0xf] }
 0x231   : > { %v2307_v25 = vpack.c.bf16 %v2305_v12, %v2305_v12  ;;  %1987 = vmatmul.bf16.vlgmr.msrb.gmra.mxu2 %v1929_v13  ;;  %v2006_v27 = vshrl.u32 %v1996_v14, 16  ;;  %v2009_v28 = vshll.u32 %v1996_v14, 16  ;;  %v8913_v12 = vld [vmem:[#allocation7 + $0x144] sm:$0xf] }
 0x232   : > { %2695 = vmatpush.bf16.msrb.mxu2 %v7387_v8  ;;  %v2110_v34 = vrot.slane %v2108_v19, 1  ;;  %v10102_v36 = vld [vmem:[#allocation2 + $0x18] sm:$0xf]  ;;  %v7426_v8 = vld [vmem:[#allocation7 + $0x1c0] sm:$0xf] }
 0x233   : > { %2309 = vst [vmem:[#allocation2 + $0x24] sm:$0xf] %v2307_v25  ;;  %v2008_v37 = vrot.slane %v2006_v27, 3  ;;  %v2011_v38 = vrot.slane %v2009_v28, 4  ;;  %v2351_v40 = vunpack.c.l.b16 %v10102_v36  ;;  %v2727_v62 = vld [vmem:[#allocation2 + $0x18] sm:$0xf]  ;;  %v7427_v29 = vor.u32 %v8930_v11, %v7426_v8 }
 0x234   : > { %v2111_v41 = vor.u32 %v2110_v34, %v2106_v33  ;;  %v7364_v19 = vld [vmem:[#allocation7 + $0x148] sm:$0xf0]  ;;  %v2752_v34 = vunpack.c.l.b16 %v2729_v21  ;;  %v7340_v8 = vld [vmem:[#allocation7 + $0x118] sm:$0xf0] }
 0x235   : > { %v2012_v45 = vor.u32 %v2011_v38, %v2008_v37  ;;  %v2353_v49 = vpack.c.b16 %v2351_v40, %v2350_v23  ;;  %v7355_v23 = vor.u32 %v8912_v5, %v7354_v4  ;;  %v7332_v21 = vld [vmem:[#allocation7 + $0x108] sm:$0xf0] }
 0x236   : > { %2696 = vmatpush.bf16.msrb.mxu2 %v7379_v32  ;;  %v2116_v7 = vsel %vm1701_vm2, %v2111_v41, %v2115_v15  ;;  %v2750_v15 = vunpack.c.l.b16 %v2727_v62  ;;  %v7367_v32 = vor.u32 %v8913_v12, %v7364_v19  ;;  %v8928_v41 = vld [vmem:[#allocation7 + $0x1b4] sm:$0xf0]  ;;  %v10120_v53 = vpack.c.b16 %v2752_v34, %v2752_v34  ;;  %v7402_v62 = vld [vmem:[#allocation7 + $0x190] sm:$0xf]  ;;  %v7506_v12 = vld [vmem:[#allocation7 + $0x260] sm:$0xf] }
 0x237   : > { %2174 = vmatmul.bf16.vlgmr.msra.gmra.mxu0 %v2116_v7  ;;  %v2013_v52 = vsel %vm1439_vm1, %v2004_v43, %v2012_v45  ;;  %v2356_v30 = vshrl.u32 %v2353_v49, 16  ;;  %v2359_v58 = vshll.u32 %v2353_v49, 16  ;;  %v2484_v17 = vrot.slane %v2353_v49, 3  ;;  %v8911_v45 = vld [vmem:[#allocation7 + $0x134] sm:$0xf] }
 0x238   : > { %2848 = vmatpush.bf16.msra.mxu0 %v7451_v42  ;;  %2071 = vmatmul.bf16.vlgmr.msrb.gmra.mxu3 %v2013_v52  ;;  %v7347_v43 = vor.u32 %v8910_v26, %v7346_v24  ;;  %v8908_v49 = vld [vmem:[#allocation7 + $0x114] sm:$0xf0]  ;;  %v7419_v7 = vor.u32 %v8928_v41, %v7418_v39  ;;  %v8926_v52 = vld [vmem:[#allocation7 + $0x1a4] sm:$0xf0]  ;;  %v2763_v4 = vshll.u32 %v10120_v53, 16 }
 0x239   : > { %2709 = vmatpush.bf16.msrb.mxu3 %v7391_v46  ;;  %v2358_v13 = vrot.slane %v2356_v30, 3  ;;  %v2361_v14 = vrot.slane %v2359_v58, 4  ;;  %v7356_v46 = vld [vmem:[#allocation7 + $0x138] sm:$0xf0]  ;;  %v7330_v30 = vld [vmem:[#allocation7 + $0x100] sm:$0xf] }
 0x23a   : > { %2697 = vmatpush.bf16.msrb.mxu2 %v7371_v18  ;;  %v2312_v0 = vld [vmem:[#allocation2 + $0x24] sm:$0x7]  ;;  %v7359_v50 = vor.u32 %v8911_v45, %v7356_v46  ;;  %v8906_v58 = vld [vmem:[#allocation7 + $0x104] sm:$0xf0]  ;;  %v8951_v24 = vld [vmem:[#allocation7 + $0x274] sm:$0xf] }
 0x23b   : > { %v2329_v1 = vld [vmem:[#allocation2 + $0x24] sm:$0xf]  ;;  %v2482_v6 = vunpack.c.l.b16 %v2312_v0  ;;  %v2362_v33 = vor.u32 %v2361_v14, %v2358_v13  ;;  %v8924_v0 = vld [vmem:[#allocation7 + $0x194] sm:$0xf0]  ;;  %v7331_v5 = vor.u32 %v8906_v58, %v7330_v30  ;;  %v8950_v13 = vld [vmem:[#allocation7 + $0x264] sm:$0xf0] }
 0x23c   : > { %v10109_v2 = vld [vmem:[#allocation2 + $0x24] sm:$0xf]  ;;  %v10111_v9 = vunpack.c.l.b16 %v2329_v1  ;;  %2849 = vmatpush.bf16.msra.mxu0 %v7443_v55  ;;  %v7339_v55 = vor.u32 %v8908_v49, %v7338_v48  ;;  %v7403_v11 = vor.u32 %v8924_v0, %v7402_v62  ;;  %v8922_v19 = vld [vmem:[#allocation7 + $0x184] sm:$0xf0]  ;;  %v8949_v34 = vld [vmem:[#allocation7 + $0x264] sm:$0xf] }
 0x23d   : > { %2710 = vmatpush.bf16.msrb.mxu3 %v7383_v59  ;;  %v2483_v16 = vpack.c.b16 %v2482_v6, %v2482_v6  ;;  %v2751_v22 = vunpack.c.l.b16 %v10109_v2  ;;  %v7411_v59 = vor.u32 %v8926_v52, %v7410_v51  ;;  %v8907_v6 = vld [vmem:[#allocation7 + $0x114] sm:$0xf]  ;;  %v7490_v39 = vld [vmem:[#allocation7 + $0x240] sm:$0xf]  ;;  %v8946_v41 = vld [vmem:[#allocation7 + $0x244] sm:$0xf0] }
 0x23e   : > { %v2354_v20 = vpack.c.b16 %v10111_v9, %v10111_v9  ;;  %2698 = vmatpush.bf16.msrb.mxu2 %v7363_v63  ;;  %v7351_v63 = vor.u32 %v8909_v56, %v7348_v57  ;;  %v7343_v14 = vor.u32 %v8907_v6, %v7340_v8  ;;  %v7500_v45 = vld [vmem:[#allocation7 + $0x258] sm:$0xf0]  ;;  %v7491_v46 = vor.u32 %v8946_v41, %v7490_v39  ;;  %v8944_v48 = vld [vmem:[#allocation7 + $0x234] sm:$0xf0]  ;;  %v8943_v51 = vld [vmem:[#allocation7 + $0x234] sm:$0xf] }
 0x23f   : > { %v2485_v25 = vrot.slane %v2483_v16, 3  ;;  %v2753_v42 = vpack.c.b16 %v2751_v22, %v2750_v15  ;;  %v2765_v16 = vrot.slane %v2763_v4, 1  ;;  %v7484_v52 = vld [vmem:[#allocation7 + $0x238] sm:$0xf0]  ;;  %v7466_v56 = vld [vmem:[#allocation7 + $0x210] sm:$0xf] }
 0x240   : > { %v2364_v27 = vshrl.u32 %v2354_v20, 16  ;;  %v2367_v28 = vshll.u32 %v2354_v20, 16  ;;  %2850 = vmatpush.bf16.msra.mxu0 %v7435_v3  ;;  %v8905_v20 = vld [vmem:[#allocation7 + $0x104] sm:$0xf]  ;;  %v8940_v57 = vld [vmem:[#allocation7 + $0x214] sm:$0xf0]  ;;  %v7487_v30 = vor.u32 %v8943_v51, %v7484_v52 }
 0x241   : > { %2711 = vmatpush.bf16.msrb.mxu3 %v7375_v10  ;;  %v2486_v35 = vsel %vm1523_vm0, %v2484_v17, %v2485_v25  ;;  %v2758_v54 = vshll.u32 %v2753_v42, 16  ;;  %v2756_v1 = vshrl.u32 %v2753_v42, 16  ;;  %v7515_v10 = vor.u32 %v8952_v61, %v7514_v60  ;;  %v7394_v17 = vld [vmem:[#allocation7 + $0x180] sm:$0xf]  ;;  %v7516_v25 = vld [vmem:[#allocation7 + $0x278] sm:$0xf0] }
 0x242   : > { %v2366_v37 = vrot.slane %v2364_v27, 3  ;;  %v2369_v38 = vrot.slane %v2367_v28, 4  ;;  %2699 = vmatpush.bf16.msrb.mxu2 %v7355_v23  ;;  %2590 = vmatmul.bf16.vlgmr.msrb.gmra.mxu1 %v2486_v35  ;;  %v7507_v23 = vor.u32 %v8950_v13, %v7506_v12  ;;  %v7395_v26 = vor.u32 %v8922_v19, %v7394_v17  ;;  %v7476_v60 = vld [vmem:[#allocation7 + $0x228] sm:$0xf0]  ;;  %v7458_v62 = vld [vmem:[#allocation7 + $0x200] sm:$0xf] }
 0x243   : > { %v2760_v3 = vrot.slane %v2758_v54, 1  ;;  %v7335_v28 = vor.u32 %v8905_v20, %v7332_v21  ;;  %v2880_v54 = vld [vmem:[#allocation2 + $0x18] sm:$0xe]  ;;  %v7467_v61 = vor.u32 %v8940_v57, %v7466_v56  ;;  %v7468_v4 = vld [vmem:[#allocation7 + $0x218] sm:$0xf0]  ;;  %v2902_v8 = vrot.slane %v10120_v53, 1 }
 0x244   : > { %v2370_v47 = vor.u32 %v2369_v38, %v2366_v37  ;;  %2851 = vmatpush.bf16.msra.mxu0 %v7427_v29  ;;  %v7498_v29 = vld [vmem:[#allocation7 + $0x250] sm:$0xf]  ;;  %v2613_v38 = vpack.c.b16 %v10111_v9, %v2351_v40  ;;  %v7474_v40 = vld [vmem:[#allocation7 + $0x220] sm:$0xf]  ;;  %v8942_v9 = vld [vmem:[#allocation7 + $0x224] sm:$0xf0]  ;;  %v2899_v58 = vunpack.c.l.b16 %v2880_v54 }
 0x245   : > { %2712 = vmatpush.bf16.msrb.mxu3 %v7367_v32  ;;  %v2761_v15 = vor.u32 %v2760_v3, %v2756_v1  ;;  %v8948_v32 = vld [vmem:[#allocation7 + $0x254] sm:$0xf0]  ;;  %v8939_v3 = vld [vmem:[#allocation7 + $0x214] sm:$0xf]  ;;  %v7460_v12 = vld [vmem:[#allocation7 + $0x208] sm:$0xf0] }
 0x246   : > { %v2371_v18 = vsel %vm1439_vm1, %v2362_v33, %v2370_v47  ;;  %2700 = vmatpush.bf16.msrb.mxu2 %v7347_v43  ;;  %v7519_v33 = vor.u32 %v8951_v24, %v7516_v25  ;;  %v7499_v37 = vor.u32 %v8948_v32, %v7498_v29  ;;  %v8947_v43 = vld [vmem:[#allocation7 + $0x254] sm:$0xf]  ;;  %v7482_v47 = vld [vmem:[#allocation7 + $0x230] sm:$0xf]  ;;  %v2900_v1 = vpack.c.b16 %v2751_v22, %v2899_v58  ;;  %v8983_v24 = vld [vmem:[%s10429_s16 + $0xf0] sm:$0xff] }
 0x247   : > { %2461 = vmatmul.bf16.vlgmr.msra.gmra.mxu2 %v2371_v18  ;;  %2576 = vmatmul.bf16.vlgmr.msrb.gmra.mxu0 %v2486_v35  ;;  %v2766_v27 = vsel %vm1701_vm2, %v2761_v15, %v2765_v16  ;;  %v7508_v35 = vld [vmem:[#allocation7 + $0x268] sm:$0xf0]  ;;  %v7503_v49 = vor.u32 %v8947_v43, %v7500_v45  ;;  %v7483_v36 = vor.u32 %v8944_v48, %v7482_v47  ;;  %v8976_v19 = vld [vmem:[%s10429_s16 + $0xb8] sm:$0xff]  ;;  %v8969_v51 = vld [vmem:[%s10429_s16 + $0x80] sm:$0xff] }
 0x248   : > { %2852 = vmatpush.bf16.msra.mxu0 %v7419_v7  ;;  %2475 = vmatmul.bf16.vlgmr.msra.gmra.mxu3 %v2371_v18  ;;  %v7511_v42 = vor.u32 %v8949_v34, %v7508_v35  ;;  %v8945_v7 = vld [vmem:[#allocation7 + $0x244] sm:$0xf]  ;;  %v7492_v18 = vld [vmem:[#allocation7 + $0x248] sm:$0xf0]  ;;  %v2901_v6 = vrot.slane %v2900_v1, 1  ;;  %v8984_v20 = vld [vmem:[%s10429_s16 + $0xf8] sm:$0xff] }
 0x249   : > { %2713 = vmatpush.bf16.msrb.mxu3 %v7359_v50  ;;  %v7495_v50 = vor.u32 %v8945_v7, %v7492_v18  ;;  %3237 = vmatpush.bf16.msrb.mxu1 %v8984_v20  ;;  %v8960_v25 = vld [vmem:[%s10429_s16 + $0x38] sm:$0xff]  ;;  %v8959_v29 = vld [vmem:[%s10429_s16 + $0x30] sm:$0xff]  ;;  %v8981_v34 = vld [vmem:[%s10429_s16 + $0xe0] sm:$0xff] }
 0x24a   : > { %2701 = vmatpush.bf16.msrb.mxu2 %v7339_v55  ;;  %v7475_v55 = vor.u32 %v8942_v9, %v7474_v40  ;;  %v2903_v13 = vsel %vm1800_vm3, %v2901_v6, %v2902_v8  ;;  %v8980_v39 = vld [vmem:[%s10429_s16 + $0xd8] sm:$0xff]  ;;  %v8971_v43 = vld [vmem:[%s10429_s16 + $0x90] sm:$0xff]  ;;  %v8970_v7 = vld [vmem:[%s10429_s16 + $0x88] sm:$0xff] }
 0x24b   : > { %v8979_v45 = vld [vmem:[%s10429_s16 + $0xd0] sm:$0xff]  ;;  %v8956_v48 = vld [vmem:[%s10429_s16 + $0x18] sm:$0xff]  ;;  %v8978_v18 = vld [vmem:[%s10429_s16 + $0xc8] sm:$0xff] }
 0x24c   : > { %2853 = vmatpush.bf16.msra.mxu0 %v7411_v59  ;;  %v8941_v59 = vld [vmem:[#allocation7 + $0x224] sm:$0xf]  ;;  %v8955_v40 = vld [vmem:[%s10429_s16 + $0x10] sm:$0xff]  ;;  %v8977_v52 = vld [vmem:[%s10429_s16 + $0xc0] sm:$0xff] }
 0x24d   : > { %2714 = vmatpush.bf16.msrb.mxu3 %v7351_v63  ;;  %v8938_v63 = vld [vmem:[#allocation7 + $0x204] sm:$0xf0]  ;;  %v7479_v0 = vor.u32 %v8941_v59, %v7476_v60  ;;  %3238 = vmatpush.bf16.msrb.mxu1 %v8983_v24  ;;  %v8966_v54 = vld [vmem:[%s10429_s16 + $0x68] sm:$0xff]  ;;  %v9002_v56 = vld [vmem:[%s10429_s16 + $0x178] sm:$0xff] }
 0x24e   : > { %2702 = vmatpush.bf16.msrb.mxu2 %v7331_v5  ;;  %v7459_v5 = vor.u32 %v8938_v63, %v7458_v62  ;;  %v8954_v57 = vld [vmem:[%s10429_s16 + $0x8] sm:$0xff]  ;;  %v8965_v58 = vld [vmem:[%s10429_s16 + $0x60] sm:$0xff]  ;;  %v8993_v59 = vld [vmem:[%s10429_s16 + $0x130] sm:$0xff] }
 0x24f   : > { %v9001_v60 = vld [vmem:[%s10429_s16 + $0x170] sm:$0xff]  ;;  %v8953_v62 = vld [vmem:[%s10429_s16] sm:$0xff]  ;;  %v8964_v63 = vld [vmem:[%s10429_s16 + $0x58] sm:$0xff] }
 0x250   : > { %2854 = vmatpush.bf16.msra.mxu0 %v7403_v11  ;;  %v8937_v11 = vld [vmem:[#allocation7 + $0x204] sm:$0xf]  ;;  %v8963_v8 = vld [vmem:[%s10429_s16 + $0x50] sm:$0xff]  ;;  %v8990_v24 = vld [vmem:[%s10429_s16 + $0x118] sm:$0xff] }
 0x251   : > { %2715 = vmatpush.bf16.msrb.mxu3 %v7343_v14  ;;  %v7463_v2 = vor.u32 %v8937_v11, %v7460_v12  ;;  %v8992_v1 = vld [vmem:[%s10429_s16 + $0x128] sm:$0xff]  ;;  %v8991_v12 = vld [vmem:[%s10429_s16 + $0x120] sm:$0xff] }
 0x252   : > { %2985 = vmatpush.bf16.msra.mxu2 %v7515_v10  ;;  %2870 = vmatmul.bf16.vlgmr.msra.gmra.mxu1 %v2766_v27  ;;  %v7471_v10 = vor.u32 %v8939_v3, %v7468_v4  ;;  %v9000_v3 = vld [vmem:[%s10429_s16 + $0x168] sm:$0xff] }
 0x254   : > { %2855 = vmatpush.bf16.msra.mxu0 %v7395_v26 }
 0x255   : > { %2716 = vmatpush.bf16.msrb.mxu3 %v7335_v28  ;;  %v8982_v28 = vld [vmem:[%s10429_s16 + $0xe8] sm:$0xff] }
 0x256   : > { %2986 = vmatpush.bf16.msra.mxu2 %v7507_v23  ;;  %v8975_v23 = vld [vmem:[%s10429_s16 + $0xb0] sm:$0xff]  ;;  %3239 = vmatpush.bf16.msrb.mxu1 %v8982_v28  ;;  %v9008_v28 = vld [vmem:[#allocation8 + $0x20] sm:$0xff] }
 0x257   : > { %2703 = vmatmul.bf16.vlgmr.msrb.gmra.mxu2 %v2613_v38  ;;  %2856 = vmatmul.bf16.vlgmr.msra.gmra.mxu0 %v2766_v27  ;;  %v8974_v27 = vld [vmem:[%s10429_s16 + $0xa8] sm:$0xff] }
 0x258   : > { %2717 = vmatmul.bf16.vlgmr.msrb.gmra.mxu3 %v2613_v38  ;;  %3223 = vmatpush.bf16.msrb.mxu0 %v8976_v19  ;;  %v8972_v38 = vld [vmem:[%s10429_s16 + $0x98] sm:$0xff] }
 0x259   : > { %2999 = vmatpush.bf16.msra.mxu3 %v7519_v33  ;;  %v8973_v33 = vld [vmem:[%s10429_s16 + $0xa0] sm:$0xff] }
 0x25a   : > { %2987 = vmatpush.bf16.msra.mxu2 %v7499_v37  ;;  %3240 = vmatpush.bf16.msrb.mxu1 %v8981_v34  ;;  %v8958_v37 = vld [vmem:[%s10429_s16 + $0x28] sm:$0xff] }
 0x25c   : > { %3224 = vmatpush.bf16.msrb.mxu0 %v8975_v23 }
 0x25d   : > { %3000 = vmatpush.bf16.msra.mxu3 %v7511_v42  ;;  %v8957_v42 = vld [vmem:[%s10429_s16 + $0x20] sm:$0xff] }
 0x25e   : > { %2988 = vmatpush.bf16.msra.mxu2 %v7491_v46  ;;  %3241 = vmatpush.bf16.msrb.mxu1 %v8980_v39  ;;  %v8968_v46 = vld [vmem:[%s10429_s16 + $0x78] sm:$0xff]  ;;  %v8997_v39 = vld [vmem:[%s10429_s16 + $0x150] sm:$0xff] }
 0x260   : > { %3225 = vmatpush.bf16.msrb.mxu0 %v8974_v27  ;;  %v10195_v27 = vld [vmem:[%s10431_s2] sm:$0x3]  ;;  %s10443_s2 = sld [smem:[#allocation40_spill]] }
 0x261   : > { %3001 = vmatpush.bf16.msra.mxu3 %v7503_v49 }
 0x262   : > { %2989 = vmatpush.bf16.msra.mxu2 %v7483_v36  ;;  %3242 = vmatpush.bf16.msrb.mxu1 %v8979_v45  ;;  %v8967_v36 = vld [vmem:[%s10429_s16 + $0x70] sm:$0xff]  ;;  %v3029_v45 = vperm.slane %v10195_v27, 0 }
 0x264   : > { %3226 = vmatpush.bf16.msrb.mxu0 %v8973_v33 }
 0x265   : > { %3002 = vmatpush.bf16.msra.mxu3 %v7495_v50 }
 0x266   : > { %2990 = vmatpush.bf16.msra.mxu2 %v7475_v55  ;;  %3243 = vmatpush.bf16.msrb.mxu1 %v8978_v18  ;;  %v8994_v55 = vld [vmem:[%s10429_s16 + $0x138] sm:$0xff]  ;;  %v9007_v18 = vld [vmem:[#allocation8 + $0x18] sm:$0xff] }
 0x268   : > { %3227 = vmatpush.bf16.msrb.mxu0 %v8972_v38  ;;  %v8989_v38 = vld [vmem:[%s10429_s16 + $0x110] sm:$0xff] }
 0x269   : > { %3003 = vmatpush.bf16.msra.mxu3 %v7487_v30 }
 0x26a   : > { %2991 = vmatpush.bf16.msra.mxu2 %v7467_v61  ;;  %3244 = vmatpush.bf16.msrb.mxu1 %v8977_v52 }
 0x26c   : > { %3228 = vmatpush.bf16.msrb.mxu0 %v8971_v43 }
 0x26d   : > { %3004 = vmatpush.bf16.msra.mxu3 %v7479_v0  ;;  %v9011_v0 = vld [vmem:[#allocation8 + $0x38] sm:$0xff] }
 0x26e   : > { %2992 = vmatpush.bf16.msra.mxu2 %v7459_v5  ;;  %3603 = vmatpush.bf16.msra.mxu1 %v9002_v56 }
 0x270   : > { %3229 = vmatpush.bf16.msrb.mxu0 %v8970_v7 }
 0x271   : > { %3005 = vmatpush.bf16.msra.mxu3 %v7471_v10  ;;  %2993 = vmatmul.bf16.vlgmr.msra.gmra.mxu2 %v2903_v13  ;;  %v9010_v10 = vld [vmem:[#allocation8 + $0x30] sm:$0xff] }
 0x272   : > { %3390 = vmatpush.bf16.msrb.mxu2 %v8960_v25  ;;  %3604 = vmatpush.bf16.msra.mxu1 %v9001_v60  ;;  %v8998_v25 = vld [vmem:[%s10429_s16 + $0x158] sm:$0xff] }
 0x274   : > { %3230 = vmatpush.bf16.msrb.mxu0 %v8969_v51  ;;  %v3030_v51 = vperm.slane %v10195_v27, 1 }
 0x275   : > { %3006 = vmatpush.bf16.msra.mxu3 %v7463_v2 }
 0x276   : > { %3391 = vmatpush.bf16.msrb.mxu2 %v8959_v29  ;;  %3605 = vmatpush.bf16.msra.mxu1 %v9000_v3  ;;  %v9005_v3 = vld [vmem:[#allocation8 + $0x8] sm:$0xff] }
 0x278   : > { %3007 = vmatmul.bf16.vlgmr.msra.gmra.mxu3 %v2903_v13  ;;  %3589 = vmatpush.bf16.msra.mxu0 %v8994_v55  ;;  %v8999_v13 = vld [vmem:[%s10429_s16 + $0x160] sm:$0xff]  ;;  %v9006_v55 = vld [vmem:[#allocation8 + $0x10] sm:$0xff] }
 0x279   : > { %3404 = vmatpush.bf16.msrb.mxu3 %v8968_v46 }
 0x27a   : > { %3392 = vmatpush.bf16.msrb.mxu2 %v8958_v37  ;;  %3606 = vmatpush.bf16.msra.mxu1 %v8999_v13  ;;  %v8961_v37 = vld [vmem:[%s10429_s16 + $0x40] sm:$0xff] }
 0x27c   : > { %3590 = vmatpush.bf16.msra.mxu0 %v8993_v59 }
 0x27d   : > { %3405 = vmatpush.bf16.msrb.mxu3 %v8967_v36  ;;  %v8988_v36 = vld [vmem:[%s10429_s16 + $0x108] sm:$0xff] }
 0x27e   : > { %3393 = vmatpush.bf16.msrb.mxu2 %v8957_v42  ;;  %3607 = vmatpush.bf16.msra.mxu1 %v8998_v25  ;;  %v9043_v25 = vld [vmem:[#allocation10 + $0xf8] sm:$0xff] }
 0x280   : > { %3591 = vmatpush.bf16.msra.mxu0 %v8992_v1 }
 0x281   : > { %3406 = vmatpush.bf16.msrb.mxu3 %v8966_v54 }
 0x282   : > { %3394 = vmatpush.bf16.msrb.mxu2 %v8956_v48  ;;  %3608 = vmatpush.bf16.msra.mxu1 %v8997_v39 }
 0x284   : > { %3592 = vmatpush.bf16.msra.mxu0 %v8991_v12 }
 0x285   : > { %3407 = vmatpush.bf16.msrb.mxu3 %v8965_v58  ;;  %v8995_v58 = vld [vmem:[%s10429_s16 + $0x140] sm:$0xff] }
 0x286   : > { %3395 = vmatpush.bf16.msrb.mxu2 %v8955_v40  ;;  %v8996_v40 = vld [vmem:[%s10429_s16 + $0x148] sm:$0xff] }
 0x287   : > { %3609 = vmatpush.bf16.msra.mxu1 %v8996_v40 }
 0x288   : > { %3593 = vmatpush.bf16.msra.mxu0 %v8990_v24 }
 0x289   : > { %3408 = vmatpush.bf16.msrb.mxu3 %v8964_v63 }
 0x28a   : > { %3396 = vmatpush.bf16.msrb.mxu2 %v8954_v57 }
 0x28b   : > { %3610 = vmatpush.bf16.msra.mxu1 %v8995_v58 }
 0x28c   : > { %3594 = vmatpush.bf16.msra.mxu0 %v8989_v38 }
 0x28d   : > { %3409 = vmatpush.bf16.msrb.mxu3 %v8963_v8 }
 0x28e   : > { %3397 = vmatpush.bf16.msrb.mxu2 %v8953_v62 }
 0x290   : > { %3595 = vmatpush.bf16.msra.mxu0 %v8988_v36 }
 0x292   : > { %3707 = vmatpush.bf16.msra.mxu2 %v9011_v0 }
 0x296   : > { %3708 = vmatpush.bf16.msra.mxu2 %v9010_v10  ;;  %v3049_v10 = vld [vmem:[#allocation2 + $0xc] sm:$0x88] }
 0x2b4   : > { %v1988_v22 = vpop.f32.mrf.mxu2  ;;  %v2175_v15 = vpop.f32.mrf.mxu0 }
 0x2bb   : > { %v2072_v14 = vpop.f32.mrf.mxu3 }
 0x2bc   : > { %v2073_v53 = vadd.f32 %v2072_v14, %v1988_v22  ;;  %v10133_v17 = vpop.f32.mrf.mxu2  ;;  %v10147_v32 = vpop.f32.mrf.mxu0  ;;  %v10187_v22 = vld [vmem:[%s10430_s22] sm:$0x3]  ;;  %s10442_s22 = sld [smem:[#allocation39_spill]] }
 0x2bd   : > { %v3019_v23 = vperm.slane %v10187_v22, 0 }
 0x2be   : > { %v10131_v16 = vadd.f32 %v2175_v15, %v2073_v53  ;;  %v8962_v53 = vld [vmem:[%s10429_s16 + $0x48] sm:$0xff]  ;;  %v9009_v15 = vld [vmem:[#allocation8 + $0x28] sm:$0xff] }
 0x2bf   : > { %v2591_v9 = vpop.f32.mrf.mxu1  ;;  %3709 = vmatpush.bf16.msra.mxu2 %v9009_v15  ;;  %3410 = vmatpush.bf16.msrb.mxu3 %v8962_v53 }
 0x2c3   : > { %v10137_v21 = vpop.f32.mrf.mxu3  ;;  %3710 = vmatpush.bf16.msra.mxu2 %v9008_v28  ;;  %3411 = vmatpush.bf16.msrb.mxu3 %v8961_v37 }
 0x2c4   : > { %v2577_v47 = vpop.f32.mrf.mxu0 }
 0x2c7   : > { %v2593_v4 = vpop.f32.mrf.mxu1  ;;  %3711 = vmatpush.bf16.msra.mxu2 %v9007_v18  ;;  %4039 = vmatpush.bf16.msra.mxu3 %v9043_v25  ;;  %v9003_v25 = vld [vmem:[%s1237_s10] sm:$0xff] }
 0x2ca   : > { %v10142_v26 = vpop.f32.mrf.mxu2 }
 0x2cb   : > { %v10151_v35 = vpop.f32.mrf.mxu3  ;;  %v2578_v6 = vadd.f32 %v2577_v47, %v10142_v26  ;;  %v3020_v47 = vperm.slane %v10187_v22, 1  ;;  %3712 = vmatpush.bf16.msra.mxu2 %v9006_v55  ;;  %v3253_v22 = vunpack.c.h.b16 %v3049_v10 }
 0x2cc   : > { %v2579_v30 = vpop.f32.mrf.mxu0  ;;  %v2592_v19 = vadd.f32 %v2591_v9, %v10151_v35 }
 0x2cf   : > { %v2871_v35 = vpop.f32.mrf.mxu1  ;;  %3713 = vmatpush.bf16.msra.mxu2 %v9005_v3 }
 0x2d2   : > { %v10156_v41 = vpop.f32.mrf.mxu2 }
 0x2d3   : > { %v10163_v49 = vpop.f32.mrf.mxu3  ;;  %v2580_v29 = vadd.f32 %v2579_v30, %v10156_v41 }
 0x2d4   : > { %v2857_v2 = vpop.f32.mrf.mxu0  ;;  %v2594_v41 = vadd.f32 %v2593_v4, %v10163_v49  ;;  %v8987_v49 = vld [vmem:[%s10429_s16 + $0x100] sm:$0xff] }
 0x2d5   : > { %3596 = vmatpush.bf16.msra.mxu0 %v8987_v49 }
 0x2d7   : > { %v2873_v62 = vpop.f32.mrf.mxu1 }
 0x2da   : > { %v2704_v50 = vpop.f32.mrf.mxu2 }
 0x2db   : > { %v2718_v61 = vpop.f32.mrf.mxu3  ;;  %v2723_v11 = vadd.f32 %v2704_v50, %v2578_v6 }
 0x2dc   : > { %v2724_v33 = vadd.f32 %v2718_v61, %v2592_v19  ;;  %v2859_v48 = vpop.f32.mrf.mxu0 }
 0x2dd   : > { %v2876_v20 = vadd.f32 %v2857_v2, %v2723_v11  ;;  %v9004_v11 = vld [vmem:[#allocation8] sm:$0xff]  ;;  %v3252_v2 = vunpack.c.l.b16 %v3049_v10 }
 0x2de   : > { %v2877_v46 = vadd.f32 %v2871_v35, %v2724_v33  ;;  %3714 = vmatpush.bf16.msra.mxu2 %v9004_v11 }
 0x2e2   : > { %v2706_v5 = vpop.f32.mrf.mxu2 }
 0x2e3   : > { %v2720_v14 = vpop.f32.mrf.mxu3  ;;  %v2725_v42 = vadd.f32 %v2706_v5, %v2580_v29  ;;  %v3420_v29 = vld [vmem:[#allocation2 + $0x30] sm:$0x11] }
 0x2e4   : > { %v2726_v56 = vadd.f32 %v2720_v14, %v2594_v41 }
 0x2e5   : > { %v2878_v52 = vadd.f32 %v2859_v48, %v2725_v42  ;;  %v3461_v42 = vunpack.c.l.b16 %v3420_v29 }
 0x2e6   : > { %v2879_v0 = vadd.f32 %v2873_v62, %v2726_v56 }
 0x2f4   : > { %v2994_v26 = vpop.f32.mrf.mxu2 }
 0x2f5   : > { %v3013_v34 = vadd.f32 %v2994_v26, %v2876_v20 }
 0x2f7   : > { %v3023_v43 = vmul.f32 %v3019_v23, %v3013_v34 }
 0x2f9   : > { %v3033_v9 = vadd.f32 %v3029_v45, %v3023_v43  ;;  %v3462_v43 = vunpack.c.h.b16 %v3420_v29  ;;  %v9041_v29 = vld [vmem:[#allocation10 + $0xe8] sm:$0xff] }
 0x2fb   : > { %v3008_v7 = vpop.f32.mrf.mxu3  ;;  %v3037_v59 = vmax.f32 %v3033_v9, 0.0 }
 0x2fc   : > { %v3014_v50 = vadd.f32 %v3008_v7, %v2877_v46  ;;  %v2996_v54 = vpop.f32.mrf.mxu2 }
 0x2fd   : > { %v3015_v30 = vadd.f32 %v2996_v54, %v2878_v52  ;;  %v3041_v4 = vmul.f32 %v10099_v44, %v3037_v59 }
 0x2fe   : > { %v3024_v57 = vmul.f32 %v3020_v47, %v3014_v50 }
 0x2ff   : > { %v3025_v61 = vmul.f32 %v3019_v23, %v3015_v30 }
 0x300   : > { %v3034_v60 = vadd.f32 %v3030_v51, %v3024_v57 }
 0x301   : > { %v3035_v6 = vadd.f32 %v3029_v45, %v3025_v61  ;;  %v9051_v45 = vld [vmem:[#allocation10 + $0x138] sm:$0xff] }
 0x302   : > { %v3038_v63 = vmax.f32 %v3034_v60, 0.0  ;;  %v3465_v60 = vpack.c.b16 %v3461_v42, %v3461_v42  ;;  %v9058_v42 = vld [vmem:[#allocation10 + $0x170] sm:$0xff] }
 0x303   : > { %v3010_v1 = vpop.f32.mrf.mxu3  ;;  %v3039_v14 = vmax.f32 %v3035_v6, 0.0 }
 0x304   : > { %v3042_v5 = vmul.f32 %v10099_v44, %v3038_v63  ;;  %v3016_v8 = vadd.f32 %v3010_v1, %v2879_v0  ;;  %v3466_v63 = vpack.c.b16 %v3462_v43, %v3462_v43  ;;  %v3475_v10 = vshll.u32 %v3465_v60, 16  ;;  %v9039_v43 = vld [vmem:[#allocation10 + $0xd8] sm:$0xff] }
 0x305   : > { %v3043_v26 = vmul.f32 0.0, %v3039_v14  ;;  %v9075_v60 = vld [vmem:[#allocation10 + $0x1f8] sm:$0xff] }
 0x306   : > { %v3045_v12 = vpack.c.bf16 %v3042_v5, %v3041_v4  ;;  %v3026_v13 = vmul.f32 %v3020_v47, %v3016_v8 }
 0x308   : > { %3047 = vst [vmem:[#allocation2 + $0x18] sm:$0xff] %v3045_v12  ;;  %v3036_v53 = vadd.f32 %v3030_v51, %v3026_v13  ;;  %v3119_v15 = vunpack.c.l.b16 %v3045_v12  ;;  %v3120_v19 = vunpack.c.h.b16 %v3045_v12  ;;  %v3487_v12 = vshll.u32 %v3466_v63, 16  ;;  %v9052_v63 = vld [vmem:[#allocation10 + $0x140] sm:$0xff] }
 0x30a   : > { %v3040_v20 = vmax.f32 %v3036_v53, 0.0  ;;  %v3254_v23 = vpack.c.b16 %v3119_v15, %v3252_v2  ;;  %v3255_v24 = vpack.c.b16 %v3120_v19, %v3253_v22 }
 0x30c   : > { %v3044_v27 = vmul.f32 0.0, %v3040_v20  ;;  %v3259_v33 = vshrl.u32 %v3254_v23, 16  ;;  %v3262_v34 = vshll.u32 %v3254_v23, 16  ;;  %v3276_v37 = vshrl.u32 %v3255_v24, 16 }
 0x30d   : > { %v3279_v38 = vshll.u32 %v3255_v24, 16  ;;  %v3489_v20 = vrot.slane %v3487_v12, 1 }
 0x30e   : > { %v3046_v28 = vpack.c.bf16 %v3044_v27, %v3043_v26  ;;  %v3261_v7 = vrot.slane %v3259_v33, 3  ;;  %v3264_v18 = vrot.slane %v3262_v34, 4  ;;  %v3278_v36 = vrot.slane %v3276_v37, 3  ;;  %v9042_v26 = vld [vmem:[#allocation10 + $0xf0] sm:$0xff]  ;;  %v9049_v33 = vld [vmem:[#allocation10 + $0x128] sm:$0xff]  ;;  %v9059_v34 = vld [vmem:[#allocation10 + $0x178] sm:$0xff] }
 0x30f   : > { %v3281_v40 = vrot.slane %v3279_v38, 4  ;;  %v7714_v30 = vld [vmem:[#allocation2 + $0x18] sm:$0xf]  ;;  %v8985_v61 = vld [vmem:[#allocation2 + $0x1c] sm:$0xf]  ;;  %4040 = vmatpush.bf16.msra.mxu3 %v9042_v26  ;;  %v9040_v38 = vld [vmem:[#allocation10 + $0xe0] sm:$0xff] }
 0x310   : > { %3048 = vst [vmem:[#allocation2 + $0x24] sm:$0xff] %v3046_v28  ;;  %v3121_v35 = vunpack.c.l.b16 %v3046_v28  ;;  %v3122_v39 = vunpack.c.h.b16 %v3046_v28  ;;  %v3265_v49 = vor.u32 %v3264_v18, %v3261_v7  ;;  %v9050_v27 = vld [vmem:[#allocation10 + $0x130] sm:$0xff]  ;;  %v9019_v28 = vld [vmem:[#allocation10 + $0x38] sm:$0xff]  ;;  %v9056_v18 = vld [vmem:[#allocation10 + $0x160] sm:$0xff] }
 0x311   : > { %v3282_v58 = vor.u32 %v3281_v40, %v3278_v36  ;;  %v9018_v37 = vld [vmem:[#allocation10 + $0x30] sm:$0xff]  ;;  %v9015_v7 = vld [vmem:[#allocation10 + $0x18] sm:$0xff]  ;;  %v9037_v36 = vld [vmem:[#allocation10 + $0xc8] sm:$0xff] }
 0x312   : > { %v3123_v46 = vpack.c.b16 %v3121_v35, %v3119_v15  ;;  %v3256_v47 = vpack.c.b16 %v3121_v35, %v3121_v35  ;;  %v3124_v41 = vpack.c.b16 %v3122_v39, %v3120_v19  ;;  %v3257_v48 = vpack.c.b16 %v3122_v39, %v3122_v39  ;;  %v9048_v35 = vld [vmem:[#allocation10 + $0x120] sm:$0xff]  ;;  %v9017_v39 = vld [vmem:[#allocation10 + $0x28] sm:$0xff]  ;;  %v9030_v26 = vld [vmem:[#allocation10 + $0x90] sm:$0xff] }
 0x313   : > { %v3477_v15 = vrot.slane %v3475_v10, 1  ;;  %4041 = vmatpush.bf16.msra.mxu3 %v9041_v29  ;;  %v9045_v40 = vld [vmem:[#allocation10 + $0x108] sm:$0xff]  ;;  %v9066_v10 = vld [vmem:[#allocation10 + $0x1b0] sm:$0xff] }
 0x314   : > { %3231 = vmatmul.bf16.vlgmr.msrb.gmra.mxu0 %v3123_v46  ;;  %3245 = vmatmul.bf16.vlgmr.msrb.gmra.mxu1 %v3124_v41  ;;  %v3267_v9 = vshrl.u32 %v3256_v47, 16  ;;  %v3270_v50 = vshll.u32 %v3256_v47, 16  ;;  %v3284_v51 = vshrl.u32 %v3257_v48, 16  ;;  %v3287_v52 = vshll.u32 %v3257_v48, 16  ;;  %v9016_v46 = vld [vmem:[#allocation10 + $0x20] sm:$0xff]  ;;  %v9057_v47 = vld [vmem:[#allocation10 + $0x168] sm:$0xff] }
 0x315   : > { %4053 = vmatpush.bf16.msrb.mxu0 %v9051_v45  ;;  %4067 = vmatpush.bf16.msrb.mxu1 %v9059_v34  ;;  %v9047_v45 = vld [vmem:[#allocation10 + $0x118] sm:$0xff]  ;;  %v9038_v41 = vld [vmem:[#allocation10 + $0xd0] sm:$0xff] }
 0x316   : > { %v3269_v54 = vrot.slane %v3267_v9, 3  ;;  %v3272_v55 = vrot.slane %v3270_v50, 4  ;;  %v3286_v56 = vrot.slane %v3284_v51, 3  ;;  %v3289_v57 = vrot.slane %v3287_v52, 4  ;;  %v9046_v48 = vld [vmem:[#allocation10 + $0x110] sm:$0xff]  ;;  %v9055_v50 = vld [vmem:[#allocation10 + $0x158] sm:$0xff] }
 0x317   : > { %v8986_v59 = vld [vmem:[#allocation2 + $0x20] sm:$0xf0]  ;;  %v7716_v62 = vld [vmem:[#allocation2 + $0x24] sm:$0xf0]  ;;  %4042 = vmatpush.bf16.msra.mxu3 %v9040_v38  ;;  %v9014_v9 = vld [vmem:[#allocation10 + $0x10] sm:$0xff] }
 0x318   : > { %v3273_v0 = vor.u32 %v3272_v55, %v3269_v54  ;;  %v3290_v1 = vor.u32 %v3289_v57, %v3286_v56  ;;  %v7715_v3 = vor.u32 %v8986_v59, %v7714_v30  ;;  %v7719_v4 = vor.u32 %v8985_v61, %v7716_v62  ;;  %v9036_v51 = vld [vmem:[#allocation10 + $0xc0] sm:$0xff]  ;;  %v9013_v54 = vld [vmem:[#allocation10 + $0x8] sm:$0xff]  ;;  %v9054_v55 = vld [vmem:[#allocation10 + $0x150] sm:$0xff] }
 0x319   : > { %4054 = vmatpush.bf16.msrb.mxu0 %v9050_v27  ;;  %4068 = vmatpush.bf16.msrb.mxu1 %v9058_v42  ;;  %v9044_v52 = vld [vmem:[#allocation10 + $0x100] sm:$0xff]  ;;  %v9027_v56 = vld [vmem:[#allocation10 + $0x78] sm:$0xff]  ;;  %v9034_v59 = vld [vmem:[#allocation10 + $0xb0] sm:$0xff] }
 0x31a   : > { %v3274_v5 = vsel %vm1439_vm1, %v3265_v49, %v3273_v0  ;;  %v3291_v6 = vsel %vm1439_vm1, %v3282_v58, %v3290_v1  ;;  %v3470_v8 = vshll.u32 %v7715_v3, 16  ;;  %v3482_v11 = vshll.u32 %v7719_v4, 16  ;;  %v9035_v57 = vld [vmem:[#allocation10 + $0xb8] sm:$0xff]  ;;  %v9012_v30 = vld [vmem:[#allocation10] sm:$0xff]  ;;  %v9053_v49 = vld [vmem:[#allocation10 + $0x148] sm:$0xff] }
 0x31b   : > { %3398 = vmatmul.bf16.vlgmr.msrb.gmra.mxu2 %v3274_v5  ;;  %3412 = vmatmul.bf16.vlgmr.msrb.gmra.mxu3 %v3291_v6  ;;  %v3468_v2 = vshrl.u32 %v7715_v3, 16  ;;  %v3480_v22 = vshrl.u32 %v7719_v4, 16  ;;  %v9026_v58 = vld [vmem:[#allocation10 + $0x70] sm:$0xff]  ;;  %v9025_v0 = vld [vmem:[#allocation10 + $0x68] sm:$0xff]  ;;  %v9067_v4 = vld [vmem:[#allocation10 + $0x1b8] sm:$0xff] }
 0x31c   : > { %v3472_v13 = vrot.slane %v3470_v8, 1  ;;  %v3484_v14 = vrot.slane %v3482_v11, 1  ;;  %4288 = vmatpush.bf16.msrb.mxu2 %v9019_v28  ;;  %4043 = vmatpush.bf16.msra.mxu3 %v9039_v43  ;;  %v9033_v1 = vld [vmem:[#allocation10 + $0xa8] sm:$0xff]  ;;  %v9074_v3 = vld [vmem:[#allocation10 + $0x1f0] sm:$0xff]  ;;  %v9024_v5 = vld [vmem:[#allocation10 + $0x60] sm:$0xff] }
 0x31d   : > { %4055 = vmatpush.bf16.msrb.mxu0 %v9049_v33  ;;  %4069 = vmatpush.bf16.msrb.mxu1 %v9057_v47  ;;  %v9032_v6 = vld [vmem:[#allocation10 + $0xa0] sm:$0xff]  ;;  %v9073_v8 = vld [vmem:[#allocation10 + $0x1e8] sm:$0xff]  ;;  %v9071_v27 = vld [vmem:[#allocation10 + $0x1d8] sm:$0xff] }
 0x31e   : > { %v3473_v53 = vor.u32 %v3472_v13, %v3468_v2  ;;  %v3485_v19 = vor.u32 %v3484_v14, %v3480_v22  ;;  %v9023_v13 = vld [vmem:[#allocation10 + $0x58] sm:$0xff]  ;;  %v9072_v22 = vld [vmem:[#allocation10 + $0x1e0] sm:$0xff]  ;;  %v9065_v14 = vld [vmem:[#allocation10 + $0x1a8] sm:$0xff] }
 0x31f   : > { %v9031_v2 = vld [vmem:[#allocation10 + $0x98] sm:$0xff]  ;;  %v9064_v28 = vld [vmem:[#allocation10 + $0x1a0] sm:$0xff]  ;;  %v9029_v42 = vld [vmem:[#allocation10 + $0x88] sm:$0xff] }
 0x320   : > { %v3478_v23 = vsel %vm1701_vm2, %v3473_v53, %v3477_v15  ;;  %v3490_v24 = vsel %vm1701_vm2, %v3485_v19, %v3489_v20  ;;  %4289 = vmatpush.bf16.msrb.mxu2 %v9018_v37  ;;  %4044 = vmatpush.bf16.msra.mxu3 %v9038_v41  ;;  %v9389_v15 = vld [vmem:[%s10433_s11] ss:$0 sm:$0xff]  ;;  %v2075_v19 = vadd.f32 %v10137_v21, %v10133_v17  ;;  %v9070_v43 = vld [vmem:[#allocation10 + $0x1d0] sm:$0xff] }
 0x321   : > { %4056 = vmatpush.bf16.msrb.mxu0 %v9048_v35  ;;  %4070 = vmatpush.bf16.msrb.mxu1 %v9056_v18  ;;  %v2186_v37 = vmul.f32 %v9389_v15, %v10131_v16  ;;  %v9390_v17 = vld [vmem:[%s10434_s18] ss:$0 sm:$0xff] }
 0x322   : > { %v2181_v21 = vadd.f32 %v10147_v32, %v2075_v19  ;;  %v9391_v35 = vld [vmem:[%s10435_s14] ss:$0 sm:$0xff]  ;;  %v9020_v32 = vld [vmem:[#allocation10 + $0x40] sm:$0xff] }
 0x323   : > { %v9063_v47 = vld [vmem:[#allocation10 + $0x198] sm:$0xff] }
 0x324   : > { %3597 = vmatmul.bf16.vlgmr.msra.gmra.mxu0 %v3478_v23  ;;  %3611 = vmatmul.bf16.vlgmr.msra.gmra.mxu1 %v3490_v24 }
 0x325   : > { %4290 = vmatpush.bf16.msrb.mxu2 %v9017_v39  ;;  %4057 = vmatpush.bf16.msrb.mxu0 %v9047_v45  ;;  %v9021_v39 = vld [vmem:[#allocation10 + $0x48] sm:$0xff] }
 0x326   : > { %4045 = vmatpush.bf16.msra.mxu3 %v9037_v36  ;;  %4071 = vmatpush.bf16.msrb.mxu1 %v9055_v50  ;;  %v9028_v36 = vld [vmem:[#allocation10 + $0x80] sm:$0xff] }
 0x329   : > { %4291 = vmatpush.bf16.msrb.mxu2 %v9016_v46  ;;  %4058 = vmatpush.bf16.msrb.mxu0 %v9046_v48  ;;  %v9392_v46 = vld [vmem:[%s10436_s15] ss:$0 sm:$0xff]  ;;  %v2192_v48 = vadd.f32 %v9390_v17, %v2186_v37 }
 0x32a   : > { %4046 = vmatpush.bf16.msra.mxu3 %v9036_v51  ;;  %4072 = vmatpush.bf16.msrb.mxu1 %v9054_v55 }
 0x32b   : > { %3715 = vmatmul.bf16.vlgmr.msra.gmra.mxu2 %v9003_v25  ;;  %v9022_v25 = vld [vmem:[#allocation10 + $0x50] sm:$0xff] }
 0x32d   : > { %4292 = vmatpush.bf16.msrb.mxu2 %v9015_v7  ;;  %4059 = vmatpush.bf16.msrb.mxu0 %v9045_v40  ;;  %v2187_v7 = vmul.f32 %v9389_v15, %v2181_v21 }
 0x32e   : > { %4302 = vmatpush.bf16.msrb.mxu3 %v9027_v56  ;;  %4073 = vmatpush.bf16.msrb.mxu1 %v9053_v49 }
 0x331   : > { %4293 = vmatpush.bf16.msrb.mxu2 %v9014_v9  ;;  %4060 = vmatpush.bf16.msrb.mxu0 %v9044_v52  ;;  %v9069_v9 = vld [vmem:[#allocation10 + $0x1c8] sm:$0xff]  ;;  %v9062_v52 = vld [vmem:[#allocation10 + $0x190] sm:$0xff] }
 0x332   : > { %4303 = vmatpush.bf16.msrb.mxu3 %v9026_v58  ;;  %4074 = vmatpush.bf16.msrb.mxu1 %v9052_v63  ;;  %v9061_v63 = vld [vmem:[#allocation10 + $0x188] sm:$0xff] }
 0x335   : > { %4294 = vmatpush.bf16.msrb.mxu2 %v9013_v54  ;;  %4316 = vmatpush.bf16.msra.mxu0 %v9035_v57  ;;  %v2194_v57 = vmax.f32 %v2192_v48, 0.0 }
 0x336   : > { %4304 = vmatpush.bf16.msrb.mxu3 %v9025_v0  ;;  %4587 = vmatpush.bf16.msra.mxu1 %v9067_v4  ;;  %v9394_v0 = vld [vmem:[%s10438_s23] ss:$0 sm:$0xff] }
 0x339   : > { %4295 = vmatpush.bf16.msrb.mxu2 %v9012_v30  ;;  %4317 = vmatpush.bf16.msra.mxu0 %v9034_v59  ;;  %v2193_v30 = vadd.f32 %v9390_v17, %v2187_v7  ;;  %v9393_v59 = vld [vmem:[%s10437_s7] ss:$0 sm:$0xff] }
 0x33a   : > { %4305 = vmatpush.bf16.msrb.mxu3 %v9024_v5  ;;  %4588 = vmatpush.bf16.msra.mxu1 %v9066_v10  ;;  %v9060_v10 = vld [vmem:[#allocation10 + $0x180] sm:$0xff] }
 0x33d   : > { %4601 = vmatpush.bf16.msra.mxu2 %v9075_v60  ;;  %4318 = vmatpush.bf16.msra.mxu0 %v9033_v1  ;;  %v9068_v60 = vld [vmem:[#allocation10 + $0x1c0] sm:$0xff]  ;;  %v3743_v1 = vmul.f32 %v10090_v31, %v2194_v57 }
 0x33e   : > { %4306 = vmatpush.bf16.msrb.mxu3 %v9023_v13  ;;  %4589 = vmatpush.bf16.msra.mxu1 %v9065_v14 }
 0x341   : > { %4602 = vmatpush.bf16.msra.mxu2 %v9074_v3  ;;  %4319 = vmatpush.bf16.msra.mxu0 %v9032_v6  ;;  %v2195_v3 = vmax.f32 %v2193_v30, 0.0 }
 0x342   : > { %4307 = vmatpush.bf16.msrb.mxu3 %v9022_v25  ;;  %4590 = vmatpush.bf16.msra.mxu1 %v9064_v28 }
 0x345   : > { %4603 = vmatpush.bf16.msra.mxu2 %v9073_v8  ;;  %4320 = vmatpush.bf16.msra.mxu0 %v9031_v2  ;;  %v2197_v2 = vmul.f32 0.0, %v2195_v3 }
 0x346   : > { %4308 = vmatpush.bf16.msrb.mxu3 %v9021_v39  ;;  %4591 = vmatpush.bf16.msra.mxu1 %v9063_v47  ;;  %v3812_v47 = vld [vmem:[#allocation2 + $0x14] sm:$0x8] }
 0x347   : > { %v3746_v15 = vmul.f32 0.0, %v2197_v2 }
 0x349   : > { %4604 = vmatpush.bf16.msra.mxu2 %v9072_v22  ;;  %4321 = vmatpush.bf16.msra.mxu0 %v9030_v26 }
 0x34a   : > { %4309 = vmatpush.bf16.msrb.mxu3 %v9020_v32  ;;  %4592 = vmatpush.bf16.msra.mxu1 %v9062_v52 }
 0x34d   : > { %4605 = vmatpush.bf16.msra.mxu2 %v9071_v27  ;;  %4322 = vmatpush.bf16.msra.mxu0 %v9029_v42  ;;  %v3758_v42 = vld [vmem:[#allocation2 + $0x14] sm:$0xc] }
 0x34e   : > { %4593 = vmatpush.bf16.msra.mxu1 %v9061_v63 }
 0x351   : > { %4606 = vmatpush.bf16.msra.mxu2 %v9070_v43  ;;  %4323 = vmatpush.bf16.msra.mxu0 %v9028_v36 }
 0x352   : > { %4594 = vmatpush.bf16.msra.mxu1 %v9060_v10 }
 0x355   : > { %4607 = vmatpush.bf16.msra.mxu2 %v9069_v9  ;;  %v3870_v9 = vunpack.c.l.b16 %v3812_v47 }
 0x359   : > { %4608 = vmatpush.bf16.msra.mxu2 %v9068_v60 }
 0x391   : > { %v3232_v61 = vpop.f32.mrf.mxu0  ;;  %v3246_v62 = vpop.f32.mrf.mxu1 }
 0x392   : > { %v3247_v53 = vadd.f32 %v3246_v62, %v3232_v61 }
 0x399   : > { %v3234_v11 = vpop.f32.mrf.mxu0  ;;  %v3248_v12 = vpop.f32.mrf.mxu1 }
 0x39a   : > { %v3249_v41 = vadd.f32 %v3248_v12, %v3234_v11 }
 0x39e   : > { %v3399_v20 = vpop.f32.mrf.mxu2  ;;  %v3413_v23 = vpop.f32.mrf.mxu3 }
 0x39f   : > { %v3400_v24 = vadd.f32 %v3399_v20, %v3247_v53 }
 0x3a1   : > { %v3414_v29 = vadd.f32 %v3413_v23, %v3400_v24  ;;  %v3598_v33 = vpop.f32.mrf.mxu0  ;;  %v3612_v34 = vpop.f32.mrf.mxu1  ;;  %v3757_v23 = vld [vmem:[#allocation2 + $0xc] sm:$0xcc] }
 0x3a2   : > { %v3613_v38 = vadd.f32 %v3612_v34, %v3598_v33  ;;  %v4083_v34 = vunpack.c.l.b16 %v3757_v23 }
 0x3a4   : > { %v3617_v45 = vadd.f32 %v3613_v38, %v3414_v29  ;;  %v3811_v29 = vld [vmem:[#allocation2 + $0xc] sm:$0x88] }
 0x3a5   : > { %v3868_v17 = vunpack.c.l.b16 %v3811_v29  ;;  %v3869_v21 = vunpack.c.h.b16 %v3811_v29  ;;  %v9081_v29 = vld [vmem:[#allocation10 + $0x228] sm:$0xff] }
 0x3a6   : > { %v3623_v18 = vmul.f32 %v9391_v35, %v3617_v45  ;;  %v3401_v16 = vpop.f32.mrf.mxu2  ;;  %v3415_v51 = vpop.f32.mrf.mxu3 }
 0x3a7   : > { %v3402_v40 = vadd.f32 %v3401_v16, %v3249_v41  ;;  %v4085_v16 = vunpack.c.l.b16 %v3758_v42 }
 0x3a8   : > { %v3629_v50 = vadd.f32 %v9392_v46, %v3623_v18 }
 0x3a9   : > { %v3416_v54 = vadd.f32 %v3415_v51, %v3402_v40  ;;  %v3600_v55 = vpop.f32.mrf.mxu0  ;;  %v3614_v56 = vpop.f32.mrf.mxu1  ;;  %v4084_v51 = vunpack.c.h.b16 %v3757_v23 }
 0x3aa   : > { %v3631_v49 = vmax.f32 %v3629_v50, 0.0  ;;  %v3615_v58 = vadd.f32 %v3614_v56, %v3600_v55 }
 0x3ac   : > { %v3633_v61 = vmul.f32 %v10099_v44, %v3631_v49  ;;  %v3618_v62 = vadd.f32 %v3615_v58, %v3416_v54 }
 0x3ae   : > { %v3744_v4 = vmul.f32 %v10090_v31, %v3633_v61  ;;  %v3624_v5 = vmul.f32 %v9391_v35, %v3618_v62  ;;  %v3716_v6 = vpop.f32.mrf.mxu2  ;;  %v9083_v61 = vld [vmem:[#allocation10 + $0x238] sm:$0xff] }
 0x3af   : > { %v3725_v8 = vmul.f32 %v9393_v59, %v3716_v6  ;;  %v9091_v62 = vld [vmem:[#allocation10 + $0x278] sm:$0xff] }
 0x3b0   : > { %v3749_v11 = vpack.c.bf16 %v3744_v4, %v3743_v1  ;;  %v3630_v12 = vadd.f32 %v9392_v46, %v3624_v5 }
 0x3b1   : > { %v3731_v13 = vadd.f32 %v9394_v0, %v3725_v8 }
 0x3b2   : > { %3753 = vst [vmem:[#allocation2 + $0x18] sm:$0xff] %v3749_v11  ;;  %v3632_v44 = vmax.f32 %v3630_v12, 0.0  ;;  %v10234_v33 = vunpack.c.l.b16 %v3749_v11  ;;  %v10237_v38 = vunpack.c.h.b16 %v3749_v11  ;;  %v9082_v12 = vld [vmem:[#allocation10 + $0x230] sm:$0xff] }
 0x3b3   : > { %v3733_v22 = vmax.f32 %v3731_v13, 0.0  ;;  %v9090_v13 = vld [vmem:[#allocation10 + $0x270] sm:$0xff] }
 0x3b4   : > { %v3634_v14 = vmul.f32 0.0, %v3632_v44  ;;  %v4086_v39 = vpack.c.b16 %v10234_v33, %v4083_v34  ;;  %v10241_v45 = vpack.c.b16 %v10234_v33, %v3868_v17  ;;  %v10244_v46 = vpack.c.b16 %v10237_v38, %v3869_v21  ;;  %v9089_v34 = vld [vmem:[#allocation10 + $0x268] sm:$0xff] }
 0x3b5   : > { %v3741_v53 = vmul.f32 %v10090_v31, %v3733_v22  ;;  %v4087_v10 = vpack.c.b16 %v10237_v38, %v4084_v51 }
 0x3b6   : > { %v3747_v19 = vmul.f32 0.0, %v3634_v14  ;;  %v3718_v20 = vpop.f32.mrf.mxu2  ;;  %v4091_v7 = vshrl.u32 %v4086_v39, 16  ;;  %v4094_v18 = vshll.u32 %v4086_v39, 16  ;;  %v3883_v54 = vrot.slane %v10241_v45, 3  ;;  %v9106_v39 = vld [vmem:[#allocation10 + $0x2f0] sm:$0xff] }
 0x3b7   : > { %v3745_v24 = vmul.f32 %v10090_v31, %v3741_v53  ;;  %v3726_v25 = vmul.f32 %v9393_v59, %v3718_v20  ;;  %v3886_v56 = vrot.slane %v10244_v46, 3  ;;  %v9107_v53 = vld [vmem:[#allocation10 + $0x2f8] sm:$0xff] }
 0x3b8   : > { %v10232_v26 = vpack.c.bf16 %v3747_v19, %v3746_v15  ;;  %v4093_v57 = vrot.slane %v4091_v7, 2  ;;  %v4096_v30 = vrot.slane %v4094_v18, 3 }
 0x3b9   : > { %v3750_v27 = vpack.c.bf16 %v3745_v24, %v3745_v24  ;;  %v3732_v28 = vadd.f32 %v9394_v0, %v3726_v25 }
 0x3ba   : > { %3755 = vst [vmem:[#allocation2 + $0x24] sm:$0xff] %v10232_v26  ;;  %v10252_v58 = vunpack.c.h.b16 %v10232_v26  ;;  %v4097_v6 = vor.u32 %v4096_v30, %v4093_v57  ;;  %v9105_v30 = vld [vmem:[#allocation10 + $0x2e8] sm:$0xff] }
 0x3bb   : > { %3754 = vst [vmem:[#allocation2 + $0x20] sm:$0xf] %v3750_v27  ;;  %v3734_v37 = vmax.f32 %v3732_v28, 0.0  ;;  %v4108_v27 = vshrl.u32 %v4087_v10, 16  ;;  %v4111_v28 = vshll.u32 %v4087_v10, 16 }
 0x3bc   : > { %v4387_v14 = vpack.c.b16 %v10252_v58, %v10252_v58 }
 0x3bd   : > { %v3742_v35 = vmul.f32 0.0, %v3734_v37 }
 0x3be   : > { %v4415_v21 = vshrl.u32 %v4387_v14, 16 }
 0x3bf   : > { %v3748_v43 = vmul.f32 0.0, %v3742_v35  ;;  %v10265_v35 = vunpack.c.l.b16 %v10232_v26  ;;  %v9080_v26 = vld [vmem:[#allocation10 + $0x220] sm:$0xff] }
 0x3c1   : > { %v3752_v41 = vpack.c.bf16 %v3748_v43, %v3748_v43  ;;  %v3761_v48 = vld [vmem:[#allocation2 + $0x24] sm:$0x77]  ;;  %v4386_v57 = vpack.c.b16 %v10265_v35, %v10265_v35 }
 0x3c2   : > { %v3874_v32 = vunpack.c.l.b16 %v3761_v48  ;;  %v3875_v36 = vunpack.c.h.b16 %v3761_v48  ;;  %v3760_v40 = vld [vmem:[#allocation2 + $0x20] sm:$0xf] }
 0x3c3   : > { %3756 = vst [vmem:[#allocation2 + $0x2c] sm:$0xf] %v3752_v41  ;;  %v10246_v50 = vunpack.c.l.b16 %v3760_v40  ;;  %v4418_v41 = vshll.u32 %v4387_v14, 16  ;;  %v9099_v48 = vld [vmem:[#allocation10 + $0x2b8] sm:$0xff]  ;;  %v4401_v10 = vshll.u32 %v4386_v57, 16 }
 0x3c4   : > { %v3880_v52 = vpack.c.b16 %v3874_v32, %v3874_v32  ;;  %v3881_v55 = vpack.c.b16 %v3875_v36, %v3875_v36 }
 0x3c5   : > { %v4088_v49 = vpack.c.b16 %v10246_v50, %v4085_v16  ;;  %v10257_v8 = vpack.c.b16 %v10246_v50, %v3870_v9  ;;  %v4407_v16 = vshrl.u32 %v10244_v46, 16  ;;  %v4410_v9 = vshll.u32 %v10244_v46, 16 }
 0x3c6   : > { %v3884_v59 = vrot.slane %v3880_v52, 3  ;;  %v3887_v60 = vrot.slane %v3881_v55, 3  ;;  %v4099_v63 = vshrl.u32 %v3880_v52, 16  ;;  %v4102_v0 = vshll.u32 %v3880_v52, 16  ;;  %v9088_v52 = vld [vmem:[#allocation10 + $0x260] sm:$0xff] }
 0x3c7   : > { %v4125_v44 = vshrl.u32 %v4088_v49, 16  ;;  %v4128_v22 = vshll.u32 %v4088_v49, 16  ;;  %v4116_v20 = vshrl.u32 %v3881_v55, 16  ;;  %v4119_v23 = vshll.u32 %v3881_v55, 16 }
 0x3c8   : > { %v3885_v1 = vsel %vm1523_vm0, %v3883_v54, %v3884_v59  ;;  %v3888_v3 = vsel %vm1523_vm0, %v3886_v56, %v3887_v60  ;;  %v4101_v4 = vrot.slane %v4099_v63, 2  ;;  %v4104_v5 = vrot.slane %v4102_v0, 3 }
 0x3c9   : > { %4047 = vmatmul.bf16.vlgmr.msra.gmra.mxu3 %v3885_v1  ;;  %4061 = vmatmul.bf16.vlgmr.msrb.gmra.mxu0 %v3888_v3  ;;  %v3889_v25 = vrot.slane %v10257_v8, 3  ;;  %v4127_v37 = vrot.slane %v4125_v44, 2  ;;  %v4130_v17 = vrot.slane %v4128_v22, 3  ;;  %v4118_v7 = vrot.slane %v4116_v20, 2  ;;  %v9097_v22 = vld [vmem:[#allocation10 + $0x2a8] sm:$0xff] }
 0x3ca   : > { %4615 = vmatpush.bf16.msra.mxu3 %v9083_v61  ;;  %4830 = vmatpush.bf16.msrb.mxu0 %v9091_v62  ;;  %v4105_v11 = vor.u32 %v4104_v5, %v4101_v4  ;;  %v3762_v2 = vld [vmem:[#allocation2 + $0x2c] sm:$0x7]  ;;  %v4121_v18 = vrot.slane %v4119_v23, 3  ;;  %v4110_v54 = vrot.slane %v4108_v27, 2  ;;  %v4113_v55 = vrot.slane %v4111_v28, 3  ;;  %v9098_v61 = vld [vmem:[#allocation10 + $0x2b0] sm:$0xff] }
 0x3cb   : > { %v3876_v15 = vunpack.c.l.b16 %v3762_v2  ;;  %v4331_v51 = vld [vmem:[#allocation2 + $0x2c] sm:$0xf]  ;;  %v4131_v56 = vor.u32 %v4130_v17, %v4127_v37  ;;  %v4417_v59 = vrot.slane %v4415_v21, 3  ;;  %v4420_v60 = vrot.slane %v4418_v41, 4  ;;  %v9079_v4 = vld [vmem:[#allocation10 + $0x218] sm:$0xff]  ;;  %v9077_v21 = vld [vmem:[#allocation10 + $0x208] sm:$0xff] }
 0x3cc   : > { %v4106_v19 = vsel %vm4089_vm6, %v4097_v6, %v4105_v11  ;;  %v4122_v46 = vor.u32 %v4121_v18, %v4118_v7  ;;  %v10272_v62 = vunpack.c.l.b16 %v4331_v51  ;;  %v4409_v63 = vrot.slane %v4407_v16, 3  ;;  %v9087_v5 = vld [vmem:[#allocation10 + $0x258] sm:$0xff]  ;;  %v9104_v11 = vld [vmem:[#allocation10 + $0x2e0] sm:$0xff]  ;;  %v9094_v51 = vld [vmem:[#allocation10 + $0x290] sm:$0xff] }
 0x3cd   : > { %4296 = vmatmul.bf16.vlgmr.msrb.gmra.mxu2 %v4106_v19  ;;  %v3882_v24 = vpack.c.b16 %v3876_v15, %v3876_v15  ;;  %v4412_v0 = vrot.slane %v4410_v9, 4  ;;  %v4114_v1 = vor.u32 %v4113_v55, %v4110_v54  ;;  %v4398_v6 = vshrl.u32 %v4386_v57, 16  ;;  %v9078_v15 = vld [vmem:[#allocation10 + $0x210] sm:$0xff]  ;;  %v9096_v28 = vld [vmem:[#allocation10 + $0x2a0] sm:$0xff]  ;;  %v9095_v41 = vld [vmem:[#allocation10 + $0x298] sm:$0xff] }
 0x3ce   : > { %4616 = vmatpush.bf16.msra.mxu3 %v9082_v12  ;;  %4831 = vmatpush.bf16.msrb.mxu0 %v9090_v13  ;;  %v4421_v12 = vor.u32 %v4420_v60, %v4417_v59  ;;  %v4390_v13 = vshrl.u32 %v10241_v45, 16  ;;  %v4393_v2 = vshll.u32 %v10241_v45, 16  ;;  %v4388_v14 = vpack.c.b16 %v10272_v62, %v10272_v62  ;;  %v9086_v19 = vld [vmem:[#allocation10 + $0x250] sm:$0xff]  ;;  %v9103_v45 = vld [vmem:[#allocation10 + $0x2d8] sm:$0xff] }
 0x3cf   : > { %4858 = vmatpush.bf16.msrb.mxu2 %v9107_v53  ;;  %v3890_v42 = vrot.slane %v3882_v24, 3  ;;  %v4133_v43 = vshrl.u32 %v3882_v24, 16  ;;  %v4136_v47 = vshll.u32 %v3882_v24, 16  ;;  %v4123_v44 = vsel %vm4089_vm6, %v4114_v1, %v4122_v46  ;;  %v9115_v9 = vld [vmem:[#allocation10 + $0x338] sm:$0xff]  ;;  %v9114_v57 = vld [vmem:[#allocation10 + $0x330] sm:$0xff] }
 0x3d0   : > { %v4413_v53 = vor.u32 %v4412_v0, %v4409_v63  ;;  %v4400_v20 = vrot.slane %v4398_v6, 3  ;;  %v4403_v23 = vrot.slane %v4401_v10, 4  ;;  %v4395_v27 = vrot.slane %v4393_v2, 4  ;;  %v9122_v59 = vld [vmem:[#allocation10 + $0x370] sm:$0xff]  ;;  %v9139_v60 = vld [vmem:[#allocation10 + $0x3f8] sm:$0xff] }
 0x3d1   : > { %v3891_v32 = vsel %vm1523_vm0, %v3889_v25, %v3890_v42  ;;  %v4135_v36 = vrot.slane %v4133_v43, 2  ;;  %v4138_v40 = vrot.slane %v4136_v47, 3  ;;  %v4392_v25 = vrot.slane %v4390_v13, 3  ;;  %v9102_v43 = vld [vmem:[#allocation10 + $0x2d0] sm:$0xff]  ;;  %v9131_v0 = vld [vmem:[#allocation10 + $0x3b8] sm:$0xff] }
 0x3d2   : > { %4617 = vmatpush.bf16.msra.mxu3 %v9081_v29  ;;  %4832 = vmatpush.bf16.msrb.mxu0 %v9089_v34  ;;  %v4422_v24 = vsel %vm1439_vm1, %v4413_v53, %v4421_v12  ;;  %v4424_v29 = vshrl.u32 %v10257_v8, 16  ;;  %v4427_v34 = vshll.u32 %v10257_v8, 16  ;;  %v4432_v37 = vshrl.u32 %v4388_v14, 16  ;;  %v9138_v63 = vld [vmem:[#allocation10 + $0x3f0] sm:$0xff]  ;;  %v10289_v1 = vld [vmem:[#allocation2 + $0x24] sm:$0xff]  ;;  %v9129_v53 = vld [vmem:[#allocation10 + $0x3a8] sm:$0xff] }
 0x3d3   : > { %4859 = vmatpush.bf16.msrb.mxu2 %v9106_v39  ;;  %4075 = vmatmul.bf16.vlgmr.msrb.gmra.mxu1 %v3891_v32  ;;  %v4139_v49 = vor.u32 %v4138_v40, %v4135_v36  ;;  %v4435_v17 = vshll.u32 %v4388_v14, 16  ;;  %v9085_v39 = vld [vmem:[#allocation10 + $0x248] sm:$0xff]  ;;  %v4404_v42 = vor.u32 %v4403_v23, %v4400_v20  ;;  %v4396_v47 = vor.u32 %v4395_v27, %v4392_v25  ;;  %v9076_v32 = vld [vmem:[#allocation10 + $0x200] sm:$0xff]  ;;  %v9111_v12 = vld [vmem:[#allocation10 + $0x318] sm:$0xff] }
 0x3d4   : > { %4844 = vmatpush.bf16.msrb.mxu1 %v9099_v48  ;;  %v4426_v48 = vrot.slane %v4424_v29, 3  ;;  %v4429_v7 = vrot.slane %v4427_v34, 4  ;;  %v4434_v18 = vrot.slane %v4432_v37, 3  ;;  %v9084_v36 = vld [vmem:[#allocation10 + $0x240] sm:$0xff]  ;;  %v9101_v40 = vld [vmem:[#allocation10 + $0x2c8] sm:$0xff]  ;;  %v4680_v55 = vpack.c.b16 %v10265_v35, %v10234_v33  ;;  %v9119_v2 = vld [vmem:[#allocation10 + $0x358] sm:$0xff] }
 0x3d5   : > { %v4140_v3 = vsel %vm4089_vm6, %v4131_v56, %v4139_v49  ;;  %v4437_v16 = vrot.slane %v4435_v17, 4  ;;  %v4405_v8 = vsel %vm1439_vm1, %v4396_v47, %v4404_v42  ;;  %v9100_v56 = vld [vmem:[#allocation10 + $0x2c0] sm:$0xff]  ;;  %v9093_v49 = vld [vmem:[#allocation10 + $0x288] sm:$0xff]  ;;  %v4682_v46 = vpack.c.b16 %v10272_v62, %v10246_v50  ;;  %v9130_v62 = vld [vmem:[#allocation10 + $0x3b0] sm:$0xff] }
 0x3d6   : > { %4618 = vmatpush.bf16.msra.mxu3 %v9080_v26  ;;  %4833 = vmatpush.bf16.msrb.mxu0 %v9088_v52  ;;  %v9123_v26 = vld [vmem:[#allocation10 + $0x378] sm:$0xff]  ;;  %v4430_v52 = vor.u32 %v4429_v7, %v4426_v48  ;;  %v9092_v33 = vld [vmem:[#allocation10 + $0x280] sm:$0xff]  ;;  %v9121_v35 = vld [vmem:[#allocation10 + $0x368] sm:$0xff]  ;;  %v4681_v6 = vpack.c.b16 %v10252_v58, %v10237_v38  ;;  %v4938_v10 = vunpack.c.l.b16 %v10289_v1 }
 0x3d7   : > { %4860 = vmatpush.bf16.msrb.mxu2 %v9105_v30  ;;  %v4438_v54 = vor.u32 %v4437_v16, %v4434_v18  ;;  %v9137_v50 = vld [vmem:[#allocation10 + $0x3e8] sm:$0xff]  ;;  %v9136_v14 = vld [vmem:[#allocation10 + $0x3e0] sm:$0xff]  ;;  %v9118_v20 = vld [vmem:[#allocation10 + $0x350] sm:$0xff] }
 0x3d8   : > { %4845 = vmatpush.bf16.msrb.mxu1 %v9098_v61  ;;  %v9113_v61 = vld [vmem:[#allocation10 + $0x328] sm:$0xff]  ;;  %v9135_v25 = vld [vmem:[#allocation10 + $0x3d8] sm:$0xff]  ;;  %v9128_v27 = vld [vmem:[#allocation10 + $0x3a0] sm:$0xff] }
 0x3d9   : > { %4310 = vmatmul.bf16.vlgmr.msrb.gmra.mxu3 %v4123_v44  ;;  %4324 = vmatmul.bf16.vlgmr.msra.gmra.mxu0 %v4140_v3  ;;  %v4439_v30 = vsel %vm1439_vm1, %v4430_v52, %v4438_v54  ;;  %v9112_v3 = vld [vmem:[#allocation10 + $0x320] sm:$0xff]  ;;  %v4878_v44 = vld [vmem:[#allocation2 + $0x30] sm:$0x11]  ;;  %v9134_v47 = vld [vmem:[#allocation10 + $0x3d0] sm:$0xff] }
 0x3da   : > { %4619 = vmatpush.bf16.msra.mxu3 %v9079_v4  ;;  %4834 = vmatpush.bf16.msrb.mxu0 %v9087_v5  ;;  %v9120_v4 = vld [vmem:[#allocation10 + $0x360] sm:$0xff]  ;;  %v4874_v5 = vld [vmem:[#allocation2 + $0x18] sm:$0xff]  ;;  %v4942_v23 = vunpack.c.h.b16 %v4878_v44  ;;  %v9109_v34 = vld [vmem:[#allocation10 + $0x308] sm:$0xff] }
 0x3db   : > { %4861 = vmatpush.bf16.msrb.mxu2 %v9104_v11  ;;  %v4939_v11 = vunpack.c.h.b16 %v10289_v1  ;;  %v4935_v13 = vunpack.c.l.b16 %v4874_v5  ;;  %v9133_v54 = vld [vmem:[#allocation10 + $0x3c8] sm:$0xff]  ;;  %v9179_v1 = vld [vmem:[#allocation10 + $0x538] sm:$0xff] }
 0x3dc   : > { %4846 = vmatpush.bf16.msrb.mxu1 %v9097_v22  ;;  %v4936_v22 = vunpack.c.h.b16 %v4874_v5  ;;  %v10304_v42 = vpack.c.b16 %v4942_v23, %v4942_v23  ;;  %v9154_v5 = vld [vmem:[#allocation10 + $0x470] sm:$0xff]  ;;  %v9169_v23 = vld [vmem:[#allocation10 + $0x4e8] sm:$0xff] }
 0x3dd   : > { %4609 = vmatmul.bf16.vlgmr.msra.gmra.mxu2 %v4422_v24  ;;  %v4944_v38 = vpack.c.b16 %v4938_v10, %v4935_v13  ;;  %v4875_v24 = vld [vmem:[#allocation2 + $0x20] sm:$0xf] }
 0x3de   : > { %4620 = vmatpush.bf16.msra.mxu3 %v9078_v15  ;;  %4835 = vmatpush.bf16.msrb.mxu0 %v9086_v19  ;;  %v4945_v58 = vpack.c.b16 %v4939_v11, %v4936_v22  ;;  %v9110_v15 = vld [vmem:[#allocation10 + $0x310] sm:$0xff]  ;;  %v4941_v19 = vunpack.c.l.b16 %v4878_v44  ;;  %v4937_v17 = vunpack.c.l.b16 %v4875_v24  ;;  %v4970_v16 = vshll.u32 %v10304_v42, 16  ;;  %v9124_v44 = vld [vmem:[#allocation10 + $0x380] sm:$0xff]  ;;  %v9153_v22 = vld [vmem:[#allocation10 + $0x468] sm:$0xff] }
 0x3df   : > { %4862 = vmatpush.bf16.msrb.mxu2 %v9103_v45  ;;  %v10299_v45 = vld [vmem:[#allocation2 + $0x2c] sm:$0xf] }
 0x3e0   : > { %4847 = vmatpush.bf16.msrb.mxu1 %v9096_v28  ;;  %v4953_v28 = vshll.u32 %v4944_v38, 16  ;;  %v4965_v29 = vshll.u32 %v4945_v58, 16  ;;  %v10301_v37 = vpack.c.b16 %v4941_v19, %v4941_v19  ;;  %v4963_v52 = vshrl.u32 %v4945_v58, 16  ;;  %v9144_v19 = vld [vmem:[#allocation10 + $0x420] sm:$0xff] }
 0x3e2   : > { %4621 = vmatpush.bf16.msra.mxu3 %v9077_v21  ;;  %4836 = vmatpush.bf16.msrb.mxu0 %v9085_v39  ;;  %v4940_v21 = vunpack.c.l.b16 %v10299_v45  ;;  %v9117_v39 = vld [vmem:[#allocation10 + $0x348] sm:$0xff]  ;;  %v4955_v48 = vrot.slane %v4953_v28, 1  ;;  %v4958_v7 = vshll.u32 %v10301_v37, 16  ;;  %v4967_v18 = vrot.slane %v4965_v29, 1  ;;  %v9151_v29 = vld [vmem:[#allocation10 + $0x458] sm:$0xff] }
 0x3e3   : > { %4863 = vmatpush.bf16.msrb.mxu2 %v9102_v43  ;;  %4595 = vmatmul.bf16.vlgmr.msra.gmra.mxu1 %v4405_v8  ;;  %v4879_v43 = vld [vmem:[#allocation2 + $0x38] sm:$0x1]  ;;  %v10308_v8 = vld [vmem:[#allocation2 + $0x18] sm:$0xee]  ;;  %v5436_v28 = vld [vmem:[#allocation2 + $0x30] sm:$0x33] }
 0x3e4   : > { %4848 = vmatpush.bf16.msrb.mxu1 %v9095_v41  ;;  %v9127_v41 = vld [vmem:[#allocation10 + $0x398] sm:$0xff] }
 0x3e6   : > { %4622 = vmatpush.bf16.msra.mxu3 %v9076_v32  ;;  %4837 = vmatpush.bf16.msrb.mxu0 %v9084_v36  ;;  %v9108_v32 = vld [vmem:[#allocation10 + $0x300] sm:$0xff]  ;;  %v4951_v36 = vshrl.u32 %v4944_v38, 16  ;;  %v9163_v38 = vld [vmem:[#allocation10 + $0x4b8] sm:$0xff] }
 0x3e7   : > { %4864 = vmatpush.bf16.msrb.mxu2 %v9101_v40  ;;  %v4943_v40 = vunpack.c.l.b16 %v4879_v43  ;;  %v5490_v43 = vunpack.c.h.b16 %v5436_v28 }
 0x3e8   : > { %4849 = vmatpush.bf16.msrb.mxu1 %v9094_v51  ;;  %v9116_v51 = vld [vmem:[#allocation10 + $0x340] sm:$0xff] }
 0x3e9   : > { %4623 = vmatmul.bf16.vlgmr.msra.gmra.mxu3 %v4439_v30  ;;  %4838 = vmatmul.bf16.vlgmr.msrb.gmra.mxu0 %v4680_v55  ;;  %v9126_v55 = vld [vmem:[#allocation10 + $0x390] sm:$0xff]  ;;  %v5230_v30 = vunpack.c.l.b16 %v10308_v8 }
 0x3ea   : > { %5133 = vmatpush.bf16.msrb.mxu3 %v9115_v9  ;;  %5147 = vmatpush.bf16.msra.mxu0 %v9123_v26  ;;  %v4946_v9 = vpack.c.b16 %v4940_v21, %v4937_v17  ;;  %v9147_v26 = vld [vmem:[#allocation10 + $0x438] sm:$0xff]  ;;  %v9142_v17 = vld [vmem:[#allocation10 + $0x410] sm:$0xff] }
 0x3eb   : > { %4865 = vmatpush.bf16.msrb.mxu2 %v9100_v56  ;;  %v4956_v56 = vor.u32 %v4955_v48, %v4951_v36  ;;  %v5231_v48 = vunpack.c.h.b16 %v10308_v8  ;;  %v5493_v36 = vpack.c.b16 %v5490_v43, %v5490_v43  ;;  %v9140_v8 = vld [vmem:[#allocation10 + $0x400] sm:$0xff]  ;;  %v9173_v43 = vld [vmem:[#allocation10 + $0x508] sm:$0xff] }
 0x3ec   : > { %4850 = vmatpush.bf16.msrb.mxu1 %v9093_v49  ;;  %v9155_v49 = vld [vmem:[#allocation10 + $0x478] sm:$0xff] }
 0x3ee   : > { %5134 = vmatpush.bf16.msrb.mxu3 %v9114_v57  ;;  %5148 = vmatpush.bf16.msra.mxu0 %v9122_v59  ;;  %v4960_v57 = vrot.slane %v4958_v7, 1  ;;  %v4968_v59 = vor.u32 %v4967_v18, %v4963_v52  ;;  %v9160_v7 = vld [vmem:[#allocation10 + $0x4a0] sm:$0xff] }
 0x3ef   : > { %5392 = vmatpush.bf16.msra.mxu2 %v9139_v60  ;;  %v4972_v60 = vrot.slane %v4970_v16, 1  ;;  %v9141_v16 = vld [vmem:[#allocation10 + $0x408] sm:$0xff] }
 0x3f0   : > { %4866 = vmatmul.bf16.vlgmr.msrb.gmra.mxu2 %v4682_v46  ;;  %4851 = vmatpush.bf16.msrb.mxu1 %v9092_v33  ;;  %v10317_v46 = vpack.c.b16 %v4943_v40, %v4943_v40  ;;  %v4977_v33 = vshll.u32 %v4946_v9, 16  ;;  %v5489_v40 = vunpack.c.l.b16 %v5436_v28 }
 0x3f2   : > { %5135 = vmatpush.bf16.msrb.mxu3 %v9113_v61  ;;  %5149 = vmatpush.bf16.msra.mxu0 %v9121_v35  ;;  %v10315_v61 = vpack.c.b16 %v4938_v10, %v5230_v30  ;;  %v9146_v35 = vld [vmem:[#allocation10 + $0x430] sm:$0xff]  ;;  %v4975_v10 = vshrl.u32 %v4946_v9, 16  ;;  %v4982_v13 = vshll.u32 %v10317_v46, 16  ;;  %v9149_v9 = vld [vmem:[#allocation10 + $0x448] sm:$0xff]  ;;  %v9148_v30 = vld [vmem:[#allocation10 + $0x440] sm:$0xff] }
 0x3f3   : > { %5393 = vmatpush.bf16.msra.mxu2 %v9138_v63  ;;  %4852 = vmatmul.bf16.vlgmr.msrb.gmra.mxu1 %v4681_v6  ;;  %v4961_v63 = vsel %vm1701_vm2, %v4956_v56, %v4960_v57  ;;  %v9171_v6 = vld [vmem:[#allocation10 + $0x4f8] sm:$0xff]  ;;  %v5522_v56 = vshrl.u32 %v5493_v36, 16  ;;  %v5525_v57 = vshll.u32 %v5493_v36, 16 }
 0x3f4   : > { %5161 = vmatpush.bf16.msra.mxu1 %v9131_v0  ;;  %v9132_v0 = vld [vmem:[#allocation10 + $0x3c0] sm:$0xff] }
 0x3f6   : > { %5136 = vmatpush.bf16.msrb.mxu3 %v9112_v3  ;;  %5150 = vmatpush.bf16.msra.mxu0 %v9120_v4  ;;  %v9125_v3 = vld [vmem:[#allocation10 + $0x388] sm:$0xff]  ;;  %v4973_v4 = vsel %vm1701_vm2, %v4968_v59, %v4972_v60  ;;  %v5240_v60 = vrot.slane %v10304_v42, 1 }
 0x3f7   : > { %5394 = vmatpush.bf16.msra.mxu2 %v9137_v50  ;;  %v5237_v50 = vrot.slane %v10301_v37, 1  ;;  %v9161_v37 = vld [vmem:[#allocation10 + $0x4a8] sm:$0xff] }
 0x3f8   : > { %5162 = vmatpush.bf16.msra.mxu1 %v9130_v62  ;;  %v5236_v62 = vrot.slane %v10315_v61, 1 }
 0x3fa   : > { %5137 = vmatpush.bf16.msrb.mxu3 %v9111_v12  ;;  %5151 = vmatpush.bf16.msra.mxu0 %v9119_v2  ;;  %v4979_v12 = vrot.slane %v4977_v33, 1  ;;  %v9145_v2 = vld [vmem:[#allocation10 + $0x428] sm:$0xff]  ;;  %v9158_v33 = vld [vmem:[#allocation10 + $0x490] sm:$0xff] }
 0x3fb   : > { %5395 = vmatpush.bf16.msra.mxu2 %v9136_v14  ;;  %v9170_v14 = vld [vmem:[#allocation10 + $0x4f0] sm:$0xff] }
 0x3fc   : > { %5163 = vmatpush.bf16.msra.mxu1 %v9129_v53  ;;  %v5238_v53 = vsel %vm1800_vm3, %v5236_v62, %v5237_v50  ;;  %v4980_v58 = vor.u32 %v4979_v12, %v4975_v10  ;;  %v9164_v10 = vld [vmem:[#allocation10 + $0x4c0] sm:$0xff] }
 0x3fe   : > { %5138 = vmatpush.bf16.msrb.mxu3 %v9110_v15  ;;  %5152 = vmatpush.bf16.msra.mxu0 %v9118_v20  ;;  %v4984_v15 = vrot.slane %v4982_v13, 1  ;;  %v9152_v20 = vld [vmem:[#allocation10 + $0x460] sm:$0xff] }
 0x3ff   : > { %5396 = vmatpush.bf16.msra.mxu2 %v9135_v25  ;;  %v9162_v25 = vld [vmem:[#allocation10 + $0x4b0] sm:$0xff] }
 0x400   : > { %5164 = vmatpush.bf16.msra.mxu1 %v9128_v27  ;;  %v4985_v24 = vsel %vm1701_vm2, %v4980_v58, %v4984_v15  ;;  %v9143_v27 = vld [vmem:[#allocation10 + $0x418] sm:$0xff]  ;;  %v5437_v15 = vld [vmem:[#allocation2 + $0x38] sm:$0x3] }
 0x402   : > { %5139 = vmatpush.bf16.msrb.mxu3 %v9109_v34  ;;  %5153 = vmatpush.bf16.msra.mxu0 %v9117_v39  ;;  %v9168_v34 = vld [vmem:[#allocation10 + $0x4e0] sm:$0xff]  ;;  %v5178_v39 = vld [vmem:[#allocation2 + $0x20] sm:$0xe] }
 0x403   : > { %5397 = vmatpush.bf16.msra.mxu2 %v9134_v47  ;;  %v9150_v47 = vld [vmem:[#allocation10 + $0x450] sm:$0xff]  ;;  %v5232_v18 = vunpack.c.l.b16 %v5178_v39 }
 0x404   : > { %5165 = vmatpush.bf16.msra.mxu1 %v9127_v41  ;;  %v9167_v41 = vld [vmem:[#allocation10 + $0x4d8] sm:$0xff] }
 0x405   : > { %v10331_v52 = vpack.c.b16 %v4940_v21, %v5232_v18  ;;  %v5243_v21 = vrot.slane %v10317_v46, 1  ;;  %v9157_v46 = vld [vmem:[#allocation10 + $0x488] sm:$0xff]  ;;  %v9172_v18 = vld [vmem:[#allocation10 + $0x500] sm:$0xff] }
 0x406   : > { %5140 = vmatpush.bf16.msrb.mxu3 %v9108_v32  ;;  %5154 = vmatpush.bf16.msra.mxu0 %v9116_v51  ;;  %v5234_v32 = vpack.c.b16 %v4939_v11, %v5231_v48  ;;  %v9166_v51 = vld [vmem:[#allocation10 + $0x4d0] sm:$0xff]  ;;  %v5492_v11 = vpack.c.b16 %v5489_v40, %v5489_v40 }
 0x407   : > { %5398 = vmatpush.bf16.msra.mxu2 %v9133_v54  ;;  %v5242_v45 = vrot.slane %v10331_v52, 1 }
 0x408   : > { %5166 = vmatpush.bf16.msra.mxu1 %v9126_v55  ;;  %v5514_v54 = vshrl.u32 %v5234_v32, 16  ;;  %v5517_v55 = vshll.u32 %v5234_v32, 16  ;;  %v5239_v59 = vrot.slane %v5234_v32, 1  ;;  %v5505_v50 = vshrl.u32 %v5492_v11, 16 }
 0x409   : > { %5141 = vmatmul.bf16.vlgmr.msrb.gmra.mxu3 %v4961_v63  ;;  %5155 = vmatmul.bf16.vlgmr.msra.gmra.mxu0 %v4973_v4  ;;  %v9178_v4 = vld [vmem:[#allocation10 + $0x530] sm:$0xff]  ;;  %v5508_v62 = vshll.u32 %v5492_v11, 16  ;;  %v5244_v12 = vsel %vm1800_vm3, %v5242_v45, %v5243_v21  ;;  %v9195_v45 = vld [vmem:[#allocation11 + $0x78] sm:$0xff] }
 0x40a   : > { %5406 = vmatpush.bf16.msra.mxu3 %v9147_v26  ;;  %5420 = vmatpush.bf16.msrb.mxu0 %v9155_v49  ;;  %v9159_v26 = vld [vmem:[#allocation10 + $0x498] sm:$0xff]  ;;  %v9165_v49 = vld [vmem:[#allocation10 + $0x4c8] sm:$0xff]  ;;  %v5519_v63 = vrot.slane %v5517_v55, 2  ;;  %v5241_v42 = vsel %vm1800_vm3, %v5239_v59, %v5240_v60 }
 0x40b   : > { %5399 = vmatpush.bf16.msra.mxu2 %v9132_v0  ;;  %v5524_v0 = vrot.slane %v5522_v56, 1 }
 0x40c   : > { %5167 = vmatpush.bf16.msra.mxu1 %v9125_v3  ;;  %v5527_v3 = vrot.slane %v5525_v57, 2 }
 0x40e   : > { %5407 = vmatpush.bf16.msra.mxu3 %v9146_v35  ;;  %5421 = vmatpush.bf16.msrb.mxu0 %v9154_v5  ;;  %v5516_v35 = vrot.slane %v5514_v54, 1  ;;  %v5497_v5 = vshrl.u32 %v10315_v61, 16 }
 0x40f   : > { %5708 = vmatpush.bf16.msrb.mxu2 %v9171_v6  ;;  %v5500_v6 = vshll.u32 %v10315_v61, 16 }
 0x410   : > { %5400 = vmatmul.bf16.vlgmr.msra.gmra.mxu2 %v5238_v53  ;;  %5168 = vmatpush.bf16.msra.mxu1 %v9124_v44  ;;  %v5520_v13 = vor.u32 %v5519_v63, %v5516_v35  ;;  %v9177_v44 = vld [vmem:[#allocation10 + $0x528] sm:$0xff]  ;;  %v5510_v53 = vrot.slane %v5508_v62, 2 }
 0x411   : > { %v5502_v61 = vrot.slane %v5500_v6, 2 }
 0x412   : > { %5408 = vmatpush.bf16.msra.mxu3 %v9145_v2  ;;  %5422 = vmatpush.bf16.msrb.mxu0 %v9153_v22  ;;  %v5528_v2 = vor.u32 %v5527_v3, %v5524_v0  ;;  %v5499_v22 = vrot.slane %v5497_v5, 1 }
 0x413   : > { %5709 = vmatpush.bf16.msrb.mxu2 %v9170_v14  ;;  %5169 = vmatmul.bf16.vlgmr.msra.gmra.mxu1 %v4985_v24  ;;  %v5507_v14 = vrot.slane %v5505_v50, 1  ;;  %v5491_v24 = vunpack.c.l.b16 %v5437_v15 }
 0x414   : > { %5694 = vmatpush.bf16.msrb.mxu1 %v9163_v38  ;;  %v9156_v38 = vld [vmem:[#allocation10 + $0x480] sm:$0xff]  ;;  %v5529_v58 = vsel %vm5495_vm7, %v5520_v13, %v5528_v2  ;;  %v9194_v2 = vld [vmem:[#allocation11 + $0x70] sm:$0xff] }
 0x415   : > { %v5494_v28 = vpack.c.b16 %v5491_v24, %v5491_v24 }
 0x416   : > { %5409 = vmatpush.bf16.msra.mxu3 %v9144_v19  ;;  %5423 = vmatpush.bf16.msrb.mxu0 %v9152_v20  ;;  %v5503_v19 = vor.u32 %v5502_v61, %v5499_v22  ;;  %v5511_v20 = vor.u32 %v5510_v53, %v5507_v14  ;;  %v9187_v22 = vld [vmem:[#allocation11 + $0x38] sm:$0xff]  ;;  %v9193_v14 = vld [vmem:[#allocation11 + $0x68] sm:$0xff] }
 0x417   : > { %5710 = vmatpush.bf16.msrb.mxu2 %v9169_v23  ;;  %v9176_v23 = vld [vmem:[#allocation10 + $0x520] sm:$0xff]  ;;  %v5542_v39 = vshll.u32 %v5494_v28, 16 }
 0x418   : > { %5695 = vmatpush.bf16.msrb.mxu1 %v9162_v25  ;;  %v5512_v25 = vsel %vm5495_vm7, %v5503_v19, %v5511_v20 }
 0x41a   : > { %5410 = vmatpush.bf16.msra.mxu3 %v9143_v27  ;;  %5424 = vmatpush.bf16.msrb.mxu0 %v9151_v29  ;;  %v9175_v27 = vld [vmem:[#allocation10 + $0x518] sm:$0xff]  ;;  %v9174_v29 = vld [vmem:[#allocation10 + $0x510] sm:$0xff] }
 0x41b   : > { %5711 = vmatpush.bf16.msrb.mxu2 %v9168_v34  ;;  %v5531_v34 = vshrl.u32 %v10331_v52, 16 }
 0x41c   : > { %5696 = vmatpush.bf16.msrb.mxu1 %v9161_v37  ;;  %v5534_v37 = vshll.u32 %v10331_v52, 16 }
 0x41e   : > { %5411 = vmatpush.bf16.msra.mxu3 %v9142_v17  ;;  %5425 = vmatpush.bf16.msrb.mxu0 %v9150_v47  ;;  %v5539_v17 = vshrl.u32 %v5494_v28, 16  ;;  %v5533_v47 = vrot.slane %v5531_v34, 1  ;;  %v9202_v28 = vld [vmem:[#allocation11 + $0xb0] sm:$0xff] }
 0x41f   : > { %5712 = vmatpush.bf16.msrb.mxu2 %v9167_v41  ;;  %v5536_v41 = vrot.slane %v5534_v37, 2  ;;  %v9186_v34 = vld [vmem:[#allocation11 + $0x30] sm:$0xff] }
 0x420   : > { %5697 = vmatpush.bf16.msrb.mxu1 %v9160_v7  ;;  %v5541_v48 = vrot.slane %v5539_v17, 1  ;;  %v5544_v7 = vrot.slane %v5542_v39, 2  ;;  %v9211_v17 = vld [vmem:[#allocation11 + $0xf8] sm:$0xff] }
 0x422   : > { %5412 = vmatpush.bf16.msra.mxu3 %v9141_v16  ;;  %5426 = vmatpush.bf16.msrb.mxu0 %v9149_v9  ;;  %v5537_v16 = vor.u32 %v5536_v41, %v5533_v47  ;;  %v5545_v32 = vor.u32 %v5544_v7, %v5541_v48  ;;  %v9201_v48 = vld [vmem:[#allocation11 + $0xa8] sm:$0xff]  ;;  %v9191_v7 = vld [vmem:[#allocation11 + $0x58] sm:$0xff] }
 0x423   : > { %5713 = vmatpush.bf16.msrb.mxu2 %v9166_v51 }
 0x424   : > { %5698 = vmatpush.bf16.msrb.mxu1 %v9159_v26  ;;  %v5546_v36 = vsel %vm5495_vm7, %v5537_v16, %v5545_v32 }
 0x426   : > { %5413 = vmatpush.bf16.msra.mxu3 %v9140_v8  ;;  %5427 = vmatpush.bf16.msrb.mxu0 %v9148_v30 }
 0x427   : > { %5714 = vmatpush.bf16.msrb.mxu2 %v9165_v49 }
 0x428   : > { %5699 = vmatpush.bf16.msrb.mxu1 %v9158_v33 }
 0x429   : > { %5414 = vmatmul.bf16.vlgmr.msra.gmra.mxu3 %v5241_v42  ;;  %5428 = vmatmul.bf16.vlgmr.msrb.gmra.mxu0 %v5244_v12 }
 0x42a   : > { %5722 = vmatpush.bf16.msrb.mxu3 %v9179_v1  ;;  %5869 = vmatpush.bf16.msra.mxu0 %v9195_v45 }
 0x42b   : > { %5715 = vmatpush.bf16.msrb.mxu2 %v9164_v10 }
 0x42c   : > { %5700 = vmatpush.bf16.msrb.mxu1 %v9157_v46 }
 0x42e   : > { %5723 = vmatpush.bf16.msrb.mxu3 %v9178_v4  ;;  %5716 = vmatmul.bf16.vlgmr.msrb.gmra.mxu2 %v5529_v58 }
 0x42f   : > { %5870 = vmatpush.bf16.msra.mxu0 %v9194_v2 }
 0x430   : > { %5701 = vmatpush.bf16.msrb.mxu1 %v9156_v38 }
 0x432   : > { %5724 = vmatpush.bf16.msrb.mxu3 %v9177_v44  ;;  %v9203_v44 = vld [vmem:[#allocation11 + $0xb8] sm:$0xff] }
 0x433   : > { %5702 = vmatmul.bf16.vlgmr.msrb.gmra.mxu1 %v5512_v25  ;;  %6019 = vmatpush.bf16.msra.mxu2 %v9203_v44 }
 0x434   : > { %5938 = vmatpush.bf16.msra.mxu1 %v9187_v22  ;;  %5871 = vmatpush.bf16.msra.mxu0 %v9193_v14  ;;  %v9198_v14 = vld [vmem:[#allocation11 + $0x90] sm:$0xff] }
 0x436   : > { %5725 = vmatpush.bf16.msrb.mxu3 %v9176_v23 }
 0x437   : > { %6020 = vmatpush.bf16.msra.mxu2 %v9202_v28 }
 0x438   : > { %5939 = vmatpush.bf16.msra.mxu1 %v9186_v34  ;;  %v9181_v34 = vld [vmem:[#allocation11 + $0x8] sm:$0xff] }
 0x43a   : > { %5726 = vmatpush.bf16.msrb.mxu3 %v9175_v27 }
 0x43b   : > { %6021 = vmatpush.bf16.msra.mxu2 %v9201_v48  ;;  %v9196_v48 = vld [vmem:[#allocation11 + $0x80] sm:$0xff] }
 0x43e   : > { %5727 = vmatpush.bf16.msrb.mxu3 %v9174_v29  ;;  %v9192_v29 = vld [vmem:[#allocation11 + $0x60] sm:$0xff] }
 0x43f   : > { %5872 = vmatpush.bf16.msra.mxu0 %v9192_v29  ;;  %v9197_v29 = vld [vmem:[#allocation11 + $0x88] sm:$0xff] }
 0x442   : > { %5728 = vmatpush.bf16.msrb.mxu3 %v9173_v43 }
 0x443   : > { %5873 = vmatpush.bf16.msra.mxu0 %v9191_v7  ;;  %v9180_v7 = vld [vmem:[#allocation11] sm:$0xff] }
 0x446   : > { %5729 = vmatpush.bf16.msrb.mxu3 %v9172_v18  ;;  %v4062_v51 = vpop.f32.mrf.mxu0 }
 0x449   : > { %5730 = vmatmul.bf16.vlgmr.msrb.gmra.mxu3 %v5546_v36  ;;  %v9185_v36 = vld [vmem:[#allocation11 + $0x28] sm:$0xff] }
 0x44a   : > { %6124 = vmatpush.bf16.msra.mxu3 %v9211_v17  ;;  %5940 = vmatpush.bf16.msra.mxu1 %v9185_v36 }
 0x44c   : > { %v4048_v40 = vpop.f32.mrf.mxu3 }
 0x44d   : > { %v4063_v46 = vadd.f32 %v4062_v51, %v4048_v40  ;;  %v9210_v40 = vld [vmem:[#allocation11 + $0xf0] sm:$0xff] }
 0x44e   : > { %v4064_v54 = vpop.f32.mrf.mxu0  ;;  %6125 = vmatpush.bf16.msra.mxu3 %v9210_v40  ;;  %v5758_v40 = vld [vmem:[#allocation2 + $0xc] sm:$0x8] }
 0x450   : > { %v4076_v26 = vpop.f32.mrf.mxu1  ;;  %v4297_v52 = vpop.f32.mrf.mxu2 }
 0x451   : > { %v4077_v13 = vadd.f32 %v4076_v26, %v4063_v46 }
 0x453   : > { %v4298_v15 = vadd.f32 %v4297_v52, %v4077_v13 }
 0x454   : > { %v4050_v9 = vpop.f32.mrf.mxu3 }
 0x455   : > { %v4065_v53 = vadd.f32 %v4064_v54, %v4050_v9 }
 0x456   : > { %v4325_v1 = vpop.f32.mrf.mxu0 }
 0x458   : > { %v4078_v55 = vpop.f32.mrf.mxu1  ;;  %v4299_v56 = vpop.f32.mrf.mxu2 }
 0x459   : > { %v4079_v24 = vadd.f32 %v4078_v55, %v4065_v53  ;;  %v9188_v53 = vld [vmem:[#allocation11 + $0x40] sm:$0xff] }
 0x45b   : > { %v4300_v18 = vadd.f32 %v4299_v56, %v4079_v24  ;;  %v9184_v56 = vld [vmem:[#allocation11 + $0x20] sm:$0xff] }
 0x45c   : > { %v4311_v8 = vpop.f32.mrf.mxu3  ;;  %5941 = vmatpush.bf16.msra.mxu1 %v9184_v56  ;;  %v6037_v56 = vld [vmem:[#allocation2 + $0x30] sm:$0x1] }
 0x45d   : > { %v4312_v19 = vadd.f32 %v4311_v8, %v4298_v15  ;;  %v9207_v15 = vld [vmem:[#allocation11 + $0xd8] sm:$0xff] }
 0x45e   : > { %v10347_v59 = vpop.f32.mrf.mxu0 }
 0x45f   : > { %v4326_v39 = vadd.f32 %v4325_v1, %v4312_v19  ;;  %v9200_v1 = vld [vmem:[#allocation11 + $0xa0] sm:$0xff] }
 0x460   : > { %v4596_v11 = vpop.f32.mrf.mxu1  ;;  %v4610_v30 = vpop.f32.mrf.mxu2  ;;  %6022 = vmatpush.bf16.msra.mxu2 %v9200_v1  ;;  %v9215_v1 = vld [vmem:[#allocation11 + $0x118] sm:$0xff] }
 0x461   : > { %v4611_v20 = vadd.f32 %v4610_v30, %v4596_v11  ;;  %v9190_v11 = vld [vmem:[#allocation11 + $0x50] sm:$0xff]  ;;  %v9209_v30 = vld [vmem:[#allocation11 + $0xe8] sm:$0xff] }
 0x462   : > { %5874 = vmatpush.bf16.msra.mxu0 %v9190_v11  ;;  %6126 = vmatpush.bf16.msra.mxu3 %v9209_v30 }
 0x464   : > { %v10345_v57 = vpop.f32.mrf.mxu3 }
 0x465   : > { %v4314_v26 = vadd.f32 %v10345_v57, %v4300_v18  ;;  %v9205_v18 = vld [vmem:[#allocation11 + $0xc8] sm:$0xff] }
 0x466   : > { %v4839_v35 = vpop.f32.mrf.mxu0 }
 0x467   : > { %v4328_v57 = vadd.f32 %v10347_v59, %v4314_v26  ;;  %v9216_v26 = vld [vmem:[#allocation11 + $0x120] sm:$0xff] }
 0x468   : > { %v4598_v60 = vpop.f32.mrf.mxu1  ;;  %v4612_v33 = vpop.f32.mrf.mxu2 }
 0x469   : > { %v4613_v8 = vadd.f32 %v4612_v33, %v4598_v60 }
 0x46c   : > { %v4624_v49 = vpop.f32.mrf.mxu3 }
 0x46d   : > { %v4625_v25 = vadd.f32 %v4624_v49, %v4611_v20 }
 0x46e   : > { %v4841_v4 = vpop.f32.mrf.mxu0 }
 0x46f   : > { %v4629_v9 = vadd.f32 %v4625_v25, %v4326_v39 }
 0x470   : > { %v4853_v63 = vpop.f32.mrf.mxu1 }
 0x471   : > { %v4854_v23 = vadd.f32 %v4853_v63, %v4839_v35 }
 0x473   : > { %v4867_v0 = vpop.f32.mrf.mxu2 }
 0x474   : > { %v10349_v21 = vpop.f32.mrf.mxu3  ;;  %v4868_v43 = vadd.f32 %v4867_v0, %v4854_v23 }
 0x475   : > { %v4627_v49 = vadd.f32 %v10349_v21, %v4613_v8  ;;  %v9183_v21 = vld [vmem:[#allocation11 + $0x18] sm:$0xff]  ;;  %v5798_v8 = vunpack.c.l.b16 %v5758_v40  ;;  %v9226_v40 = vld [vmem:[#allocation13 + $0x30] sm:$0xff] }
 0x476   : > { %v4872_v54 = vadd.f32 %v4868_v43, %v4629_v9  ;;  %5942 = vmatpush.bf16.msra.mxu1 %v9183_v21  ;;  %v9218_v43 = vld [vmem:[#allocation11 + $0x130] sm:$0xff]  ;;  %v9204_v9 = vld [vmem:[#allocation11 + $0xc0] sm:$0xff] }
 0x478   : > { %v4855_v5 = vpop.f32.mrf.mxu1 }
 0x479   : > { %v4856_v52 = vadd.f32 %v4855_v5, %v4841_v4  ;;  %v9395_v5 = vld [vmem:[%s10439_s1] ss:$0 sm:$0xff] }
 0x47b   : > { %v10351_v6 = vpop.f32.mrf.mxu2 }
 0x47c   : > { %v4870_v60 = vadd.f32 %v10351_v6, %v4856_v52  ;;  %v9396_v6 = vld [vmem:[%s10440_s0] ss:$0 sm:$0xff] }
 0x486   : > { %v5156_v62 = vpop.f32.mrf.mxu0 }
 0x48c   : > { %v5142_v3 = vpop.f32.mrf.mxu3 }
 0x48d   : > { %v5157_v27 = vadd.f32 %v5156_v62, %v5142_v3  ;;  %v9199_v62 = vld [vmem:[#allocation11 + $0x98] sm:$0xff] }
 0x48e   : > { %v5158_v61 = vpop.f32.mrf.mxu0  ;;  %6023 = vmatpush.bf16.msra.mxu2 %v9199_v62  ;;  %v9213_v62 = vld [vmem:[#allocation11 + $0x108] sm:$0xff] }
 0x490   : > { %v5170_v42 = vpop.f32.mrf.mxu1 }
 0x491   : > { %v5171_v51 = vadd.f32 %v5170_v42, %v5157_v27  ;;  %v9189_v42 = vld [vmem:[#allocation11 + $0x48] sm:$0xff] }
 0x492   : > { %5875 = vmatpush.bf16.msra.mxu0 %v9189_v42  ;;  %6024 = vmatpush.bf16.msra.mxu2 %v9198_v14 }
 0x493   : > { %v5401_v10 = vpop.f32.mrf.mxu2  ;;  %v5175_v45 = vadd.f32 %v5171_v51, %v4872_v54 }
 0x494   : > { %v10353_v50 = vpop.f32.mrf.mxu3 }
 0x495   : > { %v5159_v35 = vadd.f32 %v5158_v61, %v10353_v50  ;;  %v4630_v50 = vadd.f32 %v4627_v49, %v4328_v57  ;;  %v9214_v49 = vld [vmem:[#allocation11 + $0x110] sm:$0xff] }
 0x496   : > { %5876 = vmatpush.bf16.msra.mxu0 %v9188_v53  ;;  %6025 = vmatpush.bf16.msra.mxu2 %v9197_v29 }
 0x497   : > { %v4873_v44 = vadd.f32 %v4870_v60, %v4630_v50 }
 0x498   : > { %v10355_v38 = vpop.f32.mrf.mxu1 }
 0x499   : > { %v5173_v46 = vadd.f32 %v10355_v38, %v5159_v35  ;;  %v9219_v38 = vld [vmem:[#allocation11 + $0x138] sm:$0xff] }
 0x49a   : > { %6213 = vmatpush.bf16.msrb.mxu0 %v9219_v38  ;;  %6026 = vmatpush.bf16.msra.mxu2 %v9196_v48  ;;  %v9234_v48 = vld [vmem:[#allocation13 + $0x70] sm:$0xff] }
 0x49b   : > { %v5403_v58 = vpop.f32.mrf.mxu2  ;;  %v5176_v19 = vadd.f32 %v5173_v46, %v4873_v44 }
 0x49e   : > { %6214 = vmatpush.bf16.msrb.mxu0 %v9218_v43 }
 0x4a6   : > { %v5429_v47 = vpop.f32.mrf.mxu0 }
 0x4ac   : > { %v5415_v12 = vpop.f32.mrf.mxu3 }
 0x4ad   : > { %v5416_v41 = vadd.f32 %v5415_v12, %v5401_v10  ;;  %v9208_v10 = vld [vmem:[#allocation11 + $0xe0] sm:$0xff] }
 0x4ae   : > { %v5431_v59 = vpop.f32.mrf.mxu0  ;;  %6127 = vmatpush.bf16.msra.mxu3 %v9208_v10 }
 0x4af   : > { %v5430_v55 = vadd.f32 %v5429_v47, %v5416_v41 }
 0x4b0   : > { %v5703_v16 = vpop.f32.mrf.mxu1 }
 0x4b1   : > { %v5717_v32 = vpop.f32.mrf.mxu2  ;;  %v5434_v3 = vadd.f32 %v5430_v55, %v5175_v45  ;;  %v6060_v45 = vunpack.c.l.b16 %v6037_v56 }
 0x4b2   : > { %v5718_v63 = vadd.f32 %v5717_v32, %v5703_v16  ;;  %6128 = vmatpush.bf16.msra.mxu3 %v9207_v15  ;;  %v9217_v32 = vld [vmem:[#allocation11 + $0x128] sm:$0xff] }
 0x4b3   : > { %6215 = vmatpush.bf16.msrb.mxu0 %v9217_v32  ;;  %v6062_v42 = vpack.c.b16 %v6060_v45, %v6060_v45  ;;  %v9243_v32 = vld [vmem:[#allocation13 + $0xb0] sm:$0xff]  ;;  %v9224_v45 = vld [vmem:[#allocation13 + $0x20] sm:$0xff] }
 0x4b4   : > { %v5417_v37 = vpop.f32.mrf.mxu3 }
 0x4b5   : > { %v5418_v0 = vadd.f32 %v5417_v37, %v5403_v58  ;;  %v9182_v58 = vld [vmem:[#allocation11 + $0x10] sm:$0xff] }
 0x4b6   : > { %5943 = vmatpush.bf16.msra.mxu1 %v9182_v58  ;;  %v9206_v37 = vld [vmem:[#allocation11 + $0xd0] sm:$0xff] }
 0x4b7   : > { %v5432_v22 = vadd.f32 %v5431_v59, %v5418_v0  ;;  %6129 = vmatpush.bf16.msra.mxu3 %v9206_v37  ;;  %6216 = vmatpush.bf16.msrb.mxu0 %v9216_v26  ;;  %v9242_v26 = vld [vmem:[#allocation13 + $0xa8] sm:$0xff] }
 0x4b8   : > { %v5705_v13 = vpop.f32.mrf.mxu1 }
 0x4b9   : > { %v5719_v2 = vpop.f32.mrf.mxu2  ;;  %v5435_v27 = vadd.f32 %v5432_v22, %v5176_v19 }
 0x4ba   : > { %v5720_v20 = vadd.f32 %v5719_v2, %v5705_v13  ;;  %5944 = vmatpush.bf16.msra.mxu1 %v9181_v34 }
 0x4bb   : > { %6130 = vmatpush.bf16.msra.mxu3 %v9205_v18  ;;  %6217 = vmatpush.bf16.msrb.mxu0 %v9215_v1  ;;  %v9227_v18 = vld [vmem:[#allocation13 + $0x38] sm:$0xff] }
 0x4bc   : > { %6423 = vmatpush.bf16.msrb.mxu2 %v9227_v18  ;;  %v9231_v1 = vld [vmem:[#allocation13 + $0x58] sm:$0xff] }
 0x4be   : > { %5945 = vmatpush.bf16.msra.mxu1 %v9180_v7 }
 0x4bf   : > { %6131 = vmatpush.bf16.msra.mxu3 %v9204_v9  ;;  %6218 = vmatpush.bf16.msrb.mxu0 %v9214_v49  ;;  %v9232_v9 = vld [vmem:[#allocation13 + $0x60] sm:$0xff]  ;;  %v9397_v49 = vld [vmem:[%s10441_s28] ss:$0 sm:$0xff] }
 0x4c0   : > { %6424 = vmatpush.bf16.msrb.mxu2 %v9226_v40 }
 0x4c3   : > { %6219 = vmatpush.bf16.msrb.mxu0 %v9213_v62  ;;  %v9229_v62 = vld [vmem:[#allocation13 + $0x48] sm:$0xff] }
 0x4cc   : > { %v5731_v33 = vpop.f32.mrf.mxu3 }
 0x4cd   : > { %v5732_v4 = vadd.f32 %v5731_v33, %v5718_v63 }
 0x4cf   : > { %v5736_v12 = vadd.f32 %v5732_v4, %v5434_v3 }
 0x4d1   : > { %v5742_v61 = vmul.f32 %v9395_v5, %v5736_v12 }
 0x4d3   : > { %v5748_v23 = vadd.f32 %v9396_v6, %v5742_v61  ;;  %v9212_v61 = vld [vmem:[#allocation11 + $0x100] sm:$0xff] }
 0x4d4   : > { %v5733_v24 = vpop.f32.mrf.mxu3  ;;  %6220 = vmatpush.bf16.msrb.mxu0 %v9212_v61 }
 0x4d5   : > { %v5750_v25 = vmax.f32 %v5748_v23, 0.0  ;;  %v5734_v28 = vadd.f32 %v5733_v24, %v5720_v20 }
 0x4d7   : > { %v5752_v17 = vmul.f32 %v10090_v31, %v5750_v25  ;;  %v5737_v39 = vadd.f32 %v5734_v28, %v5435_v27 }
 0x4d9   : > { %v5754_v47 = vpack.c.bf16 %v5752_v17, %v5752_v17  ;;  %v5743_v41 = vmul.f32 %v9395_v5, %v5737_v39  ;;  %v6162_v39 = vrot.slane %v6062_v42, 1 }
 0x4db   : > { %5756 = vst [vmem:[#allocation2 + $0x18] sm:$0xf] %v5754_v47  ;;  %v5749_v16 = vadd.f32 %v9396_v6, %v5743_v41  ;;  %v6071_v6 = vshll.u32 %v6062_v42, 16  ;;  %v9235_v47 = vld [vmem:[#allocation13 + $0x78] sm:$0xff] }
 0x4dc   : > { %v9244_v41 = vld [vmem:[#allocation13 + $0xb8] sm:$0xff]  ;;  %6339 = vmatpush.bf16.msrb.mxu1 %v9235_v47 }
 0x4dd   : > { %v5751_v36 = vmax.f32 %v5749_v16, 0.0  ;;  %v6073_v23 = vrot.slane %v6071_v6, 1  ;;  %6526 = vmatpush.bf16.msrb.mxu3 %v9244_v41  ;;  %v9233_v16 = vld [vmem:[#allocation13 + $0x68] sm:$0xff]  ;;  %v9222_v6 = vld [vmem:[#allocation13 + $0x10] sm:$0xff] }
 0x4df   : > { %v5753_v51 = vmul.f32 0.0, %v5751_v36 }
 0x4e0   : > { %6340 = vmatpush.bf16.msrb.mxu1 %v9234_v48 }
 0x4e1   : > { %v5755_v52 = vpack.c.bf16 %v5753_v51, %v5753_v51  ;;  %6527 = vmatpush.bf16.msrb.mxu3 %v9243_v32 }
 0x4e2   : > { %v5759_v54 = vld [vmem:[#allocation2 + $0x18] sm:$0xf] }
 0x4e3   : > { %5757 = vst [vmem:[#allocation2 + $0x24] sm:$0xf] %v5755_v52  ;;  %v5799_v55 = vunpack.c.l.b16 %v5759_v54  ;;  %v6035_v30 = vld [vmem:[#allocation2 + $0x18] sm:$0xf] }
 0x4e4   : > { %v6058_v33 = vunpack.c.l.b16 %v6035_v30  ;;  %v6140_v29 = vld [vmem:[#allocation2 + $0x18] sm:$0xe]  ;;  %6341 = vmatpush.bf16.msrb.mxu1 %v9233_v16 }
 0x4e5   : > { %v5801_v11 = vpack.c.b16 %v5799_v55, %v5798_v8  ;;  %v6159_v34 = vunpack.c.l.b16 %v6140_v29  ;;  %6528 = vmatpush.bf16.msrb.mxu3 %v9242_v26 }
 0x4e7   : > { %v5804_v35 = vshrl.u32 %v5801_v11, 16  ;;  %v5807_v4 = vshll.u32 %v5801_v11, 16  ;;  %v5886_v59 = vrot.slane %v5801_v11, 3  ;;  %v9241_v11 = vld [vmem:[#allocation13 + $0xa0] sm:$0xff] }
 0x4e8   : > { %6342 = vmatpush.bf16.msrb.mxu1 %v9232_v9 }
 0x4e9   : > { %v5806_v12 = vrot.slane %v5804_v35, 3  ;;  %v5809_v2 = vrot.slane %v5807_v4, 4  ;;  %v9230_v35 = vld [vmem:[#allocation13 + $0x50] sm:$0xff]  ;;  %6529 = vmatpush.bf16.msrb.mxu3 %v9241_v11 }
 0x4ea   : > { %v5777_v63 = vld [vmem:[#allocation2 + $0x24] sm:$0xf] }
 0x4eb   : > { %v5760_v57 = vld [vmem:[#allocation2 + $0x24] sm:$0x7]  ;;  %v5800_v0 = vunpack.c.l.b16 %v5777_v63  ;;  %v5810_v38 = vor.u32 %v5809_v2, %v5806_v12 }
 0x4ec   : > { %v6036_v60 = vld [vmem:[#allocation2 + $0x24] sm:$0xf]  ;;  %v5884_v3 = vunpack.c.l.b16 %v5760_v57  ;;  %6343 = vmatpush.bf16.msrb.mxu1 %v9231_v1 }
 0x4ed   : > { %v6059_v5 = vunpack.c.l.b16 %v6036_v60  ;;  %v5969_v21 = vpack.c.b16 %v5800_v0, %v5799_v55  ;;  %v5802_v50 = vpack.c.b16 %v5800_v0, %v5800_v0  ;;  %v9225_v55 = vld [vmem:[#allocation13 + $0x28] sm:$0xff]  ;;  %v9240_v60 = vld [vmem:[#allocation13 + $0x98] sm:$0xff] }
 0x4ee   : > { %v5885_v10 = vpack.c.b16 %v5884_v3, %v5884_v3  ;;  %6425 = vmatpush.bf16.msrb.mxu2 %v9225_v55  ;;  %v9398_v3 = vld [vmem:[%s10442_s22] ss:$0 sm:$0xff]  ;;  %6530 = vmatpush.bf16.msrb.mxu3 %v9240_v60 }
 0x4ef   : > { %v6061_v46 = vpack.c.b16 %v6059_v5, %v6058_v33  ;;  %6027 = vmatmul.bf16.vlgmr.msra.gmra.mxu2 %v5969_v21  ;;  %v5812_v44 = vshrl.u32 %v5802_v50, 16  ;;  %v5815_v22 = vshll.u32 %v5802_v50, 16  ;;  %v6160_v37 = vpack.c.b16 %v6059_v5, %v6159_v34  ;;  %v9223_v5 = vld [vmem:[#allocation13 + $0x18] sm:$0xff] }
 0x4f0   : > { %v5887_v13 = vrot.slane %v5885_v10, 3  ;;  %6344 = vmatpush.bf16.msrb.mxu1 %v9230_v35  ;;  %v9239_v10 = vld [vmem:[#allocation13 + $0x90] sm:$0xff] }
 0x4f1   : > { %v6066_v14 = vshll.u32 %v6061_v46, 16  ;;  %v5814_v58 = vrot.slane %v5812_v44, 3  ;;  %v5817_v15 = vrot.slane %v5815_v22, 4  ;;  %v6064_v19 = vshrl.u32 %v6061_v46, 16  ;;  %v9238_v44 = vld [vmem:[#allocation13 + $0x88] sm:$0xff] }
 0x4f2   : > { %v5888_v53 = vsel %vm1523_vm0, %v5886_v59, %v5887_v13  ;;  %v6161_v17 = vrot.slane %v6160_v37, 1  ;;  %6426 = vmatpush.bf16.msrb.mxu2 %v9224_v45  ;;  %v9228_v13 = vld [vmem:[#allocation13 + $0x40] sm:$0xff]  ;;  %6531 = vmatpush.bf16.msrb.mxu3 %v9239_v10  ;;  %v9400_v10 = vld [vmem:[%s9886_s12] ss:$0 sm:$0xff] }
 0x4f3   : > { %5946 = vmatmul.bf16.vlgmr.msra.gmra.mxu1 %v5888_v53  ;;  %v6068_v20 = vrot.slane %v6066_v14, 1  ;;  %v5818_v24 = vor.u32 %v5817_v15, %v5814_v58  ;;  %v9221_v58 = vld [vmem:[#allocation13 + $0x8] sm:$0xff]  ;;  %v9237_v15 = vld [vmem:[#allocation13 + $0x80] sm:$0xff] }
 0x4f4   : > { %v6163_v43 = vsel %vm1800_vm3, %v6161_v17, %v6162_v39  ;;  %6345 = vmatpush.bf16.msrb.mxu1 %v9229_v62  ;;  %v9399_v62 = vld [vmem:[%s10443_s2] ss:$0 sm:$0xff] }
 0x4f5   : > { %v6069_v25 = vor.u32 %v6068_v20, %v6064_v19  ;;  %v5819_v27 = vsel %vm1439_vm1, %v5810_v38, %v5818_v24  ;;  %v6439_v38 = vld [vmem:[#allocation2 + $0x30] sm:$0x1] }
 0x4f6   : > { %5877 = vmatmul.bf16.vlgmr.msra.gmra.mxu0 %v5819_v27  ;;  %6427 = vmatpush.bf16.msrb.mxu2 %v9223_v5 }
 0x4f7   : > { %v6074_v28 = vsel %vm1701_vm2, %v6069_v25, %v6073_v23  ;;  %6532 = vmatpush.bf16.msrb.mxu3 %v9238_v44  ;;  %v9220_v23 = vld [vmem:[#allocation13] sm:$0xff]  ;;  %v9248_v44 = vld [vmem:[#allocation14 + $0x18] sm:$0xff] }
 0x4f8   : > { %6132 = vmatmul.bf16.vlgmr.msra.gmra.mxu3 %v6074_v28  ;;  %6346 = vmatpush.bf16.msrb.mxu1 %v9228_v13  ;;  %v6249_v25 = vld [vmem:[#allocation2 + $0xc] sm:$0x8]  ;;  %v6462_v28 = vunpack.c.l.b16 %v6439_v38 }
 0x4f9   : > { %v6354_v34 = vunpack.c.l.b16 %v6249_v25 }
 0x4fa   : > { %6428 = vmatpush.bf16.msrb.mxu2 %v9222_v6  ;;  %v6464_v17 = vpack.c.b16 %v6462_v28, %v6462_v28 }
 0x4fb   : > { %6533 = vmatpush.bf16.msrb.mxu3 %v9237_v15 }
 0x4fc   : > { %v6473_v47 = vshll.u32 %v6464_v17, 16 }
 0x4fe   : > { %6429 = vmatpush.bf16.msrb.mxu2 %v9221_v58 }
 0x502   : > { %6430 = vmatpush.bf16.msrb.mxu2 %v9220_v23 }
 0x506   : > { %6221 = vmatmul.bf16.vlgmr.msrb.gmra.mxu0 %v6163_v43 }
 0x570   : > { %v5947_v36 = vpop.f32.mrf.mxu1 }
 0x572   : > { %v6028_v8 = vpop.f32.mrf.mxu2 }
 0x573   : > { %v5878_v7 = vpop.f32.mrf.mxu0 }
 0x574   : > { %v5948_v52 = vadd.f32 %v5947_v36, %v5878_v7 }
 0x576   : > { %v6033_v56 = vadd.f32 %v6028_v8, %v5948_v52 }
 0x578   : > { %v5949_v63 = vpop.f32.mrf.mxu1 }
 0x57a   : > { %v6030_v42 = vpop.f32.mrf.mxu2 }
 0x57b   : > { %v5880_v51 = vpop.f32.mrf.mxu0  ;;  %v6133_v54 = vpop.f32.mrf.mxu3 }
 0x57c   : > { %v6138_v30 = vadd.f32 %v6133_v54, %v6033_v56  ;;  %v5950_v33 = vadd.f32 %v5949_v63, %v5880_v51  ;;  %v6475_v51 = vrot.slane %v6473_v47, 1 }
 0x57e   : > { %v6034_v50 = vadd.f32 %v6030_v42, %v5950_v33  ;;  %v9251_v33 = vld [vmem:[#allocation14 + $0x30] sm:$0xff]  ;;  %v9250_v42 = vld [vmem:[#allocation14 + $0x28] sm:$0xff] }
 0x583   : > { %v6222_v57 = vpop.f32.mrf.mxu0  ;;  %v6135_v21 = vpop.f32.mrf.mxu3 }
 0x584   : > { %v6227_v0 = vadd.f32 %v6222_v57, %v6138_v30  ;;  %v6139_v59 = vadd.f32 %v6135_v21, %v6034_v50  ;;  %v9252_v57 = vld [vmem:[#allocation14 + $0x38] sm:$0xff]  ;;  %v9249_v50 = vld [vmem:[#allocation14 + $0x20] sm:$0xff] }
 0x585   : > { %6632 = vmatpush.bf16.msra.mxu0 %v9252_v57 }
 0x586   : > { %v6233_v4 = vmul.f32 %v9397_v49, %v6227_v0 }
 0x588   : > { %v6239_v46 = vadd.f32 %v9398_v3, %v6233_v4 }
 0x589   : > { %6633 = vmatpush.bf16.msra.mxu0 %v9251_v33 }
 0x58a   : > { %v6241_v12 = vmax.f32 %v6239_v46, 0.0 }
 0x58b   : > { %v6224_v2 = vpop.f32.mrf.mxu0 }
 0x58c   : > { %v6243_v22 = vmul.f32 %v10090_v31, %v6241_v12  ;;  %v6228_v61 = vadd.f32 %v6224_v2, %v6139_v59 }
 0x58d   : > { %6634 = vmatpush.bf16.msra.mxu0 %v9250_v42 }
 0x58e   : > { %v6245_v14 = vpack.c.bf16 %v6243_v22, %v6243_v22  ;;  %v6234_v53 = vmul.f32 %v9397_v49, %v6228_v61 }
 0x590   : > { %6247 = vst [vmem:[#allocation2 + $0x18] sm:$0xf] %v6245_v14  ;;  %v6240_v19 = vadd.f32 %v9398_v3, %v6234_v53  ;;  %v9247_v53 = vld [vmem:[#allocation14 + $0x10] sm:$0xff] }
 0x591   : > { %6635 = vmatpush.bf16.msra.mxu0 %v9249_v50 }
 0x592   : > { %v6242_v20 = vmax.f32 %v6240_v19, 0.0 }
 0x594   : > { %v6244_v24 = vmul.f32 0.0, %v6242_v20  ;;  %v9246_v20 = vld [vmem:[#allocation14 + $0x8] sm:$0xff] }
 0x595   : > { %6636 = vmatpush.bf16.msra.mxu0 %v9248_v44 }
 0x596   : > { %v6246_v27 = vpack.c.bf16 %v6244_v24, %v6244_v24  ;;  %v9245_v24 = vld [vmem:[#allocation14] sm:$0xff] }
 0x597   : > { %v6250_v29 = vld [vmem:[#allocation2 + $0x18] sm:$0xf] }
 0x598   : > { %6248 = vst [vmem:[#allocation2 + $0x24] sm:$0xf] %v6246_v27  ;;  %v6287_v37 = vunpack.c.l.b16 %v6250_v29  ;;  %v8719_v43 = vld [vmem:[#allocation2 + $0x18] sm:$0xf] }
 0x599   : > { %6637 = vmatpush.bf16.msra.mxu0 %v9247_v53 }
 0x59a   : > { %v6355_v39 = vpack.c.b16 %v6287_v37, %v6354_v34 }
 0x59c   : > { %v6358_v7 = vshrl.u32 %v6355_v39, 16  ;;  %v6361_v18 = vshll.u32 %v6355_v39, 16 }
 0x59d   : > { %6638 = vmatpush.bf16.msra.mxu0 %v9246_v20 }
 0x59e   : > { %v6360_v26 = vrot.slane %v6358_v7, 3  ;;  %v6363_v52 = vrot.slane %v6361_v18, 4 }
 0x59f   : > { %v6251_v41 = vld [vmem:[#allocation2 + $0x24] sm:$0xf] }
 0x5a0   : > { %v9236_v48 = vld [vmem:[#allocation2 + $0x20] sm:$0xf0]  ;;  %v6288_v16 = vunpack.c.l.b16 %v6251_v41  ;;  %v6364_v45 = vor.u32 %v6363_v52, %v6360_v26 }
 0x5a1   : > { %v8720_v32 = vor.u32 %v9236_v48, %v8719_v43  ;;  %6639 = vmatpush.bf16.msra.mxu0 %v9245_v24 }
 0x5a2   : > { %v6289_v36 = vpack.c.b16 %v6288_v16, %v6287_v37  ;;  %v6356_v9 = vpack.c.b16 %v6288_v16, %v6288_v16 }
 0x5a3   : > { %v6468_v40 = vshll.u32 %v8720_v32, 16  ;;  %v6466_v8 = vshrl.u32 %v8720_v32, 16 }
 0x5a4   : > { %6347 = vmatmul.bf16.vlgmr.msrb.gmra.mxu1 %v6289_v36  ;;  %v6366_v55 = vshrl.u32 %v6356_v9, 16  ;;  %v6369_v1 = vshll.u32 %v6356_v9, 16 }
 0x5a5   : > { %v6470_v54 = vrot.slane %v6468_v40, 1 }
 0x5a6   : > { %v6368_v56 = vrot.slane %v6366_v55, 3  ;;  %v6371_v30 = vrot.slane %v6369_v1, 4 }
 0x5a7   : > { %v6471_v11 = vor.u32 %v6470_v54, %v6466_v8 }
 0x5a8   : > { %v6372_v35 = vor.u32 %v6371_v30, %v6368_v56 }
 0x5a9   : > { %v6476_v49 = vsel %vm1701_vm2, %v6471_v11, %v6475_v51 }
 0x5aa   : > { %6534 = vmatmul.bf16.vlgmr.msrb.gmra.mxu3 %v6476_v49  ;;  %v6373_v63 = vsel %vm1439_vm1, %v6364_v45, %v6372_v35 }
 0x5ab   : > { %6431 = vmatmul.bf16.vlgmr.msrb.gmra.mxu2 %v6373_v63 }
 0x621   : > { %v6348_v60 = vpop.f32.mrf.mxu1 }
 0x629   : > { %v6350_v46 = vpop.f32.mrf.mxu1 }
 0x62d   : > { %v6535_v0 = vpop.f32.mrf.mxu3 }
 0x62e   : > { %v6432_v3 = vpop.f32.mrf.mxu2 }
 0x62f   : > { %v6433_v4 = vadd.f32 %v6432_v3, %v6348_v60 }
 0x631   : > { %v6540_v5 = vadd.f32 %v6535_v0, %v6433_v4 }
 0x633   : > { %v6546_v21 = vmul.f32 %v9399_v62, %v6540_v5 }
 0x635   : > { %v6537_v6 = vpop.f32.mrf.mxu3  ;;  %v6552_v13 = vadd.f32 %v9400_v10, %v6546_v21 }
 0x636   : > { %v6434_v59 = vpop.f32.mrf.mxu2 }
 0x637   : > { %v6435_v12 = vadd.f32 %v6434_v59, %v6350_v46  ;;  %v6554_v61 = vmax.f32 %v6552_v13, 0.0 }
 0x639   : > { %v6541_v2 = vadd.f32 %v6537_v6, %v6435_v12  ;;  %v6556_v15 = vmul.f32 %v10090_v31, %v6554_v61  ;;  %v6583_v31 = vld [vmem:[%s9896_s8] sm:$0x1] }
 0x63b   : > { %v6547_v22 = vmul.f32 %v9399_v62, %v6541_v2 }
 0x63d   : > { %v6553_v14 = vadd.f32 %v9400_v10, %v6547_v22 }
 0x63f   : > { %v6555_v58 = vmax.f32 %v6553_v14, 0.0 }
 0x641   : > { %v6557_v19 = vmul.f32 0.0, %v6555_v58 }
 0x643   : > { %v6558_v23 = vadd.f32 %v6557_v19, %v6556_v15 }
 0x645   : > { %v6559_v38 = vrot.slane %v6558_v23, 4 }
 0x647   : > { %v6560_v25 = vadd.f32 %v6559_v38, %v6558_v23 }
 0x649   : > { %v6561_v27 = vrot.slane %v6560_v25, 2 }
 0x64b   : > { %v6562_v28 = vadd.f32 %v6561_v27, %v6560_v25 }
 0x64d   : > { %v6563_v29 = vrot.slane %v6562_v28, 1 }
 0x64f   : > { %v6564_v34 = vadd.f32 %v6563_v29, %v6562_v28 }
 0x651   : > { %v6565_v37 = vmul.f32 0.5, %v6564_v34 }
 0x653   : > { %v6566_v17 = vpack.c.bf16 %v6565_v37, %v6565_v37 }
 0x655   : > { %6640 = vmatmul.bf16.vlgmr.msra.gmra.mxu0 %v6566_v17 }
 0x6d2   : > { %v6641_v39 = vpop.f32.mrf.mxu0 }
 0x6d3   : > { %v6642_v43 = vadd.f32 %v6641_v39, %v6583_v31 }
 0x6d5   : > { %v6646_v47 = vsel %vm6645_vm8, %v6642_v43, 0.0 }
 0x6d6   : > { %6647 = vst [vmem:[%s1241_s4] sm:$0xff] %v6646_v47 }
 0x6da   : > { %v6643_v41 = vpop.f32.mrf.mxu0 }
 0x6db PF: > { %s10444_s10 = sld [smem:[#allocation41_spill]] }
 0x6e1   : > { %s86_s22 = sadd.s32 1, %s10444_s10  }
 0x6e2   : > { %p83_p3 = scmp.ge.s32.totalorder %s86_s22, 4  }
 0x6e4   :  { %85 = sbr.rel (!%p83_p3) target bundleno = 62 (0x3e), region = 288 }
 0x6e9   :  { %6667 = vsyncpa [#allocation4], 1 }
 0x6ea   :  { %6669 = vsyncpa [#allocation4 + $0x1], 1 }
 0x6eb   :  { %6670 = vsyncpa [#allocation6], 1 }
 0x6ec   :  { %6671 = vsyncpa [#allocation9], 1 }
 0x6ed   :  { %6672 = vsyncpa [#allocation12], 1 }
 0x6ee   :  { %6673 = vsyncpa [#allocation15], 1 }

</bundles_post_ra>
